<compile_context>
chip_gen: v6e
topology: v6e:2x2x1
jax: 0.10.0
libtpu: 0.0.40
codegen_flags: <defaults>
</compile_context>

<pallas_src>
import functools

import jax
import jax.numpy as jnp
from jax import lax
from jax.experimental import pallas as pl


# ----------------------------------------------------------------------------
# Fused kernel: entity extraction + description attention + normalization +
# hard-negative mining + contrastive (InfoNCE-style) loss, whole batch at once.
# ----------------------------------------------------------------------------
def _emma_fused_kernel(sen_ref, des_ref, pos1_ref, pos2_ref, wbd_ref, bias_ref,
                       sen_vec_ref, des_vec_ref, loss_ref, full_cos_ref,
                       extra_ref, *, kk):
    B, M, H = sen_ref.shape
    sen = sen_ref[...]                       # [B, M, H]
    des = des_ref[...]                       # [B, M, H]
    idx1 = pos1_ref[...]                     # [B, 1] int32 (entity-1 position)
    idx2 = pos2_ref[...]                     # [B, 1] int32 (entity-2 position)

    inv_m = jnp.float32(1.0 / M)

    # --- entity extraction (extract_entity / get_sen_entity_between_vec) ----
    iota_m = lax.broadcasted_iota(jnp.int32, (B, M), 1)
    m1 = (iota_m == idx1).astype(jnp.float32)            # [B, M] one-hot
    m2 = (iota_m == idx2).astype(jnp.float32)
    lo = jnp.minimum(idx1, idx2)
    hi = jnp.maximum(idx1, idx2)
    span = ((iota_m >= lo) & (iota_m <= hi)).astype(jnp.float32)

    # torch semantics: zeros from unmasked positions participate in the max.
    e1 = jnp.max(m1[:, :, None] * sen, axis=1)            # [B, H]
    e2 = jnp.max(m2[:, :, None] * sen, axis=1)            # [B, H]
    between = jnp.sum(span[:, :, None] * sen, axis=1) * inv_m

    sen_feat = jnp.sum(sen, axis=1) * inv_m                # [B, H]
    des_feat = jnp.sum(des, axis=1) * inv_m                # [B, H]

    q_cat = jnp.concatenate([e1, e2, between], axis=-1)    # [B, 3H]

    # F.normalize(cat([e1, e2, between]), p=2, dim=1), eps = 1e-12
    s_inv = lax.rsqrt(jnp.maximum(
        jnp.sum(q_cat * q_cat, axis=-1, keepdims=True), 1e-24))
    sen_ent = q_cat * s_inv                                # [B, 3H]

    # --- description attention: 3 heads fused into one MXU matmul -----------
    # score_h[b, m] = des[b, m, :] . (W_h @ q_h[b]) ; r = q_cat @ blockdiag(W_h^T)
    r = jnp.dot(q_cat, wbd_ref[...], preferred_element_type=jnp.float32)
    bias = bias_ref[...]                                   # [3, M] (lane-major)

    def head(r_h, bias_h):                                 # [B, H], [1, M]
        s = jnp.sum(des * r_h[:, None, :], axis=-1)        # [B, M]
        z = jnp.maximum(s + bias_h, 0.0) * 2.0             # relu, then /0.5
        z = z - jnp.max(z, axis=-1, keepdims=True)
        p = jnp.exp(z)
        p = p / jnp.sum(p, axis=-1, keepdims=True)
        return jnp.sum(p[:, :, None] * des, axis=1)        # [B, H]

    d1 = head(r[:, 0:H], bias[0:1, :])
    d2 = head(r[:, H:2 * H], bias[1:2, :])
    dn = head(r[:, 2 * H:3 * H], bias[2:3, :])

    d_cat = jnp.concatenate([d1, d2, dn], axis=-1)         # [B, 3H]
    d_inv = lax.rsqrt(jnp.maximum(
        jnp.sum(d_cat * d_cat, axis=-1, keepdims=True), 1e-24))
    des_ent = d_cat * d_inv

    sen_vec = jnp.concatenate([sen_feat, sen_ent], axis=-1)   # [B, 4H] dense
    des_vec = jnp.concatenate([des_feat, des_ent], axis=-1)   # [B, 4H] dense
    sen_vec_ref[...] = sen_vec
    des_vec_ref[...] = des_vec

    # --- contrastive epilogue: hard-negative mining + InfoNCE loss ----------
    eps2 = jnp.float32(1e-16)          # (torch CosineSimilarity eps = 1e-8)^2

    def l2n(x):
        return x * lax.rsqrt(jnp.maximum(
            jnp.sum(x * x, axis=-1, keepdims=True), eps2))

    def cosmat(a, b):                  # [B, D] x [B, D] -> [B, B]
        return lax.dot_general(a, b, (((1,), (1,)), ((), ())),
                               preferred_element_type=jnp.float32)

    sv_n = l2n(sen_vec)
    dv_n = l2n(des_vec)
    feature_cos = cosmat(l2n(sen_feat), l2n(des_feat))      # [B, B]
    entity_cos = cosmat(l2n(sen_ent), l2n(sen_ent))         # [B, B]
    full_cos = cosmat(sv_n, dv_n)                           # [B, B]
    full_cos_ref[...] = full_cos

    colf = lax.broadcasted_iota(jnp.int32, (B, B), 1).astype(jnp.float32)

    def kth_largest_onehot(mat):
        # One-hot row selector of the kk-th largest column (ties -> lowest
        # index, matching lax.top_k). Iterative max-and-mask; kk is tiny.
        m = mat
        sel_f = None
        for _ in range(kk):
            row_max = jnp.max(m, axis=-1, keepdims=True)
            first = jnp.min(jnp.where(m >= row_max, colf, jnp.float32(B)),
                            axis=-1, keepdims=True)
            sel = colf == first
            sel_f = sel.astype(jnp.float32)
            m = jnp.where(sel, jnp.float32(-1e30), m)
        return sel_f                                         # [B, B]

    oh_f = kth_largest_onehot(feature_cos)
    oh_e = kth_largest_onehot(entity_cos)

    # Exact one-hot gathers on the VPU (row selection must be bit-exact).
    des_neg_feat = jnp.sum(oh_f[:, :, None] * des_feat[None, :, :], axis=1)
    ent_neg = jnp.sum(oh_e[:, :, None] * sen_ent[None, :, :], axis=1)

    # Row-wise cos(sen_vec, [des_neg_feat | ent_neg]) without concatenating.
    neg_ssq = (jnp.sum(des_neg_feat * des_neg_feat, axis=-1, keepdims=True)
               + jnp.sum(ent_neg * ent_neg, axis=-1, keepdims=True))
    neg_inv = lax.rsqrt(jnp.maximum(neg_ssq, eps2))
    extra = (jnp.sum(sv_n[:, 0:H] * des_neg_feat, axis=-1, keepdims=True)
             + jnp.sum(sv_n[:, H:] * ent_neg, axis=-1, keepdims=True)) * neg_inv
    extra_ref[...] = extra                                   # [B, 1]

    rowi = lax.broadcasted_iota(jnp.int32, (B, B), 0)
    coli = lax.broadcasted_iota(jnp.int32, (B, B), 1)
    eye = (rowi == coli).astype(jnp.float32)
    pos = jnp.sum(full_cos * eye, axis=-1, keepdims=True)    # [B, 1] diagonal

    # CrossEntropy(cos_sim / 0.02, 0) == mean(logsumexp(row) - pos / 0.02);
    # the logsumexp runs over {all full_cos row entries} U {extra} (order-free).
    inv_t = jnp.float32(50.0)
    mrow = jnp.maximum(jnp.max(full_cos, axis=-1, keepdims=True), extra) * inv_t
    sum_exp = (jnp.sum(jnp.exp(full_cos * inv_t - mrow), axis=-1, keepdims=True)
               + jnp.exp(extra * inv_t - mrow))
    lse = mrow + jnp.log(sum_exp)
    per_row = lse - pos * inv_t                               # [B, 1]
    loss_ref[...] = (jnp.sum(per_row, axis=0, keepdims=True)
                     * jnp.float32(1.0 / B))


# ----------------------------------------------------------------------------
# EMMA forward (training branch, given encoder hidden states).
# ----------------------------------------------------------------------------
def emma_forward_train(sen_output, des_output, marked_e1, marked_e2, params,
                       k=3, neg_counts=1):
    bs, ml, hs = sen_output.shape
    # one-hot marker masks -> int32 positions (first marked position)
    pos1 = jnp.argmax(marked_e1, axis=1).astype(jnp.int32).reshape(bs, 1)
    pos2 = jnp.argmax(marked_e2, axis=1).astype(jnp.int32).reshape(bs, 1)

    # blockdiag(W1^T, W2^T, Wn^T): fuses the three attention transforms into
    # one [B,3H] x [3H,3H] MXU matmul inside the kernel.
    w_bd = jnp.zeros((3 * hs, 3 * hs), jnp.float32)
    w_bd = w_bd.at[0:hs, 0:hs].set(params["des_e1"].T)
    w_bd = w_bd.at[hs:2 * hs, hs:2 * hs].set(params["des_e2"].T)
    w_bd = w_bd.at[2 * hs:, 2 * hs:].set(params["des_en"].T)
    # lane-major biases [3, M]
    bias_all = jnp.concatenate([params["des_bias1"].T, params["des_bias2"].T,
                                params["des_bias3"].T], axis=0)

    kernel = functools.partial(_emma_fused_kernel, kk=k + neg_counts)
    sen_vec, des_vec, loss2d, full_cos, extra = pl.pallas_call(
        kernel,
        out_shape=(
            jax.ShapeDtypeStruct((bs, 4 * hs), jnp.float32),  # [feat|e1|e2|bt]
            jax.ShapeDtypeStruct((bs, 4 * hs), jnp.float32),  # [feat|d1|d2|dn]
            jax.ShapeDtypeStruct((1, 1), jnp.float32),        # contrastive loss
            jax.ShapeDtypeStruct((bs, bs), jnp.float32),      # cos(sen_vec,des_vec)
            jax.ShapeDtypeStruct((bs, 1), jnp.float32),       # extra hard negative
        ),
    )(sen_output, des_output, pos1, pos2, w_bd, bias_all)

    # Reassemble cos_sim in the original torch ordering [pos | off-diag | neg];
    # tiny [bs, bs+1] indexing fused by XLA, not a separate kernel launch.
    pos = jnp.diagonal(full_cos)[:, None]
    off_idx = jnp.asarray([[j for j in range(bs) if j != i] for i in range(bs)],
                          dtype=jnp.int32)
    off_diag = jnp.take_along_axis(full_cos, off_idx, axis=1)
    cos_sim = jnp.concatenate([pos, off_diag, extra], axis=-1)

    # TODO(synk): pretrained BERT encoder, tokenizer re-encoding and the
    # Classify_model branch (string ops + Python randomness + second BERT
    # forward) have no Pallas equivalent; only the contrastive loss is computed.
    return loss2d[0, 0], sen_vec, des_vec, cos_sim


# ----------------------------------------------------------------------------
# Pure-JAX reference for verification.
# ----------------------------------------------------------------------------
def reference_forward(sen_output, des_output, marked_e1, marked_e2, params,
                      k=3, neg_counts=1):
    bs, ml, hs = sen_output.shape
    m1 = marked_e1.astype(jnp.float32)
    m2 = marked_e2.astype(jnp.float32)
    e1 = jnp.max(m1[..., None] * sen_output, axis=1)
    e2 = jnp.max(m2[..., None] * sen_output, axis=1)
    i1 = jnp.argmax(m1, axis=1)
    i2 = jnp.argmax(m2, axis=1)
    lo, hi = jnp.minimum(i1, i2), jnp.maximum(i1, i2)
    pos = jnp.arange(ml)[None, :]
    span = ((pos >= lo[:, None]) & (pos <= hi[:, None])).astype(jnp.float32)
    between = jnp.mean(span[..., None] * sen_output, axis=1)
    sen_ent = jnp.concatenate([e1, e2, between], axis=1)
    sen_ent = sen_ent / jnp.maximum(
        jnp.linalg.norm(sen_ent, axis=1, keepdims=True), 1e-12)

    def attend(W, bias, q):
        s = jnp.einsum("bmi,ij,bj->bm", des_output, W, q) + bias[None, :, 0]
        p = jax.nn.softmax(jnp.maximum(s, 0.0) / 0.5, axis=1)
        return jnp.einsum("bm,bmh->bh", p, des_output)

    d1 = attend(params["des_e1"], params["des_bias1"], e1)
    d2 = attend(params["des_e2"], params["des_bias2"], e2)
    dn = attend(params["des_en"], params["des_bias3"], between)
    des_ent = jnp.concatenate([d1, d2, dn], axis=1)
    des_ent = des_ent / jnp.maximum(
        jnp.linalg.norm(des_ent, axis=1, keepdims=True), 1e-12)
    sen_feat = jnp.mean(sen_output, axis=1)
    des_feat = jnp.mean(des_output, axis=1)
    sen_vec = jnp.concatenate([sen_feat, sen_ent], axis=1)
    des_vec = jnp.concatenate([des_feat, des_ent], axis=1)

    def cos(a, b):
        an = jnp.maximum(jnp.linalg.norm(a, axis=-1, keepdims=True), 1e-8)
        bn = jnp.maximum(jnp.linalg.norm(b, axis=-1, keepdims=True), 1e-8)
        return (a / an) @ (b / bn).T

    sec_idx = lax.top_k(cos(sen_feat, des_feat), k + neg_counts)[1][:, -1]
    e_sec_idx = lax.top_k(cos(sen_ent, sen_ent), k + neg_counts)[1][:, -1]
    des_neg = jnp.concatenate([des_feat[sec_idx], sen_ent[e_sec_idx]], axis=-1)
    full = cos(sen_vec, des_vec)
    posd = jnp.diagonal(full)[:, None]
    extra = jnp.diagonal(cos(sen_vec, des_neg))[:, None]
    off_idx = jnp.asarray([[j for j in range(bs) if j != i] for i in range(bs)])
    off = jnp.take_along_axis(full, off_idx, axis=1)
    logits = jnp.concatenate([posd, off, extra], axis=-1) / 0.02
    return jnp.mean(jax.nn.logsumexp(logits, axis=-1) - logits[:, 0])


if __name__ == "__main__":
    bs, ml, hs, k, neg_counts = 8, 16, 32, 3, 1
    key = jax.random.PRNGKey(0)
    ks = jax.random.split(key, 10)

    # Synthetic BERT last_hidden_state outputs (the encoder itself is not a
    # Pallas-translatable component).
    sen_output = jax.random.normal(ks[0], (bs, ml, hs), dtype=jnp.float32)
    des_output = jax.random.normal(ks[1], (bs, ml, hs), dtype=jnp.float32)

    # One-hot entity marker masks.
    e1_pos = jax.random.randint(ks[2], (bs,), 0, ml)
    e2_pos = jax.random.randint(ks[3], (bs,), 0, ml)
    marked_e1 = jax.nn.one_hot(e1_pos, ml, dtype=jnp.float32)
    marked_e2 = jax.nn.one_hot(e2_pos, ml, dtype=jnp.float32)

    # Deterministic parameter init (shapes per EMMA.__init__; torch uses
    # ones/zeros — here scaled random values for a non-degenerate test).
    params = {
        "des_e1": 0.1 * jax.random.normal(ks[4], (hs, hs), dtype=jnp.float32),
        "des_e2": 0.1 * jax.random.normal(ks[5], (hs, hs), dtype=jnp.float32),
        "des_en": 0.1 * jax.random.normal(ks[6], (hs, hs), dtype=jnp.float32),
        "des_bias1": 0.01 * jax.random.normal(ks[7], (ml, 1), dtype=jnp.float32),
        "des_bias2": 0.01 * jax.random.normal(ks[8], (ml, 1), dtype=jnp.float32),
        "des_bias3": 0.01 * jax.random.normal(ks[9], (ml, 1), dtype=jnp.float32),
    }

    loss, sen_vec, des_vec, cos_sim = emma_forward_train(
        sen_output, des_output, marked_e1, marked_e2, params,
        k=k, neg_counts=neg_counts)
    jax.block_until_ready((loss, sen_vec, des_vec, cos_sim))

    ref_loss = reference_forward(sen_output, des_output, marked_e1, marked_e2,
                                 params, k=k, neg_counts=neg_counts)
    jax.block_until_ready(ref_loss)
    assert jnp.allclose(loss, ref_loss, rtol=1e-3, atol=1e-3), (loss, ref_loss)
    assert bool(jnp.isfinite(loss))

    print("KERNEL_OK")
</pallas_src>

<mosaic_0001>
module attributes {stable_mosaic.version = 11 : i64} {
  func.func @_emma_fused_kernel(%arg0: memref<8x16x32xf32, #tpu.memory_space<vmem>>, %arg1: memref<8x16x32xf32, #tpu.memory_space<vmem>>, %arg2: memref<8x1xi32, #tpu.memory_space<vmem>>, %arg3: memref<8x1xi32, #tpu.memory_space<vmem>>, %arg4: memref<96x96xf32, #tpu.memory_space<vmem>>, %arg5: memref<3x16xf32, #tpu.memory_space<vmem>>, %arg6: memref<8x128xf32, #tpu.memory_space<vmem>>, %arg7: memref<8x128xf32, #tpu.memory_space<vmem>>, %arg8: memref<1x1xf32, #tpu.memory_space<vmem>>, %arg9: memref<8x8xf32, #tpu.memory_space<vmem>>, %arg10: memref<8x1xf32, #tpu.memory_space<vmem>>) attributes {dimension_semantics = [], scalar_prefetch = 0 : i64, scratch_operands = 0 : i64, tpu.core_type = #tpu.core_type<tc>} {
    %c0 = arith.constant 0 : index
    %c0_0 = arith.constant 0 : index
    %c0_1 = arith.constant 0 : index
    %0 = vector.load %arg0[%c0, %c0_0, %c0_1] : memref<8x16x32xf32, #tpu.memory_space<vmem>>, vector<8x16x32xf32>
    %c0_2 = arith.constant 0 : index
    %c0_3 = arith.constant 0 : index
    %c0_4 = arith.constant 0 : index
    %1 = vector.load %arg1[%c0_2, %c0_3, %c0_4] : memref<8x16x32xf32, #tpu.memory_space<vmem>>, vector<8x16x32xf32>
    %c0_5 = arith.constant 0 : index
    %c0_6 = arith.constant 0 : index
    %2 = vector.load %arg2[%c0_5, %c0_6] : memref<8x1xi32, #tpu.memory_space<vmem>>, vector<8x1xi32>
    %c0_7 = arith.constant 0 : index
    %c0_8 = arith.constant 0 : index
    %3 = vector.load %arg3[%c0_7, %c0_8] : memref<8x1xi32, #tpu.memory_space<vmem>>, vector<8x1xi32>
    %4 = tpu.iota {dimensions = array<i32: 1>} : vector<8x16xi32>
    %5 = vector.broadcast %2 : vector<8x1xi32> to vector<8x16xi32>
    %6 = arith.cmpi eq, %4, %5 : vector<8x16xi32>
    %7 = arith.extui %6 : vector<8x16xi1> to vector<8x16xi32>
    %8 = arith.sitofp %7 : vector<8x16xi32> to vector<8x16xf32>
    %9 = vector.broadcast %3 : vector<8x1xi32> to vector<8x16xi32>
    %10 = arith.cmpi eq, %4, %9 : vector<8x16xi32>
    %11 = arith.extui %10 : vector<8x16xi1> to vector<8x16xi32>
    %12 = arith.sitofp %11 : vector<8x16xi32> to vector<8x16xf32>
    %13 = arith.minsi %2, %3 : vector<8x1xi32>
    %14 = arith.maxsi %2, %3 : vector<8x1xi32>
    %15 = vector.broadcast %13 : vector<8x1xi32> to vector<8x16xi32>
    %16 = arith.cmpi sge, %4, %15 : vector<8x16xi32>
    %17 = vector.broadcast %14 : vector<8x1xi32> to vector<8x16xi32>
    %18 = arith.cmpi sle, %4, %17 : vector<8x16xi32>
    %19 = arith.andi %16, %18 : vector<8x16xi1>
    %20 = arith.extui %19 : vector<8x16xi1> to vector<8x16xi32>
    %21 = arith.sitofp %20 : vector<8x16xi32> to vector<8x16xf32>
    %22 = vector.shape_cast %8 : vector<8x16xf32> to vector<8x16x1xf32>
    %23 = vector.broadcast %22 : vector<8x16x1xf32> to vector<8x16x32xf32>
    %24 = arith.mulf %23, %0 : vector<8x16x32xf32>
    %cst = arith.constant dense<0xFF800000> : vector<8x32xf32>
    %25 = vector.multi_reduction <maximumf>, %24, %cst [1] : vector<8x16x32xf32> to vector<8x32xf32>
    %26 = vector.shape_cast %12 : vector<8x16xf32> to vector<8x16x1xf32>
    %27 = vector.broadcast %26 : vector<8x16x1xf32> to vector<8x16x32xf32>
    %28 = arith.mulf %27, %0 : vector<8x16x32xf32>
    %cst_9 = arith.constant dense<0xFF800000> : vector<8x32xf32>
    %29 = vector.multi_reduction <maximumf>, %28, %cst_9 [1] : vector<8x16x32xf32> to vector<8x32xf32>
    %30 = vector.shape_cast %21 : vector<8x16xf32> to vector<8x16x1xf32>
    %31 = vector.broadcast %30 : vector<8x16x1xf32> to vector<8x16x32xf32>
    %32 = arith.mulf %31, %0 : vector<8x16x32xf32>
    %cst_10 = arith.constant dense<0.000000e+00> : vector<8x32xf32>
    %33 = vector.multi_reduction <add>, %32, %cst_10 [1] : vector<8x16x32xf32> to vector<8x32xf32>
    %cst_11 = arith.constant 6.250000e-02 : f32
    %34 = vector.broadcast %cst_11 : f32 to vector<8x32xf32>
    %35 = arith.mulf %33, %34 : vector<8x32xf32>
    %cst_12 = arith.constant dense<0.000000e+00> : vector<8x32xf32>
    %36 = vector.multi_reduction <add>, %0, %cst_12 [1] : vector<8x16x32xf32> to vector<8x32xf32>
    %cst_13 = arith.constant 6.250000e-02 : f32
    %37 = vector.broadcast %cst_13 : f32 to vector<8x32xf32>
    %38 = arith.mulf %36, %37 : vector<8x32xf32>
    %cst_14 = arith.constant dense<0.000000e+00> : vector<8x32xf32>
    %39 = vector.multi_reduction <add>, %1, %cst_14 [1] : vector<8x16x32xf32> to vector<8x32xf32>
    %cst_15 = arith.constant 6.250000e-02 : f32
    %40 = vector.broadcast %cst_15 : f32 to vector<8x32xf32>
    %41 = arith.mulf %39, %40 : vector<8x32xf32>
    %42 = tpu.concatenate %25, %29, %35 in 1 : vector<8x32xf32>, vector<8x32xf32>, vector<8x32xf32> -> vector<8x96xf32>
    %43 = arith.mulf %42, %42 : vector<8x96xf32>
    %cst_16 = arith.constant dense<0.000000e+00> : vector<8xf32>
    %44 = vector.multi_reduction <add>, %43, %cst_16 [1] : vector<8x96xf32> to vector<8xf32>
    %45 = vector.shape_cast %44 : vector<8xf32> to vector<8x1xf32>
    %cst_17 = arith.constant 1.000000e-24 : f32
    %46 = vector.broadcast %cst_17 : f32 to vector<8x1xf32>
    %47 = arith.maximumf %45, %46 : vector<8x1xf32>
    %48 = math.rsqrt %47 : vector<8x1xf32>
    %49 = vector.broadcast %48 : vector<8x1xf32> to vector<8x96xf32>
    %50 = arith.mulf %42, %49 : vector<8x96xf32>
    %c0_18 = arith.constant 0 : index
    %c0_19 = arith.constant 0 : index
    %51 = vector.load %arg4[%c0_18, %c0_19] : memref<96x96xf32, #tpu.memory_space<vmem>>, vector<96x96xf32>
    %cst_20 = arith.constant dense<0.000000e+00> : vector<8x96xf32>
    %52 = tpu.matmul %42, %51, %cst_20 {dimension_numbers = #tpu.dot_dimension_numbers<[1], [0], [0], [1], [0, 0, 1, 1], [], []>} : vector<8x96xf32>, vector<96x96xf32>, vector<8x96xf32> -> vector<8x96xf32>
    %c0_21 = arith.constant 0 : index
    %c0_22 = arith.constant 0 : index
    %53 = vector.load %arg5[%c0_21, %c0_22] : memref<3x16xf32, #tpu.memory_space<vmem>>, vector<3x16xf32>
    %54 = vector.extract_strided_slice %52 {offsets = [0, 0], sizes = [8, 32], strides = [1, 1]} : vector<8x96xf32> to vector<8x32xf32>
    %55 = vector.extract_strided_slice %53 {offsets = [0, 0], sizes = [1, 16], strides = [1, 1]} : vector<3x16xf32> to vector<1x16xf32>
    %56 = vector.shape_cast %54 : vector<8x32xf32> to vector<8x1x32xf32>
    %57 = vector.broadcast %56 : vector<8x1x32xf32> to vector<8x16x32xf32>
    %58 = arith.mulf %1, %57 : vector<8x16x32xf32>
    %cst_23 = arith.constant dense<0.000000e+00> : vector<8x16xf32>
    %59 = vector.multi_reduction <add>, %58, %cst_23 [2] : vector<8x16x32xf32> to vector<8x16xf32>
    %60 = vector.broadcast %55 : vector<1x16xf32> to vector<8x16xf32>
    %61 = arith.addf %59, %60 : vector<8x16xf32>
    %cst_24 = arith.constant 0.000000e+00 : f32
    %62 = vector.broadcast %cst_24 : f32 to vector<8x16xf32>
    %63 = arith.maximumf %61, %62 : vector<8x16xf32>
    %cst_25 = arith.constant 2.000000e+00 : f32
    %64 = vector.broadcast %cst_25 : f32 to vector<8x16xf32>
    %65 = arith.mulf %63, %64 : vector<8x16xf32>
    %cst_26 = arith.constant dense<0xFF800000> : vector<8xf32>
    %66 = vector.multi_reduction <maximumf>, %65, %cst_26 [1] : vector<8x16xf32> to vector<8xf32>
    %67 = vector.shape_cast %66 : vector<8xf32> to vector<8x1xf32>
    %68 = vector.broadcast %67 : vector<8x1xf32> to vector<8x16xf32>
    %69 = arith.subf %65, %68 : vector<8x16xf32>
    %70 = math.exp %69 : vector<8x16xf32>
    %cst_27 = arith.constant dense<0.000000e+00> : vector<8xf32>
    %71 = vector.multi_reduction <add>, %70, %cst_27 [1] : vector<8x16xf32> to vector<8xf32>
    %72 = vector.shape_cast %71 : vector<8xf32> to vector<8x1xf32>
    %73 = vector.broadcast %72 : vector<8x1xf32> to vector<8x16xf32>
    %74 = arith.divf %70, %73 : vector<8x16xf32>
    %75 = vector.shape_cast %74 : vector<8x16xf32> to vector<8x16x1xf32>
    %76 = vector.broadcast %75 : vector<8x16x1xf32> to vector<8x16x32xf32>
    %77 = arith.mulf %76, %1 : vector<8x16x32xf32>
    %cst_28 = arith.constant dense<0.000000e+00> : vector<8x32xf32>
    %78 = vector.multi_reduction <add>, %77, %cst_28 [1] : vector<8x16x32xf32> to vector<8x32xf32>
    %79 = vector.extract_strided_slice %52 {offsets = [0, 32], sizes = [8, 32], strides = [1, 1]} : vector<8x96xf32> to vector<8x32xf32>
    %80 = vector.extract_strided_slice %53 {offsets = [1, 0], sizes = [1, 16], strides = [1, 1]} : vector<3x16xf32> to vector<1x16xf32>
    %81 = vector.shape_cast %79 : vector<8x32xf32> to vector<8x1x32xf32>
    %82 = vector.broadcast %81 : vector<8x1x32xf32> to vector<8x16x32xf32>
    %83 = arith.mulf %1, %82 : vector<8x16x32xf32>
    %cst_29 = arith.constant dense<0.000000e+00> : vector<8x16xf32>
    %84 = vector.multi_reduction <add>, %83, %cst_29 [2] : vector<8x16x32xf32> to vector<8x16xf32>
    %85 = vector.broadcast %80 : vector<1x16xf32> to vector<8x16xf32>
    %86 = arith.addf %84, %85 : vector<8x16xf32>
    %cst_30 = arith.constant 0.000000e+00 : f32
    %87 = vector.broadcast %cst_30 : f32 to vector<8x16xf32>
    %88 = arith.maximumf %86, %87 : vector<8x16xf32>
    %cst_31 = arith.constant 2.000000e+00 : f32
    %89 = vector.broadcast %cst_31 : f32 to vector<8x16xf32>
    %90 = arith.mulf %88, %89 : vector<8x16xf32>
    %cst_32 = arith.constant dense<0xFF800000> : vector<8xf32>
    %91 = vector.multi_reduction <maximumf>, %90, %cst_32 [1] : vector<8x16xf32> to vector<8xf32>
    %92 = vector.shape_cast %91 : vector<8xf32> to vector<8x1xf32>
    %93 = vector.broadcast %92 : vector<8x1xf32> to vector<8x16xf32>
    %94 = arith.subf %90, %93 : vector<8x16xf32>
    %95 = math.exp %94 : vector<8x16xf32>
    %cst_33 = arith.constant dense<0.000000e+00> : vector<8xf32>
    %96 = vector.multi_reduction <add>, %95, %cst_33 [1] : vector<8x16xf32> to vector<8xf32>
    %97 = vector.shape_cast %96 : vector<8xf32> to vector<8x1xf32>
    %98 = vector.broadcast %97 : vector<8x1xf32> to vector<8x16xf32>
    %99 = arith.divf %95, %98 : vector<8x16xf32>
    %100 = vector.shape_cast %99 : vector<8x16xf32> to vector<8x16x1xf32>
    %101 = vector.broadcast %100 : vector<8x16x1xf32> to vector<8x16x32xf32>
    %102 = arith.mulf %101, %1 : vector<8x16x32xf32>
    %cst_34 = arith.constant dense<0.000000e+00> : vector<8x32xf32>
    %103 = vector.multi_reduction <add>, %102, %cst_34 [1] : vector<8x16x32xf32> to vector<8x32xf32>
    %104 = vector.extract_strided_slice %52 {offsets = [0, 64], sizes = [8, 32], strides = [1, 1]} : vector<8x96xf32> to vector<8x32xf32>
    %105 = vector.extract_strided_slice %53 {offsets = [2, 0], sizes = [1, 16], strides = [1, 1]} : vector<3x16xf32> to vector<1x16xf32>
    %106 = vector.shape_cast %104 : vector<8x32xf32> to vector<8x1x32xf32>
    %107 = vector.broadcast %106 : vector<8x1x32xf32> to vector<8x16x32xf32>
    %108 = arith.mulf %1, %107 : vector<8x16x32xf32>
    %cst_35 = arith.constant dense<0.000000e+00> : vector<8x16xf32>
    %109 = vector.multi_reduction <add>, %108, %cst_35 [2] : vector<8x16x32xf32> to vector<8x16xf32>
    %110 = vector.broadcast %105 : vector<1x16xf32> to vector<8x16xf32>
    %111 = arith.addf %109, %110 : vector<8x16xf32>
    %cst_36 = arith.constant 0.000000e+00 : f32
    %112 = vector.broadcast %cst_36 : f32 to vector<8x16xf32>
    %113 = arith.maximumf %111, %112 : vector<8x16xf32>
    %cst_37 = arith.constant 2.000000e+00 : f32
    %114 = vector.broadcast %cst_37 : f32 to vector<8x16xf32>
    %115 = arith.mulf %113, %114 : vector<8x16xf32>
    %cst_38 = arith.constant dense<0xFF800000> : vector<8xf32>
    %116 = vector.multi_reduction <maximumf>, %115, %cst_38 [1] : vector<8x16xf32> to vector<8xf32>
    %117 = vector.shape_cast %116 : vector<8xf32> to vector<8x1xf32>
    %118 = vector.broadcast %117 : vector<8x1xf32> to vector<8x16xf32>
    %119 = arith.subf %115, %118 : vector<8x16xf32>
    %120 = math.exp %119 : vector<8x16xf32>
    %cst_39 = arith.constant dense<0.000000e+00> : vector<8xf32>
    %121 = vector.multi_reduction <add>, %120, %cst_39 [1] : vector<8x16xf32> to vector<8xf32>
    %122 = vector.shape_cast %121 : vector<8xf32> to vector<8x1xf32>
    %123 = vector.broadcast %122 : vector<8x1xf32> to vector<8x16xf32>
    %124 = arith.divf %120, %123 : vector<8x16xf32>
    %125 = vector.shape_cast %124 : vector<8x16xf32> to vector<8x16x1xf32>
    %126 = vector.broadcast %125 : vector<8x16x1xf32> to vector<8x16x32xf32>
    %127 = arith.mulf %126, %1 : vector<8x16x32xf32>
    %cst_40 = arith.constant dense<0.000000e+00> : vector<8x32xf32>
    %128 = vector.multi_reduction <add>, %127, %cst_40 [1] : vector<8x16x32xf32> to vector<8x32xf32>
    %129 = tpu.concatenate %78, %103, %128 in 1 : vector<8x32xf32>, vector<8x32xf32>, vector<8x32xf32> -> vector<8x96xf32>
    %130 = arith.mulf %129, %129 : vector<8x96xf32>
    %cst_41 = arith.constant dense<0.000000e+00> : vector<8xf32>
    %131 = vector.multi_reduction <add>, %130, %cst_41 [1] : vector<8x96xf32> to vector<8xf32>
    %132 = vector.shape_cast %131 : vector<8xf32> to vector<8x1xf32>
    %cst_42 = arith.constant 1.000000e-24 : f32
    %133 = vector.broadcast %cst_42 : f32 to vector<8x1xf32>
    %134 = arith.maximumf %132, %133 : vector<8x1xf32>
    %135 = math.rsqrt %134 : vector<8x1xf32>
    %136 = vector.broadcast %135 : vector<8x1xf32> to vector<8x96xf32>
    %137 = arith.mulf %129, %136 : vector<8x96xf32>
    %138 = tpu.concatenate %38, %50 in 1 : vector<8x32xf32>, vector<8x96xf32> -> vector<8x128xf32>
    %139 = tpu.concatenate %41, %137 in 1 : vector<8x32xf32>, vector<8x96xf32> -> vector<8x128xf32>
    %c0_43 = arith.constant 0 : index
    %c0_44 = arith.constant 0 : index
    %140 = vector.load %arg6[%c0_43, %c0_44] : memref<8x128xf32, #tpu.memory_space<vmem>>, vector<8x128xf32>
    tpu.vector_store %arg6[%c0_43, %c0_44], %138 {strides = array<i32>} : memref<8x128xf32, #tpu.memory_space<vmem>>, vector<8x128xf32>,
    %c0_45 = arith.constant 0 : index
    %c0_46 = arith.constant 0 : index
    %141 = vector.load %arg7[%c0_45, %c0_46] : memref<8x128xf32, #tpu.memory_space<vmem>>, vector<8x128xf32>
    tpu.vector_store %arg7[%c0_45, %c0_46], %139 {strides = array<i32>} : memref<8x128xf32, #tpu.memory_space<vmem>>, vector<8x128xf32>,
    %142 = arith.mulf %138, %138 : vector<8x128xf32>
    %cst_47 = arith.constant dense<0.000000e+00> : vector<8xf32>
    %143 = vector.multi_reduction <add>, %142, %cst_47 [1] : vector<8x128xf32> to vector<8xf32>
    %144 = vector.shape_cast %143 : vector<8xf32> to vector<8x1xf32>
    %cst_48 = arith.constant 1.000000e-16 : f32
    %145 = vector.broadcast %cst_48 : f32 to vector<8x1xf32>
    %146 = arith.maximumf %144, %145 : vector<8x1xf32>
    %147 = math.rsqrt %146 : vector<8x1xf32>
    %148 = vector.broadcast %147 : vector<8x1xf32> to vector<8x128xf32>
    %149 = arith.mulf %138, %148 : vector<8x128xf32>
    %150 = arith.mulf %139, %139 : vector<8x128xf32>
    %cst_49 = arith.constant dense<0.000000e+00> : vector<8xf32>
    %151 = vector.multi_reduction <add>, %150, %cst_49 [1] : vector<8x128xf32> to vector<8xf32>
    %152 = vector.shape_cast %151 : vector<8xf32> to vector<8x1xf32>
    %cst_50 = arith.constant 1.000000e-16 : f32
    %153 = vector.broadcast %cst_50 : f32 to vector<8x1xf32>
    %154 = arith.maximumf %152, %153 : vector<8x1xf32>
    %155 = math.rsqrt %154 : vector<8x1xf32>
    %156 = vector.broadcast %155 : vector<8x1xf32> to vector<8x128xf32>
    %157 = arith.mulf %139, %156 : vector<8x128xf32>
    %158 = arith.mulf %38, %38 : vector<8x32xf32>
    %cst_51 = arith.constant dense<0.000000e+00> : vector<8xf32>
    %159 = vector.multi_reduction <add>, %158, %cst_51 [1] : vector<8x32xf32> to vector<8xf32>
    %160 = vector.shape_cast %159 : vector<8xf32> to vector<8x1xf32>
    %cst_52 = arith.constant 1.000000e-16 : f32
    %161 = vector.broadcast %cst_52 : f32 to vector<8x1xf32>
    %162 = arith.maximumf %160, %161 : vector<8x1xf32>
    %163 = math.rsqrt %162 : vector<8x1xf32>
    %164 = vector.broadcast %163 : vector<8x1xf32> to vector<8x32xf32>
    %165 = arith.mulf %38, %164 : vector<8x32xf32>
    %166 = arith.mulf %41, %41 : vector<8x32xf32>
    %cst_53 = arith.constant dense<0.000000e+00> : vector<8xf32>
    %167 = vector.multi_reduction <add>, %166, %cst_53 [1] : vector<8x32xf32> to vector<8xf32>
    %168 = vector.shape_cast %167 : vector<8xf32> to vector<8x1xf32>
    %cst_54 = arith.constant 1.000000e-16 : f32
    %169 = vector.broadcast %cst_54 : f32 to vector<8x1xf32>
    %170 = arith.maximumf %168, %169 : vector<8x1xf32>
    %171 = math.rsqrt %170 : vector<8x1xf32>
    %172 = vector.broadcast %171 : vector<8x1xf32> to vector<8x32xf32>
    %173 = arith.mulf %41, %172 : vector<8x32xf32>
    %cst_55 = arith.constant dense<0.000000e+00> : vector<8x8xf32>
    %174 = tpu.matmul %165, %173, %cst_55 {dimension_numbers = #tpu.dot_dimension_numbers<[1], [1], [0], [0], [0, 0, 1, 0], [], []>} : vector<8x32xf32>, vector<8x32xf32>, vector<8x8xf32> -> vector<8x8xf32>
    %175 = arith.mulf %50, %50 : vector<8x96xf32>
    %cst_56 = arith.constant dense<0.000000e+00> : vector<8xf32>
    %176 = vector.multi_reduction <add>, %175, %cst_56 [1] : vector<8x96xf32> to vector<8xf32>
    %177 = vector.shape_cast %176 : vector<8xf32> to vector<8x1xf32>
    %cst_57 = arith.constant 1.000000e-16 : f32
    %178 = vector.broadcast %cst_57 : f32 to vector<8x1xf32>
    %179 = arith.maximumf %177, %178 : vector<8x1xf32>
    %180 = math.rsqrt %179 : vector<8x1xf32>
    %181 = vector.broadcast %180 : vector<8x1xf32> to vector<8x96xf32>
    %182 = arith.mulf %50, %181 : vector<8x96xf32>
    %183 = arith.mulf %50, %50 : vector<8x96xf32>
    %cst_58 = arith.constant dense<0.000000e+00> : vector<8xf32>
    %184 = vector.multi_reduction <add>, %183, %cst_58 [1] : vector<8x96xf32> to vector<8xf32>
    %185 = vector.shape_cast %184 : vector<8xf32> to vector<8x1xf32>
    %cst_59 = arith.constant 1.000000e-16 : f32
    %186 = vector.broadcast %cst_59 : f32 to vector<8x1xf32>
    %187 = arith.maximumf %185, %186 : vector<8x1xf32>
    %188 = math.rsqrt %187 : vector<8x1xf32>
    %189 = vector.broadcast %188 : vector<8x1xf32> to vector<8x96xf32>
    %190 = arith.mulf %50, %189 : vector<8x96xf32>
    %cst_60 = arith.constant dense<0.000000e+00> : vector<8x8xf32>
    %191 = tpu.matmul %182, %190, %cst_60 {dimension_numbers = #tpu.dot_dimension_numbers<[1], [1], [0], [0], [0, 0, 1, 0], [], []>} : vector<8x96xf32>, vector<8x96xf32>, vector<8x8xf32> -> vector<8x8xf32>
    %cst_61 = arith.constant dense<0.000000e+00> : vector<8x8xf32>
    %192 = tpu.matmul %149, %157, %cst_61 {dimension_numbers = #tpu.dot_dimension_numbers<[1], [1], [0], [0], [0, 0, 1, 0], [], []>} : vector<8x128xf32>, vector<8x128xf32>, vector<8x8xf32> -> vector<8x8xf32>
    %c0_62 = arith.constant 0 : index
    %c0_63 = arith.constant 0 : index
    %193 = vector.load %arg9[%c0_62, %c0_63] : memref<8x8xf32, #tpu.memory_space<vmem>>, vector<8x8xf32>
    tpu.vector_store %arg9[%c0_62, %c0_63], %192 {strides = array<i32>} : memref<8x8xf32, #tpu.memory_space<vmem>>, vector<8x8xf32>,
    %194 = tpu.iota {dimensions = array<i32: 1>} : vector<8x8xi32>
    %195 = arith.sitofp %194 : vector<8x8xi32> to vector<8x8xf32>
    %cst_64 = arith.constant dense<0xFF800000> : vector<8xf32>
    %196 = vector.multi_reduction <maximumf>, %174, %cst_64 [1] : vector<8x8xf32> to vector<8xf32>
    %197 = vector.shape_cast %196 : vector<8xf32> to vector<8x1xf32>
    %198 = vector.broadcast %197 : vector<8x1xf32> to vector<8x8xf32>
    %199 = arith.cmpf oge, %174, %198 : vector<8x8xf32>
    %cst_65 = arith.constant 8.000000e+00 : f32
    %200 = vector.broadcast %cst_65 : f32 to vector<8x8xf32>
    %201 = arith.select %199, %195, %200 : vector<8x8xi1>, vector<8x8xf32>
    %cst_66 = arith.constant dense<0x7F800000> : vector<8xf32>
    %202 = vector.multi_reduction <minimumf>, %201, %cst_66 [1] : vector<8x8xf32> to vector<8xf32>
    %203 = vector.shape_cast %202 : vector<8xf32> to vector<8x1xf32>
    %204 = vector.broadcast %203 : vector<8x1xf32> to vector<8x8xf32>
    %205 = arith.cmpf oeq, %195, %204 : vector<8x8xf32>
    %cst_67 = arith.constant -1.000000e+30 : f32
    %206 = vector.broadcast %cst_67 : f32 to vector<8x8xf32>
    %207 = arith.select %205, %206, %174 : vector<8x8xi1>, vector<8x8xf32>
    %cst_68 = arith.constant dense<0xFF800000> : vector<8xf32>
    %208 = vector.multi_reduction <maximumf>, %207, %cst_68 [1] : vector<8x8xf32> to vector<8xf32>
    %209 = vector.shape_cast %208 : vector<8xf32> to vector<8x1xf32>
    %210 = vector.broadcast %209 : vector<8x1xf32> to vector<8x8xf32>
    %211 = arith.cmpf oge, %207, %210 : vector<8x8xf32>
    %cst_69 = arith.constant 8.000000e+00 : f32
    %212 = vector.broadcast %cst_69 : f32 to vector<8x8xf32>
    %213 = arith.select %211, %195, %212 : vector<8x8xi1>, vector<8x8xf32>
    %cst_70 = arith.constant dense<0x7F800000> : vector<8xf32>
    %214 = vector.multi_reduction <minimumf>, %213, %cst_70 [1] : vector<8x8xf32> to vector<8xf32>
    %215 = vector.shape_cast %214 : vector<8xf32> to vector<8x1xf32>
    %216 = vector.broadcast %215 : vector<8x1xf32> to vector<8x8xf32>
    %217 = arith.cmpf oeq, %195, %216 : vector<8x8xf32>
    %cst_71 = arith.constant -1.000000e+30 : f32
    %218 = vector.broadcast %cst_71 : f32 to vector<8x8xf32>
    %219 = arith.select %217, %218, %207 : vector<8x8xi1>, vector<8x8xf32>
    %cst_72 = arith.constant dense<0xFF800000> : vector<8xf32>
    %220 = vector.multi_reduction <maximumf>, %219, %cst_72 [1] : vector<8x8xf32> to vector<8xf32>
    %221 = vector.shape_cast %220 : vector<8xf32> to vector<8x1xf32>
    %222 = vector.broadcast %221 : vector<8x1xf32> to vector<8x8xf32>
    %223 = arith.cmpf oge, %219, %222 : vector<8x8xf32>
    %cst_73 = arith.constant 8.000000e+00 : f32
    %224 = vector.broadcast %cst_73 : f32 to vector<8x8xf32>
    %225 = arith.select %223, %195, %224 : vector<8x8xi1>, vector<8x8xf32>
    %cst_74 = arith.constant dense<0x7F800000> : vector<8xf32>
    %226 = vector.multi_reduction <minimumf>, %225, %cst_74 [1] : vector<8x8xf32> to vector<8xf32>
    %227 = vector.shape_cast %226 : vector<8xf32> to vector<8x1xf32>
    %228 = vector.broadcast %227 : vector<8x1xf32> to vector<8x8xf32>
    %229 = arith.cmpf oeq, %195, %228 : vector<8x8xf32>
    %cst_75 = arith.constant -1.000000e+30 : f32
    %230 = vector.broadcast %cst_75 : f32 to vector<8x8xf32>
    %231 = arith.select %229, %230, %219 : vector<8x8xi1>, vector<8x8xf32>
    %cst_76 = arith.constant dense<0xFF800000> : vector<8xf32>
    %232 = vector.multi_reduction <maximumf>, %231, %cst_76 [1] : vector<8x8xf32> to vector<8xf32>
    %233 = vector.shape_cast %232 : vector<8xf32> to vector<8x1xf32>
    %234 = vector.broadcast %233 : vector<8x1xf32> to vector<8x8xf32>
    %235 = arith.cmpf oge, %231, %234 : vector<8x8xf32>
    %cst_77 = arith.constant 8.000000e+00 : f32
    %236 = vector.broadcast %cst_77 : f32 to vector<8x8xf32>
    %237 = arith.select %235, %195, %236 : vector<8x8xi1>, vector<8x8xf32>
    %cst_78 = arith.constant dense<0x7F800000> : vector<8xf32>
    %238 = vector.multi_reduction <minimumf>, %237, %cst_78 [1] : vector<8x8xf32> to vector<8xf32>
    %239 = vector.shape_cast %238 : vector<8xf32> to vector<8x1xf32>
    %240 = vector.broadcast %239 : vector<8x1xf32> to vector<8x8xf32>
    %241 = arith.cmpf oeq, %195, %240 : vector<8x8xf32>
    %242 = arith.extui %241 : vector<8x8xi1> to vector<8x8xi32>
    %243 = arith.sitofp %242 : vector<8x8xi32> to vector<8x8xf32>
    %cst_79 = arith.constant dense<0xFF800000> : vector<8xf32>
    %244 = vector.multi_reduction <maximumf>, %191, %cst_79 [1] : vector<8x8xf32> to vector<8xf32>
    %245 = vector.shape_cast %244 : vector<8xf32> to vector<8x1xf32>
    %246 = vector.broadcast %245 : vector<8x1xf32> to vector<8x8xf32>
    %247 = arith.cmpf oge, %191, %246 : vector<8x8xf32>
    %cst_80 = arith.constant 8.000000e+00 : f32
    %248 = vector.broadcast %cst_80 : f32 to vector<8x8xf32>
    %249 = arith.select %247, %195, %248 : vector<8x8xi1>, vector<8x8xf32>
    %cst_81 = arith.constant dense<0x7F800000> : vector<8xf32>
    %250 = vector.multi_reduction <minimumf>, %249, %cst_81 [1] : vector<8x8xf32> to vector<8xf32>
    %251 = vector.shape_cast %250 : vector<8xf32> to vector<8x1xf32>
    %252 = vector.broadcast %251 : vector<8x1xf32> to vector<8x8xf32>
    %253 = arith.cmpf oeq, %195, %252 : vector<8x8xf32>
    %cst_82 = arith.constant -1.000000e+30 : f32
    %254 = vector.broadcast %cst_82 : f32 to vector<8x8xf32>
    %255 = arith.select %253, %254, %191 : vector<8x8xi1>, vector<8x8xf32>
    %cst_83 = arith.constant dense<0xFF800000> : vector<8xf32>
    %256 = vector.multi_reduction <maximumf>, %255, %cst_83 [1] : vector<8x8xf32> to vector<8xf32>
    %257 = vector.shape_cast %256 : vector<8xf32> to vector<8x1xf32>
    %258 = vector.broadcast %257 : vector<8x1xf32> to vector<8x8xf32>
    %259 = arith.cmpf oge, %255, %258 : vector<8x8xf32>
    %cst_84 = arith.constant 8.000000e+00 : f32
    %260 = vector.broadcast %cst_84 : f32 to vector<8x8xf32>
    %261 = arith.select %259, %195, %260 : vector<8x8xi1>, vector<8x8xf32>
    %cst_85 = arith.constant dense<0x7F800000> : vector<8xf32>
    %262 = vector.multi_reduction <minimumf>, %261, %cst_85 [1] : vector<8x8xf32> to vector<8xf32>
    %263 = vector.shape_cast %262 : vector<8xf32> to vector<8x1xf32>
    %264 = vector.broadcast %263 : vector<8x1xf32> to vector<8x8xf32>
    %265 = arith.cmpf oeq, %195, %264 : vector<8x8xf32>
    %cst_86 = arith.constant -1.000000e+30 : f32
    %266 = vector.broadcast %cst_86 : f32 to vector<8x8xf32>
    %267 = arith.select %265, %266, %255 : vector<8x8xi1>, vector<8x8xf32>
    %cst_87 = arith.constant dense<0xFF800000> : vector<8xf32>
    %268 = vector.multi_reduction <maximumf>, %267, %cst_87 [1] : vector<8x8xf32> to vector<8xf32>
    %269 = vector.shape_cast %268 : vector<8xf32> to vector<8x1xf32>
    %270 = vector.broadcast %269 : vector<8x1xf32> to vector<8x8xf32>
    %271 = arith.cmpf oge, %267, %270 : vector<8x8xf32>
    %cst_88 = arith.constant 8.000000e+00 : f32
    %272 = vector.broadcast %cst_88 : f32 to vector<8x8xf32>
    %273 = arith.select %271, %195, %272 : vector<8x8xi1>, vector<8x8xf32>
    %cst_89 = arith.constant dense<0x7F800000> : vector<8xf32>
    %274 = vector.multi_reduction <minimumf>, %273, %cst_89 [1] : vector<8x8xf32> to vector<8xf32>
    %275 = vector.shape_cast %274 : vector<8xf32> to vector<8x1xf32>
    %276 = vector.broadcast %275 : vector<8x1xf32> to vector<8x8xf32>
    %277 = arith.cmpf oeq, %195, %276 : vector<8x8xf32>
    %cst_90 = arith.constant -1.000000e+30 : f32
    %278 = vector.broadcast %cst_90 : f32 to vector<8x8xf32>
    %279 = arith.select %277, %278, %267 : vector<8x8xi1>, vector<8x8xf32>
    %cst_91 = arith.constant dense<0xFF800000> : vector<8xf32>
    %280 = vector.multi_reduction <maximumf>, %279, %cst_91 [1] : vector<8x8xf32> to vector<8xf32>
    %281 = vector.shape_cast %280 : vector<8xf32> to vector<8x1xf32>
    %282 = vector.broadcast %281 : vector<8x1xf32> to vector<8x8xf32>
    %283 = arith.cmpf oge, %279, %282 : vector<8x8xf32>
    %cst_92 = arith.constant 8.000000e+00 : f32
    %284 = vector.broadcast %cst_92 : f32 to vector<8x8xf32>
    %285 = arith.select %283, %195, %284 : vector<8x8xi1>, vector<8x8xf32>
    %cst_93 = arith.constant dense<0x7F800000> : vector<8xf32>
    %286 = vector.multi_reduction <minimumf>, %285, %cst_93 [1] : vector<8x8xf32> to vector<8xf32>
    %287 = vector.shape_cast %286 : vector<8xf32> to vector<8x1xf32>
    %288 = vector.broadcast %287 : vector<8x1xf32> to vector<8x8xf32>
    %289 = arith.cmpf oeq, %195, %288 : vector<8x8xf32>
    %290 = arith.extui %289 : vector<8x8xi1> to vector<8x8xi32>
    %291 = arith.sitofp %290 : vector<8x8xi32> to vector<8x8xf32>
    %292 = vector.shape_cast %243 : vector<8x8xf32> to vector<8x8x1xf32>
    %293 = vector.shape_cast %41 : vector<8x32xf32> to vector<1x8x32xf32>
    %294 = vector.broadcast %292 : vector<8x8x1xf32> to vector<8x8x32xf32>
    %295 = vector.broadcast %293 : vector<1x8x32xf32> to vector<8x8x32xf32>
    %296 = arith.mulf %294, %295 : vector<8x8x32xf32>
    %cst_94 = arith.constant dense<0.000000e+00> : vector<8x32xf32>
    %297 = vector.multi_reduction <add>, %296, %cst_94 [1] : vector<8x8x32xf32> to vector<8x32xf32>
    %298 = vector.shape_cast %291 : vector<8x8xf32> to vector<8x8x1xf32>
    %299 = vector.shape_cast %50 : vector<8x96xf32> to vector<1x8x96xf32>
    %300 = vector.broadcast %298 : vector<8x8x1xf32> to vector<8x8x96xf32>
    %301 = vector.broadcast %299 : vector<1x8x96xf32> to vector<8x8x96xf32>
    %302 = arith.mulf %300, %301 : vector<8x8x96xf32>
    %cst_95 = arith.constant dense<0.000000e+00> : vector<8x96xf32>
    %303 = vector.multi_reduction <add>, %302, %cst_95 [1] : vector<8x8x96xf32> to vector<8x96xf32>
    %304 = arith.mulf %297, %297 : vector<8x32xf32>
    %cst_96 = arith.constant dense<0.000000e+00> : vector<8xf32>
    %305 = vector.multi_reduction <add>, %304, %cst_96 [1] : vector<8x32xf32> to vector<8xf32>
    %306 = vector.shape_cast %305 : vector<8xf32> to vector<8x1xf32>
    %307 = arith.mulf %303, %303 : vector<8x96xf32>
    %cst_97 = arith.constant dense<0.000000e+00> : vector<8xf32>
    %308 = vector.multi_reduction <add>, %307, %cst_97 [1] : vector<8x96xf32> to vector<8xf32>
    %309 = vector.shape_cast %308 : vector<8xf32> to vector<8x1xf32>
    %310 = arith.addf %306, %309 : vector<8x1xf32>
    %cst_98 = arith.constant 1.000000e-16 : f32
    %311 = vector.broadcast %cst_98 : f32 to vector<8x1xf32>
    %312 = arith.maximumf %310, %311 : vector<8x1xf32>
    %313 = math.rsqrt %312 : vector<8x1xf32>
    %314 = vector.extract_strided_slice %149 {offsets = [0, 0], sizes = [8, 32], strides = [1, 1]} : vector<8x128xf32> to vector<8x32xf32>
    %315 = arith.mulf %314, %297 : vector<8x32xf32>
    %cst_99 = arith.constant dense<0.000000e+00> : vector<8xf32>
    %316 = vector.multi_reduction <add>, %315, %cst_99 [1] : vector<8x32xf32> to vector<8xf32>
    %317 = vector.shape_cast %316 : vector<8xf32> to vector<8x1xf32>
    %318 = vector.extract_strided_slice %149 {offsets = [0, 32], sizes = [8, 96], strides = [1, 1]} : vector<8x128xf32> to vector<8x96xf32>
    %319 = arith.mulf %318, %303 : vector<8x96xf32>
    %cst_100 = arith.constant dense<0.000000e+00> : vector<8xf32>
    %320 = vector.multi_reduction <add>, %319, %cst_100 [1] : vector<8x96xf32> to vector<8xf32>
    %321 = vector.shape_cast %320 : vector<8xf32> to vector<8x1xf32>
    %322 = arith.addf %317, %321 : vector<8x1xf32>
    %323 = arith.mulf %322, %313 : vector<8x1xf32>
    %c0_101 = arith.constant 0 : index
    %c0_102 = arith.constant 0 : index
    %324 = vector.load %arg10[%c0_101, %c0_102] : memref<8x1xf32, #tpu.memory_space<vmem>>, vector<8x1xf32>
    tpu.vector_store %arg10[%c0_101, %c0_102], %323 {strides = array<i32>} : memref<8x1xf32, #tpu.memory_space<vmem>>, vector<8x1xf32>,
    %325 = tpu.iota {dimensions = array<i32: 0>} : vector<8x8xi32>
    %326 = tpu.iota {dimensions = array<i32: 1>} : vector<8x8xi32>
    %327 = arith.cmpi eq, %325, %326 : vector<8x8xi32>
    %328 = arith.extui %327 : vector<8x8xi1> to vector<8x8xi32>
    %329 = arith.sitofp %328 : vector<8x8xi32> to vector<8x8xf32>
    %330 = arith.mulf %192, %329 : vector<8x8xf32>
    %cst_103 = arith.constant dense<0.000000e+00> : vector<8xf32>
    %331 = vector.multi_reduction <add>, %330, %cst_103 [1] : vector<8x8xf32> to vector<8xf32>
    %332 = vector.shape_cast %331 : vector<8xf32> to vector<8x1xf32>
    %cst_104 = arith.constant dense<0xFF800000> : vector<8xf32>
    %333 = vector.multi_reduction <maximumf>, %192, %cst_104 [1] : vector<8x8xf32> to vector<8xf32>
    %334 = vector.shape_cast %333 : vector<8xf32> to vector<8x1xf32>
    %335 = arith.maximumf %334, %323 : vector<8x1xf32>
    %cst_105 = arith.constant 5.000000e+01 : f32
    %336 = vector.broadcast %cst_105 : f32 to vector<8x1xf32>
    %337 = arith.mulf %335, %336 : vector<8x1xf32>
    %cst_106 = arith.constant 5.000000e+01 : f32
    %338 = vector.broadcast %cst_106 : f32 to vector<8x8xf32>
    %339 = arith.mulf %192, %338 : vector<8x8xf32>
    %340 = vector.broadcast %337 : vector<8x1xf32> to vector<8x8xf32>
    %341 = arith.subf %339, %340 : vector<8x8xf32>
    %342 = math.exp %341 : vector<8x8xf32>
    %cst_107 = arith.constant dense<0.000000e+00> : vector<8xf32>
    %343 = vector.multi_reduction <add>, %342, %cst_107 [1] : vector<8x8xf32> to vector<8xf32>
    %344 = vector.shape_cast %343 : vector<8xf32> to vector<8x1xf32>
    %cst_108 = arith.constant 5.000000e+01 : f32
    %345 = vector.broadcast %cst_108 : f32 to vector<8x1xf32>
    %346 = arith.mulf %323, %345 : vector<8x1xf32>
    %347 = arith.subf %346, %337 : vector<8x1xf32>
    %348 = math.exp %347 : vector<8x1xf32>
    %349 = arith.addf %344, %348 : vector<8x1xf32>
    %350 = math.log %349 : vector<8x1xf32>
    %351 = arith.addf %337, %350 : vector<8x1xf32>
    %cst_109 = arith.constant 5.000000e+01 : f32
    %352 = vector.broadcast %cst_109 : f32 to vector<8x1xf32>
    %353 = arith.mulf %332, %352 : vector<8x1xf32>
    %354 = arith.subf %351, %353 : vector<8x1xf32>
    %cst_110 = arith.constant dense<0.000000e+00> : vector<1xf32>
    %355 = vector.multi_reduction <add>, %354, %cst_110 [0] : vector<8x1xf32> to vector<1xf32>
    %356 = vector.shape_cast %355 : vector<1xf32> to vector<1x1xf32>
    %cst_111 = arith.constant 1.250000e-01 : f32
    %357 = vector.broadcast %cst_111 : f32 to vector<1x1xf32>
    %358 = arith.mulf %356, %357 : vector<1x1xf32>
    %c0_112 = arith.constant 0 : index
    %c0_113 = arith.constant 0 : index
    %359 = vector.load %arg8[%c0_112, %c0_113] : memref<1x1xf32, #tpu.memory_space<vmem>>, vector<1x1xf32>
    tpu.vector_store %arg8[%c0_112, %c0_113], %358 {strides = array<i32>} : memref<1x1xf32, #tpu.memory_space<vmem>>, vector<1x1xf32>,
    return
  }
}

</mosaic_0001>

<bundles_post_ra>
// kernel: tpu_custom_call.1
= control target key start
LH: loop header
LB: loop body
LE: loop exit
PB: predicated region body
PF: predicated region fallthrough
CT: control target
= control target key end

     0   :  { %16 = vsyncpa [#allocation3], 0  ;;  %s6843_s0 = inlined_call_operand.hbm [shape: f32[8,16,32], index: 0, kind: input, shape index: {}]   ;;  %s6844_s1 = inlined_call_operand.hbm [shape: f32[8,16,32], index: 1, kind: input, shape index: {}]   ;;  %s6845_s2 = inlined_call_operand.vmem [shape: s32[8,1], index: 2, kind: input, shape index: {}]   ;;  %s6846_s3 = inlined_call_operand.vmem [shape: s32[8,1], index: 3, kind: input, shape index: {}]   ;;  %s6847_s4 = inlined_call_operand.hbm [shape: f32[96,96], index: 4, kind: input, shape index: {}]   ;;  %s6848_s5 = inlined_call_operand.vmem [shape: f32[3,16], index: 5, kind: input, shape index: {}]   ;;  %s6849_s6 = inlined_call_operand.hbm [shape: f32[8,128], index: 6, kind: output, shape index: {0}]   ;;  %s6850_s7 = inlined_call_operand.hbm [shape: f32[8,128], index: 7, kind: output, shape index: {1}]   ;;  %s6851_s8 = inlined_call_operand.hbm [shape: f32[1,1], index: 8, kind: output, shape index: {2}]   ;;  %s6852_s9 = inlined_call_operand.hbm [shape: f32[8,8], index: 9, kind: output, shape index: {3}]   ;;  %s6853_s10 = inlined_call_operand.vmem [shape: f32[8,1], index: 10, kind: output, shape index: {4}]  }
   0x1   :  { %17 = vsyncpa [#allocation6], 0 }
   0x2   :  { %18 = vsyncpa [#allocation4], 0 }
   0x3   :  { %19 = vsyncpa [#allocation10], 0 }
   0x4   :  { %20 = vsyncpa [#allocation13], 0  ;;  %s4813_s13 = smov [#allocation5]   ;;  %s4814_s15 = smov [#allocation2]  }
   0x5   :  { %s38_s14 = sshll.u32 %s4813_s13, 4  ;;  %s26_s16 = sshll.u32 %s4814_s15, 4  ;;  %s39_s14 = int_to_ptr.vmem [resolvable:$true] %s38_s14  ;;  %s27_s16 = int_to_ptr.vmem [resolvable:$true] %s26_s16 }
   0x6   :  { %s4671_s17 = scalar_lea.vmem %s39_s14, 2048  ;;  %p4676_p1 = scmp.lt.s32.totalorder %s39_s14, %s39_s14 }
   0x7   :  { %p4672_p0 = scmp.ne.s32.totalorder %s39_s14, %s4671_s17  ;;  %p4677_p2 = scmp.lt.s32.totalorder %s4671_s17, %s4671_s17 }
   0x9   :  { %p4678_p3 = por %p4677_p2, %p4676_p1 }
   0xb   :  { %p4679_p4 = pnand %p4678_p3, %p4672_p0 }
   0xd   :  { %4682 = shalt.err (!%p4679_p4)
}
   0xe   :  { %s4815_s18 = smov 128   ;;  %s4816_s19 = smov 8  }
   0xf   :  { %44 = dma.hbm_to_vmem [thread:$0]  %s6844_s1, 2048, %s39_s14, [#allocation6], %s4815_s18, %s4815_s18, %s4816_s19  }
  0x10   :  { %s4691_s22 = scalar_lea.vmem %s27_s16, 2048  ;;  %p4696_p6 = scmp.lt.s32.totalorder %s27_s16, %s27_s16 }
  0x11   :  { %p4692_p5 = scmp.ne.s32.totalorder %s27_s16, %s4691_s22  ;;  %p4697_p7 = scmp.lt.s32.totalorder %s4691_s22, %s4691_s22 }
  0x13   :  { %p4698_p8 = por %p4697_p7, %p4696_p6 }
  0x15   :  { %p4699_p9 = pnand %p4698_p8, %p4692_p5 }
  0x17   :  { %4702 = shalt.err (!%p4699_p9)
}
  0x18   :  { %32 = dma.hbm_to_vmem [thread:$0]  %s6843_s0, 2048, %s27_s16, [#allocation3], %s4815_s18, %s4815_s18, %s4816_s19  }
  0x19   :  { %s4817_s25 = smov [#allocation7]  }
  0x1a   :  { %s54_s26 = sshll.u32 %s4817_s25, 4  ;;  %s55_s26 = int_to_ptr.vmem [resolvable:$true] %s54_s26 }
  0x1b   :  { %s4711_s27 = scalar_lea.vmem %s55_s26, 1536  ;;  %p4716_p11 = scmp.lt.s32.totalorder %s55_s26, %s55_s26 }
  0x1c   :  { %p4712_p10 = scmp.ne.s32.totalorder %s55_s26, %s4711_s27  ;;  %p4717_p12 = scmp.lt.s32.totalorder %s4711_s27, %s4711_s27 }
  0x1e   :  { %p4718_p13 = por %p4717_p12, %p4716_p11 }
  0x20   :  { %p4719_p0 = pnand %p4718_p13, %p4712_p10 }
  0x22   :  { %4722 = shalt.err (!%p4719_p0)
}
  0x23   :  { %60 = dma.hbm_to_vmem [thread:$0]  %s6847_s4, 1536, %s55_s26, [#allocation6], %s4815_s18, %s4815_s18, %s4816_s19  }
  0x24   :  { %4803 = dma.done.wait [#allocation3], 2048  }
  0x25   :  { %4804 = vsyncadd [#allocation3], 4294965248 }
  0x26   :  { %4805 = dma.done.wait [#allocation6], 3584  }
  0x27   :  { %4806 = vsyncadd [#allocation6], 4294963712  ;;  %v4818_v0 = vmov 0   ;;  %v6862_v1 = vmov 0.0   ;;  %v105_v2 = vld [vmem:[%s6846_s3] sm:$0xff]  ;;  %v106_v6 = vlaneseq  ;;  %vm239_vm7 = vcmask 261120  }
  0x28   :  { %4468 = vset.pattern.permute.xlu1 %v4818_v0  ;;  %4467 = vset.pattern.permute.xlu0 %v4818_v0  ;;  %v104_v3 = vld [vmem:[%s6845_s2] sm:$0xff]  ;;  %v4960_v48 = vld [vmem:[#allocation2 + $0x8] sm:$0xff]  ;;  %v4968_v52 = vld [vmem:[#allocation2 + $0x18] sm:$0xff]  ;;  %vm840_vm8 = vcmask 1041409   ;;  %vm842_vm9 = vcmask 1042434   ;;  %vm844_vm10 = vcmask 1043459  }
  0x29   :  { %4409 = vmatprep.subr.mxu0 %v6862_v1  ;;  %4436 = vmatprep.subr.mxu1 %v6862_v1  ;;  %vm120_vm0 = vcmp.lt.s32.totalorder %v104_v3, %v105_v2  ;;  %vm122_vm1 = vcmp.gt.s32.totalorder %v104_v3, %v105_v2  ;;  %v4901_v7 = vshrl.u32 %v106_v6, 7  ;;  %v4903_v8 = vand.u32 127, %v106_v6  ;;  %v4962_v49 = vld [vmem:[#allocation2] sm:$0xff]  ;;  %v4970_v53 = vld [vmem:[#allocation2 + $0x10] sm:$0xff]  ;;  %v4976_v60 = vld [vmem:[#allocation2 + $0x28] sm:$0xff]  ;;  %s4821_s2 = smov 64  }
  0x2a   :  { %115 = vperm.xlu1 %4468, %v105_v2   ;;  %v121_v4 = vsel %vm120_vm0, %v104_v3, %v105_v2  ;;  %v123_v5 = vsel %vm122_vm1, %v104_v3, %v105_v2  ;;  %v673_v50 = vsel %vm239_vm7, %v4960_v48, 0.0  ;;  %v672_v51 = vsel %vm239_vm7, %v4962_v49, 0.0  ;;  %v4978_v61 = vld [vmem:[#allocation2 + $0x20] sm:$0xff]  ;;  %v4984_v6 = vld [vmem:[#allocation2 + $0x38] sm:$0xff]  ;;  %s4822_s3 = smov 32   ;;  %s4825_s15 = smov [#allocation9]  }
  0x2b   :  { %125 = vperm.xlu0 %4467, %v121_v4   ;;  %6983 = vst [vmem:[#allocation19_spill] sm:$0xff] %v4901_v7  ;;  %6984 = vst [vmem:[#allocation20_spill] sm:$0xff] %v4903_v8  ;;  %v4906_v9 = vsub.s32 0, %v4901_v7  ;;  %v4912_v13 = vsub.s32 1, %v4901_v7  ;;  %v4916_v15 = vsub.s32 2, %v4901_v7  ;;  %v4920_v17 = vsub.s32 3, %v4901_v7 }
  0x2c   :  { %v4924_v20 = vsub.s32 4, %v4901_v7  ;;  %v4928_v23 = vsub.s32 5, %v4901_v7  ;;  %v4934_v25 = vsub.s32 6, %v4901_v7  ;;  %v4946_v35 = vsub.s32 7, %v4901_v7  ;;  %s4334_s16 = sshll.u32 %s4825_s15, 4  ;;  %s4826_s17 = smov [#allocation8]   ;;  %s4335_s16 = int_to_ptr.vmem [resolvable:$true] %s4334_s16 }
  0x2d   :  { %6985 = vst [vmem:[#allocation21_spill] sm:$0xff] %v4912_v13  ;;  %6986 = vst [vmem:[#allocation22_spill] sm:$0xff] %v4920_v17  ;;  %v682_v54 = vsel %vm239_vm7, %v4968_v52, 0.0  ;;  %v681_v55 = vsel %vm239_vm7, %v4970_v53, 0.0  ;;  %v674_v58 = vadd.f32 %v673_v50, %v672_v51  ;;  %v691_v62 = vsel %vm239_vm7, %v4976_v60, 0.0  ;;  %s4324_s18 = sshll.u32 %s4826_s17, 4  ;;  %p4728_p2 = scmp.lt.s32.totalorder %s4335_s16, %s4335_s16  ;;  %s4325_s18 = int_to_ptr.vmem [resolvable:$true] %s4324_s18 }
  0x2e   :  { %109 = vperm.xlu1 %4468, %v104_v3   ;;  %6987 = vst [vmem:[#allocation23_spill] sm:$0xff] %v4924_v20  ;;  %6988 = vst [vmem:[#allocation24_spill] sm:$0xff] %v4928_v23  ;;  %v683_v59 = vadd.f32 %v682_v54, %v681_v55  ;;  %v690_v63 = vsel %vm239_vm7, %v4978_v61, 0.0  ;;  %v909_v55 = vld [vmem:[#allocation7 + $0x38] sm:$0xff]  ;;  %vm846_vm11 = vcmask 1044484   ;;  %vm848_vm12 = vcmask 1045509  }
  0x2f   :  { %129 = vperm.xlu0 %4467, %v123_v5   ;;  %6989 = vst [vmem:[#allocation25_spill] sm:$0xff] %v4934_v25  ;;  %6990 = vst [vmem:[#allocation26_spill] sm:$0xff] %v4946_v35  ;;  %v675_v0 = vrot.slane %v674_v58, 4  ;;  %v692_v5 = vadd.f32 %v691_v62, %v690_v63  ;;  %vm852_vm13 = vcmask 1047559   ;;  %vm850_vm14 = vcmask 1046534   ;;  %s4723_s19 = scalar_lea.vmem %s4335_s16, 128 }
  0x30   :  { %v684_v4 = vrot.slane %v683_v59, 4  ;;  %vm4820_vm15 = vmmov 0   ;;  %vm892_vm0 = vcmask 523264   ;;  %vm895_vm1 = vcmask 785408   ;;  %p4724_p1 = scmp.ne.s32.totalorder %s4335_s16, %s4723_s19  ;;  %p4729_p3 = scmp.lt.s32.totalorder %s4723_s19, %s4723_s19 }
  0x31   :  { %4433 = vmatprep.mubr.msk.f32.mxu0 %vm4820_vm15, %v6862_v1  ;;  %4438 = vmatprep.mubr.msk.f32.mxu1 %vm4820_vm15, %v6862_v1 }
  0x32   :  { %p4730_p4 = por %p4729_p3, %p4728_p2 }
  0x34   :  { %p4731_p5 = pnand %p4730_p4, %p4724_p1 }
  0xa5   :  { %v116_v10 = vpop.permute.xlu1 %115 }
  0xa6   :  { %vm117_vm2 = vcmp.eq.s32.totalorder %v4903_v8, %v116_v10  ;;  %v126_v18 = vpop.permute.xlu0 %125  ;;  %v4986_v10 = vld [vmem:[#allocation2 + $0x30] sm:$0xff] }
  0xa7   :  { %v4380_v11 = vsel %vm117_vm2, 1.0, %v6862_v1  ;;  %vm127_vm3 = vcmp.ge.s32.totalorder %v4903_v8, %v126_v18  ;;  %vm3846_vm2 = vcmask 64512  }
  0xa8   :  { %v315_v12 = vrot.slane %v4380_v11, %v4906_v9  ;;  %v326_v14 = vrot.slane %v4380_v11, %v4912_v13  ;;  %v337_v16 = vrot.slane %v4380_v11, %v4916_v15  ;;  %v348_v19 = vrot.slane %v4380_v11, %v4920_v17 }
  0xa9   :  { %v359_v21 = vrot.slane %v4380_v11, %v4924_v20  ;;  %v370_v24 = vrot.slane %v4380_v11, %v4928_v23  ;;  %v381_v26 = vrot.slane %v4380_v11, %v4934_v25  ;;  %v110_v36 = vpop.permute.xlu1 %109  ;;  %v392_v38 = vrot.slane %v4380_v11, %v4946_v35 }
  0xaa   :  { %321 = vbcast.lane.b32.xlu1 %v315_v12, 264  ;;  %317 = vbcast.lane.b32.xlu0 %v315_v12, 256  ;;  %v130_v22 = vpop.permute.xlu0 %129  ;;  %vm111_vm6 = vcmp.eq.s32.totalorder %v4903_v8, %v110_v36  ;;  %v700_v11 = vsel %vm239_vm7, %v4984_v6, 0.0  ;;  %v699_v12 = vsel %vm239_vm7, %v4986_v10, 0.0 }
  0xab   :  { %vm131_vm4 = vcmp.le.s32.totalorder %v4903_v8, %v130_v22  ;;  %v4379_v39 = vsel %vm111_vm6, 1.0, %v6862_v1  ;;  %v913_v22 = vld [vmem:[#allocation7 + $0x58] sm:$0xff] }
  0xac   :  { %vm132_vm5 = vmand %vm127_vm3, %vm131_vm4  ;;  %v138_v40 = vrot.slane %v4379_v39, %v4906_v9  ;;  %v149_v41 = vrot.slane %v4379_v39, %v4912_v13  ;;  %v160_v42 = vrot.slane %v4379_v39, %v4916_v15  ;;  %v171_v43 = vrot.slane %v4379_v39, %v4920_v17  ;;  %4410 = vmatpush3.msra.mxu0 %v913_v22  ;;  %v5030_v22 = vld [vmem:[#allocation2 + $0x60] sm:$0xff] }
  0xad   :  { %v4381_v27 = vsel %vm132_vm5, 1.0, %v6862_v1  ;;  %v182_v44 = vrot.slane %v4379_v39, %v4924_v20  ;;  %v193_v45 = vrot.slane %v4379_v39, %v4928_v23  ;;  %v204_v46 = vrot.slane %v4379_v39, %v4934_v25  ;;  %4411 = vmatprep.subr.mxu0 %v6862_v1 }
  0xae   :  { %332 = vbcast.lane.b32.xlu1 %v326_v14, 264  ;;  %328 = vbcast.lane.b32.xlu0 %v326_v14, 256  ;;  %v491_v28 = vrot.slane %v4381_v27, %v4906_v9  ;;  %v502_v29 = vrot.slane %v4381_v27, %v4912_v13  ;;  %v513_v30 = vrot.slane %v4381_v27, %v4916_v15  ;;  %vm1277_vm3 = vcmask 130112  }
  0xaf   :  { %v524_v31 = vrot.slane %v4381_v27, %v4920_v17  ;;  %v535_v32 = vrot.slane %v4381_v27, %v4924_v20  ;;  %v546_v33 = vrot.slane %v4381_v27, %v4928_v23  ;;  %v557_v34 = vrot.slane %v4381_v27, %v4934_v25 }
  0xb0   :  { %v568_v37 = vrot.slane %v4381_v27, %v4946_v35  ;;  %v215_v47 = vrot.slane %v4379_v39, %v4946_v35  ;;  %v676_v14 = vadd.f32 %v675_v0, %v674_v58  ;;  %v4992_v27 = vld [vmem:[#allocation2 + $0x48] sm:$0xff]  ;;  %vm1350_vm4 = vcmask 130048  }
  0xb2   :  { %343 = vbcast.lane.b32.xlu1 %v337_v16, 264  ;;  %339 = vbcast.lane.b32.xlu0 %v337_v16, 256 }
  0xb6   :  { %354 = vbcast.lane.b32.xlu1 %v348_v19, 264  ;;  %350 = vbcast.lane.b32.xlu0 %v348_v19, 256  ;;  %v685_v19 = vadd.f32 %v684_v4, %v683_v59  ;;  %v908_v4 = vld [vmem:[#allocation7 + $0x30] sm:$0xff] }
  0xba   :  { %365 = vbcast.lane.b32.xlu1 %v359_v21, 264  ;;  %361 = vbcast.lane.b32.xlu0 %v359_v21, 256  ;;  %v693_v21 = vrot.slane %v692_v5, 4 }
  0xbe   :  { %376 = vbcast.lane.b32.xlu1 %v370_v24, 264  ;;  %372 = vbcast.lane.b32.xlu0 %v370_v24, 256  ;;  %v912_v24 = vld [vmem:[#allocation7 + $0x50] sm:$0xff] }
  0xbf   :  { %4412 = vmatpush3.msra.mxu0 %v912_v24 }
  0xc0   :  { %4413 = vmatprep.subr.mxu0 %v6862_v1 }
  0xc2   :  { %387 = vbcast.lane.b32.xlu1 %v381_v26, 264  ;;  %383 = vbcast.lane.b32.xlu0 %v381_v26, 256  ;;  %v701_v26 = vadd.f32 %v700_v11, %v699_v12 }
  0xc6   :  { %497 = vbcast.lane.b32.xlu1 %v491_v28, 264  ;;  %493 = vbcast.lane.b32.xlu0 %v491_v28, 256  ;;  %v4994_v28 = vld [vmem:[#allocation2 + $0x40] sm:$0xff] }
  0xca   :  { %508 = vbcast.lane.b32.xlu1 %v502_v29, 264  ;;  %504 = vbcast.lane.b32.xlu0 %v502_v29, 256  ;;  %v709_v29 = vsel %vm239_vm7, %v4992_v27, 0.0 }
  0xce   :  { %519 = vbcast.lane.b32.xlu1 %v513_v30, 264  ;;  %515 = vbcast.lane.b32.xlu0 %v513_v30, 256  ;;  %v708_v30 = vsel %vm239_vm7, %v4994_v28, 0.0 }
  0xd2   :  { %530 = vbcast.lane.b32.xlu1 %v524_v31, 264  ;;  %526 = vbcast.lane.b32.xlu0 %v524_v31, 256  ;;  %v911_v31 = vld [vmem:[#allocation7 + $0x48] sm:$0xff] }
  0xd3   :  { %4414 = vmatpush3.msra.mxu0 %v911_v31 }
  0xd4   :  { %4415 = vmatprep.subr.mxu0 %v6862_v1 }
  0xd6   :  { %541 = vbcast.lane.b32.xlu1 %v535_v32, 264  ;;  %537 = vbcast.lane.b32.xlu0 %v535_v32, 256 }
  0xda   :  { %552 = vbcast.lane.b32.xlu1 %v546_v33, 264  ;;  %548 = vbcast.lane.b32.xlu0 %v546_v33, 256 }
  0xde   :  { %563 = vbcast.lane.b32.xlu1 %v557_v34, 264  ;;  %559 = vbcast.lane.b32.xlu0 %v557_v34, 256  ;;  %v677_v34 = vrot.slane %v676_v14, 2 }
  0xe0   :  { %v678_v58 = vadd.f32 %v677_v34, %v676_v14 }
  0xe2   :  { %574 = vbcast.lane.b32.xlu1 %v568_v37, 264  ;;  %570 = vbcast.lane.b32.xlu0 %v568_v37, 256  ;;  %v679_v24 = vrot.slane %v678_v58, 1 }
  0xe6   :  { %398 = vbcast.lane.b32.xlu1 %v392_v38, 264  ;;  %394 = vbcast.lane.b32.xlu0 %v392_v38, 256 }
  0xea   :  { %144 = vbcast.lane.b32.xlu1 %v138_v40, 264  ;;  %140 = vbcast.lane.b32.xlu0 %v138_v40, 256  ;;  %v686_v40 = vrot.slane %v685_v19, 2 }
  0xee   :  { %155 = vbcast.lane.b32.xlu1 %v149_v41, 264  ;;  %151 = vbcast.lane.b32.xlu0 %v149_v41, 256  ;;  %v694_v41 = vadd.f32 %v693_v21, %v692_v5  ;;  %v5028_v21 = vld [vmem:[#allocation2 + $0x68] sm:$0xff] }
  0xef   :  { %v727_v31 = vsel %vm239_vm7, %v5028_v21, 0.0 }
  0xf2   :  { %166 = vbcast.lane.b32.xlu1 %v160_v42, 264  ;;  %162 = vbcast.lane.b32.xlu0 %v160_v42, 256  ;;  %v910_v42 = vld [vmem:[#allocation7 + $0x40] sm:$0xff] }
  0xf3   :  { %4416 = vmatpush3.msra.mxu0 %v910_v42 }
  0xf4   :  { %4417 = vmatprep.subr.mxu0 %v6862_v1 }
  0xf5   :  { %4418 = vmatpush3.msra.mxu0 %v909_v55 }
  0xf6   :  { %177 = vbcast.lane.b32.xlu1 %v171_v43, 264  ;;  %173 = vbcast.lane.b32.xlu0 %v171_v43, 256  ;;  %v702_v43 = vrot.slane %v701_v26, 4 }
  0xf7   :  { %4419 = vmatprep.subr.mxu0 %v6862_v1 }
  0xf8   :  { %v703_v5 = vadd.f32 %v702_v43, %v701_v26  ;;  %4420 = vmatpush3.msra.mxu0 %v908_v4 }
  0xf9   :  { %4421 = vmatprep.subr.mxu0 %v6862_v1 }
  0xfa   :  { %188 = vbcast.lane.b32.xlu1 %v182_v44, 264  ;;  %184 = vbcast.lane.b32.xlu0 %v182_v44, 256  ;;  %v710_v44 = vadd.f32 %v709_v29, %v708_v30  ;;  %v704_v43 = vrot.slane %v703_v5, 2 }
  0xfc   :  { %v711_v11 = vrot.slane %v710_v44, 4  ;;  %v5060_v25 = vadd.f32 %v704_v43, %v703_v5 }
  0xfe   :  { %199 = vbcast.lane.b32.xlu1 %v193_v45, 264  ;;  %195 = vbcast.lane.b32.xlu0 %v193_v45, 256  ;;  %v5006_v45 = vld [vmem:[#allocation2 + $0x58] sm:$0xff] }
  0xff   :  { %v718_v51 = vsel %vm239_vm7, %v5006_v45, 0.0 }
 0x102   :  { %210 = vbcast.lane.b32.xlu1 %v204_v46, 264  ;;  %206 = vbcast.lane.b32.xlu0 %v204_v46, 256  ;;  %v5008_v46 = vld [vmem:[#allocation2 + $0x50] sm:$0xff] }
 0x103   :  { %v717_v54 = vsel %vm239_vm7, %v5008_v46, 0.0 }
 0x104   :  { %v719_v12 = vadd.f32 %v718_v51, %v717_v54  ;;  %v5044_v51 = vld [vmem:[#allocation2 + $0x78] sm:$0xff]  ;;  %v5046_v54 = vld [vmem:[#allocation2 + $0x70] sm:$0xff] }
 0x106   :  { %221 = vbcast.lane.b32.xlu1 %v215_v47, 264  ;;  %217 = vbcast.lane.b32.xlu0 %v215_v47, 256 }
 0x11c   :  { %v322_v56 = vpop.permute.xlu1 %321  ;;  %v318_v57 = vpop.permute.xlu0 %317 }
 0x11d   :  { %v401_v32 = vmul.f32 %v322_v56, %v4960_v48  ;;  %v400_v33 = vmul.f32 %v318_v57, %v4962_v49 }
 0x11f   :  { %v417_v56 = vsel %vm239_vm7, %v401_v32, -inf  ;;  %v416_v57 = vsel %vm239_vm7, %v400_v33, -inf  ;;  %v726_v32 = vsel %vm239_vm7, %v5030_v22, 0.0 }
 0x120   :  { %v333_v2 = vpop.permute.xlu1 %332  ;;  %v329_v3 = vpop.permute.xlu0 %328 }
 0x121   :  { %v403_v38 = vmul.f32 %v333_v2, %v4968_v52  ;;  %v402_v39 = vmul.f32 %v329_v3, %v4970_v53  ;;  %v687_v2 = vadd.f32 %v686_v40, %v685_v19  ;;  %v695_v3 = vrot.slane %v694_v41, 2  ;;  %v907_v19 = vld [vmem:[#allocation7 + $0x28] sm:$0xff]  ;;  %v906_v40 = vld [vmem:[#allocation7 + $0x20] sm:$0xff] }
 0x122   :  { %4422 = vmatpush3.msra.mxu0 %v907_v19 }
 0x123   :  { %v426_v63 = vsel %vm239_vm7, %v403_v38, -inf  ;;  %v425_v0 = vsel %vm239_vm7, %v402_v39, -inf  ;;  %v688_v33 = vrot.slane %v687_v2, 1  ;;  %v696_v34 = vadd.f32 %v695_v3, %v694_v41  ;;  %4423 = vmatprep.subr.mxu0 %v6862_v1 }
 0x124   :  { %v344_v16 = vpop.permute.xlu1 %343  ;;  %v340_v18 = vpop.permute.xlu0 %339  ;;  %v427_v29 = vmax.f32 %v425_v0, %v426_v63  ;;  %v736_v41 = vsel %vm239_vm7, %v5044_v51, 0.0  ;;  %4424 = vmatpush3.msra.mxu0 %v906_v40  ;;  %v680_v0 = vadd.f32 %v679_v24, %v678_v58 }
 0x125   :  { %v405_v47 = vmul.f32 %v344_v16, %v4976_v60  ;;  %v404_v50 = vmul.f32 %v340_v18, %v4978_v61  ;;  %v418_v16 = vmax.f32 %v416_v57, %v417_v56  ;;  %v728_v56 = vadd.f32 %v727_v31, %v726_v32  ;;  %4425 = vmatprep.subr.mxu0 %v6862_v1 }
 0x126   :  { %v428_v57 = vrot.slane %v427_v29, 4  ;;  %v689_v3 = vadd.f32 %v688_v33, %v687_v2  ;;  %v697_v19 = vrot.slane %v696_v34, 1 }
 0x127   :  { %v435_v14 = vsel %vm239_vm7, %v405_v47, -inf  ;;  %v434_v18 = vsel %vm239_vm7, %v404_v50, -inf  ;;  %v712_v47 = vadd.f32 %v711_v11, %v710_v44  ;;  %v720_v50 = vrot.slane %v719_v12, 4 }
 0x128   :  { %v355_v36 = vpop.permute.xlu1 %354  ;;  %v351_v37 = vpop.permute.xlu0 %350  ;;  %v436_v42 = vmax.f32 %v434_v18, %v435_v14  ;;  %v419_v55 = vrot.slane %v418_v16, 4  ;;  %v904_v14 = vld [vmem:[#allocation7 + $0x10] sm:$0xff]  ;;  %v729_v20 = vrot.slane %v728_v56, 4  ;;  %v429_v58 = vmax.f32 %v427_v29, %v428_v57 }
 0x129   :  { %v407_v38 = vmul.f32 %v355_v36, %v4984_v6  ;;  %v406_v39 = vmul.f32 %v351_v37, %v4986_v10  ;;  %v735_v36 = vsel %vm239_vm7, %v5046_v54, 0.0  ;;  %v905_v37 = vld [vmem:[#allocation7 + $0x18] sm:$0xff]  ;;  %v721_v31 = vadd.f32 %v720_v50, %v719_v12 }
 0x12a   :  { %v437_v18 = vrot.slane %v436_v42, 4  ;;  %v737_v32 = vadd.f32 %v736_v41, %v735_v36  ;;  %4426 = vmatpush3.msra.mxu0 %v905_v37  ;;  %v420_v35 = vmax.f32 %v418_v16, %v419_v55  ;;  %v713_v23 = vrot.slane %v712_v47, 2 }
 0x12b   :  { %v444_v4 = vsel %vm239_vm7, %v407_v38, -inf  ;;  %v443_v11 = vsel %vm239_vm7, %v406_v39, -inf  ;;  %4427 = vmatprep.subr.mxu0 %v6862_v1  ;;  %v5063_v38 = vmul.f32 0.0625, %v680_v0  ;;  %v5065_v39 = vmul.f32 0.0625, %v689_v3 }
 0x12c   :  { %v5019_v59 = vpop.permute.xlu1 %365  ;;  %v5021_v62 = vpop.permute.xlu0 %361  ;;  %v445_v2 = vmax.f32 %v443_v11, %v444_v4  ;;  %4428 = vmatpush3.msra.mxu0 %v904_v14  ;;  %v438_v16 = vmax.f32 %v436_v42, %v437_v18  ;;  %v5072_v40 = vadd.f32 %v697_v19, %v696_v34  ;;  %v722_v29 = vrot.slane %v721_v31, 2 }
 0x12d   :  { %6991 = vst [vmem:[#allocation27_spill] sm:$0xff] %v5063_v38  ;;  %6992 = vst [vmem:[#allocation28_spill] sm:$0xff] %v5065_v39  ;;  %v409_v12 = vmul.f32 %v5019_v59, %v4992_v27  ;;  %v408_v5 = vmul.f32 %v5021_v62, %v4994_v28  ;;  %4429 = vmatprep.subr.mxu0 %v6862_v1  ;;  %v738_v43 = vrot.slane %v737_v32, 4  ;;  %v421_v50 = vrot.slane %v420_v35, 2 }
 0x12e   :  { %v706_v55 = vrot.slane %v5060_v25, 1  ;;  %v5075_v41 = vadd.f32 %v713_v23, %v712_v47  ;;  %v5077_v36 = vadd.f32 %v729_v20, %v728_v56  ;;  %v430_v37 = vrot.slane %v429_v58, 2 }
 0x12f   :  { %v446_v57 = vrot.slane %v445_v2, 4  ;;  %v453_v34 = vsel %vm239_vm7, %v409_v12, -inf  ;;  %v452_v42 = vsel %vm239_vm7, %v408_v5, -inf  ;;  %v439_v23 = vrot.slane %v438_v16, 2 }
 0x130   :  { %v5033_v30 = vpop.permute.xlu1 %376  ;;  %v5035_v26 = vpop.permute.xlu0 %372  ;;  %v5087_v47 = vadd.f32 %v722_v29, %v721_v31  ;;  %v5089_v56 = vadd.f32 %v738_v43, %v737_v32  ;;  %v431_v19 = vmax.f32 %v429_v58, %v430_v37 }
 0x131   :  { %v411_v20 = vmul.f32 %v5033_v30, %v5006_v45  ;;  %v447_v31 = vmax.f32 %v445_v2, %v446_v57 }
 0x133   :  { %v462_v5 = vsel %vm239_vm7, %v411_v20, -inf }
 0x134   :  { %v5053_v63 = vpop.permute.xlu1 %387  ;;  %v5055_v44 = vpop.permute.xlu0 %383 }
 0x135   :  { %v413_v58 = vmul.f32 %v5053_v63, %v5028_v21  ;;  %v412_v29 = vmul.f32 %v5055_v44, %v5030_v22 }
 0x138   :  { %v498_v24 = vpop.permute.xlu1 %497  ;;  %v494_v33 = vpop.permute.xlu0 %493 }
 0x139   :  { %v577_v59 = vmul.f32 %v498_v24, %v4960_v48  ;;  %v576_v62 = vmul.f32 %v494_v33, %v4962_v49  ;;  %v422_v48 = vmax.f32 %v420_v35, %v421_v50  ;;  %v410_v49 = vmul.f32 %v5035_v26, %v5008_v46 }
 0x13a   :  { %v440_v26 = vmax.f32 %v438_v16, %v439_v23 }
 0x13b   :  { %v592_v24 = vsel %vm239_vm7, %v576_v62, 0.0  ;;  %v461_v43 = vsel %vm239_vm7, %v410_v49, -inf }
 0x13c   :  { %v509_v0 = vpop.permute.xlu1 %508  ;;  %v505_v3 = vpop.permute.xlu0 %504 }
 0x13d   :  { %v579_v4 = vmul.f32 %v509_v0, %v4968_v52  ;;  %v578_v11 = vmul.f32 %v505_v3, %v4970_v53  ;;  %v454_v52 = vmax.f32 %v452_v42, %v453_v34  ;;  %v593_v53 = vsel %vm239_vm7, %v577_v59, 0.0 }
 0x13e   :  { %v594_v50 = vadd.f32 %v593_v53, %v592_v24  ;;  %v448_v0 = vrot.slane %v447_v31, 2  ;;  %v441_v34 = vrot.slane %v440_v26, 1  ;;  %v463_v42 = vmax.f32 %v461_v43, %v462_v5 }
 0x13f   :  { %v602_v14 = vsel %vm239_vm7, %v579_v4, 0.0  ;;  %v601_v18 = vsel %vm239_vm7, %v578_v11, 0.0  ;;  %v455_v57 = vrot.slane %v454_v52, 4  ;;  %v471_v4 = vsel %vm239_vm7, %v413_v58, -inf }
 0x140   :  { %v520_v33 = vpop.permute.xlu1 %519  ;;  %v516_v30 = vpop.permute.xlu0 %515  ;;  %v603_v12 = vadd.f32 %v602_v14, %v601_v18  ;;  %v470_v11 = vsel %vm239_vm7, %v412_v29, -inf  ;;  %v595_v23 = vrot.slane %v594_v50, 4  ;;  %v442_v43 = vmax.f32 %v440_v26, %v441_v34 }
 0x141   :  { %v581_v32 = vmul.f32 %v520_v33, %v4976_v60  ;;  %v580_v35 = vmul.f32 %v516_v30, %v4978_v61  ;;  %v423_v60 = vrot.slane %v422_v48, 1  ;;  %v432_v61 = vrot.slane %v431_v19, 1 }
 0x142   :  { %v604_v3 = vrot.slane %v603_v12, 4  ;;  %v456_v24 = vmax.f32 %v454_v52, %v455_v57  ;;  %v464_v29 = vrot.slane %v463_v42, 4 }
 0x143   :  { %v611_v2 = vsel %vm239_vm7, %v581_v32, 0.0  ;;  %v610_v37 = vsel %vm239_vm7, %v580_v35, 0.0  ;;  %v424_v18 = vmax.f32 %v422_v48, %v423_v60  ;;  %v433_v53 = vmax.f32 %v431_v19, %v432_v61 }
 0x144   :  { %v612_v16 = vadd.f32 %v611_v2, %v610_v37  ;;  %v531_v59 = vpop.permute.xlu1 %530  ;;  %v527_v62 = vpop.permute.xlu0 %526  ;;  %v449_v35 = vmax.f32 %v447_v31, %v448_v0  ;;  %v605_v2 = vadd.f32 %v604_v3, %v603_v12  ;;  %v472_v37 = vmax.f32 %v470_v11, %v471_v4 }
 0x145   :  { %v583_v63 = vmul.f32 %v531_v59, %v4984_v6  ;;  %v582_v44 = vmul.f32 %v527_v62, %v4986_v10  ;;  %v596_v62 = vadd.f32 %v595_v23, %v594_v50  ;;  %v457_v19 = vrot.slane %v456_v24, 2 }
 0x146   :  { %v613_v20 = vrot.slane %v612_v16, 4  ;;  %v863_v12 = vsel %vm840_vm8, %v433_v53, %v424_v18  ;;  %v450_v57 = vrot.slane %v449_v35, 1  ;;  %v606_v0 = vrot.slane %v605_v2, 2 }
 0x147   :  { %v620_v49 = vsel %vm239_vm7, %v583_v63, 0.0  ;;  %v619_v14 = vsel %vm239_vm7, %v582_v44, 0.0  ;;  %v465_v34 = vmax.f32 %v463_v42, %v464_v29  ;;  %v473_v50 = vrot.slane %v472_v37, 4 }
 0x148   :  { %v621_v33 = vadd.f32 %v620_v49, %v619_v14  ;;  %v542_v30 = vpop.permute.xlu1 %541  ;;  %v538_v32 = vpop.permute.xlu0 %537  ;;  %v614_v63 = vadd.f32 %v613_v20, %v612_v16  ;;  %v5121_v4 = vsel %vm842_vm9, %v442_v43, %v863_v12  ;;  %v597_v11 = vrot.slane %v596_v62, 2 }
 0x149   :  { %v585_v5 = vmul.f32 %v542_v30, %v4992_v27  ;;  %v584_v58 = vmul.f32 %v538_v32, %v4994_v28  ;;  %v5125_v14 = vmax.f32 %v456_v24, %v457_v19  ;;  %v607_v42 = vadd.f32 %v606_v0, %v605_v2 }
 0x14a   :  { %v622_v59 = vrot.slane %v621_v33, 4  ;;  %v615_v23 = vrot.slane %v614_v63, 2  ;;  %v466_v29 = vrot.slane %v465_v34, 2 }
 0x14b   :  { %v629_v44 = vsel %vm239_vm7, %v585_v5, 0.0  ;;  %v628_v48 = vsel %vm239_vm7, %v584_v58, 0.0  ;;  %v451_v5 = vmax.f32 %v449_v35, %v450_v57 }
 0x14c   :  { %v623_v52 = vadd.f32 %v622_v59, %v621_v33  ;;  %v630_v60 = vadd.f32 %v629_v44, %v628_v48  ;;  %v553_v61 = vpop.permute.xlu1 %552  ;;  %v549_v31 = vpop.permute.xlu0 %548  ;;  %v474_v59 = vmax.f32 %v472_v37, %v473_v50 }
 0x14d   :  { %v587_v26 = vmul.f32 %v553_v61, %v5006_v45  ;;  %v586_v3 = vmul.f32 %v549_v31, %v5008_v46  ;;  %v598_v61 = vadd.f32 %v597_v11, %v596_v62  ;;  %v616_v31 = vadd.f32 %v615_v23, %v614_v63 }
 0x14e   :  { %v631_v16 = vrot.slane %v630_v60, 4  ;;  %v624_v18 = vrot.slane %v623_v52, 2  ;;  %v475_v62 = vrot.slane %v474_v59, 2 }
 0x14f   :  { %v638_v20 = vsel %vm239_vm7, %v587_v26, 0.0  ;;  %v637_v49 = vsel %vm239_vm7, %v586_v3, 0.0  ;;  %v608_v26 = vrot.slane %v607_v42, 1  ;;  %v599_v23 = vrot.slane %v598_v61, 1 }
 0x150   :  { %v632_v53 = vadd.f32 %v631_v16, %v630_v60  ;;  %v639_v33 = vadd.f32 %v638_v20, %v637_v49  ;;  %v564_v30 = vpop.permute.xlu1 %563  ;;  %v560_v32 = vpop.permute.xlu0 %559  ;;  %v459_v60 = vrot.slane %v5125_v14, 1  ;;  %v625_v12 = vadd.f32 %v624_v18, %v623_v52 }
 0x151   :  { %v589_v58 = vmul.f32 %v564_v30, %v5028_v21  ;;  %v588_v43 = vmul.f32 %v560_v32, %v5030_v22  ;;  %v5134_v16 = vmax.f32 %v465_v34, %v466_v29  ;;  %v617_v20 = vrot.slane %v616_v31, 1 }
 0x152   :  { %v633_v44 = vrot.slane %v632_v53, 2  ;;  %v640_v48 = vrot.slane %v639_v33, 4  ;;  %v626_v18 = vrot.slane %v625_v12, 1 }
 0x153   :  { %v647_v24 = vsel %vm239_vm7, %v589_v58, 0.0  ;;  %v646_v19 = vsel %vm239_vm7, %v588_v43, 0.0  ;;  %v609_v43 = vadd.f32 %v608_v26, %v607_v42  ;;  %v468_v26 = vrot.slane %v5134_v16, 1 }
 0x154   :  { %v641_v35 = vadd.f32 %v640_v48, %v639_v33  ;;  %v648_v2 = vadd.f32 %v647_v24, %v646_v19  ;;  %v575_v57 = vpop.permute.xlu1 %574  ;;  %v571_v0 = vpop.permute.xlu0 %570  ;;  %v634_v3 = vadd.f32 %v633_v44, %v632_v53  ;;  %v476_v48 = vmax.f32 %v474_v59, %v475_v62 }
 0x155   :  { %v591_v37 = vmul.f32 %v575_v57, %v5044_v51  ;;  %v590_v50 = vmul.f32 %v571_v0, %v5046_v54  ;;  %v600_v0 = vadd.f32 %v599_v23, %v598_v61  ;;  %v865_v61 = vsel %vm844_vm10, %v451_v5, %v5121_v4  ;;  %v5150_v4 = vld [vmem:[#allocation5 + $0x10] sm:$0xff]  ;;  %v5152_v5 = vld [vmem:[#allocation5 + $0x18] sm:$0xff] }
 0x156   :  { %v642_v63 = vrot.slane %v641_v35, 2  ;;  %v649_v11 = vrot.slane %v648_v2, 4  ;;  %v635_v44 = vrot.slane %v634_v3, 1  ;;  %6993 = vst [vmem:[#allocation29_spill] sm:$0xff] %v5152_v5 }
 0x157   :  { %v656_v49 = vsel %vm239_vm7, %v591_v37, 0.0  ;;  %v655_v52 = vsel %vm239_vm7, %v590_v50, 0.0  ;;  %v618_v37 = vadd.f32 %v617_v20, %v616_v31  ;;  %v5146_v20 = vld [vmem:[#allocation5] sm:$0xff] }
 0x158   :  { %v643_v33 = vadd.f32 %v642_v63, %v641_v35  ;;  %v650_v30 = vadd.f32 %v649_v11, %v648_v2  ;;  %v657_v32 = vadd.f32 %v656_v49, %v655_v52  ;;  %v399_v53 = vpop.permute.xlu1 %398  ;;  %v395_v58 = vpop.permute.xlu0 %394  ;;  %v903_v2 = vld [vmem:[#allocation7 + $0x8] sm:$0xff]  ;;  %v627_v63 = vadd.f32 %v626_v18, %v625_v12 }
 0x159   :  { %v415_v34 = vmul.f32 %v399_v53, %v5044_v51  ;;  %v414_v29 = vmul.f32 %v395_v58, %v5046_v54  ;;  %4430 = vmatpush3.msra.mxu0 %v903_v2  ;;  %v665_v52 = vmul.f32 0.0625, %v609_v43  ;;  %v636_v59 = vadd.f32 %v635_v44, %v634_v3  ;;  %v5148_v18 = vld [vmem:[#allocation5 + $0x8] sm:$0xff]  ;;  %v902_v3 = vld [vmem:[#allocation7] sm:$0xff] }
 0x15a   :  { %v644_v24 = vrot.slane %v643_v33, 1  ;;  %v651_v19 = vrot.slane %v650_v30, 2  ;;  %v658_v57 = vrot.slane %v657_v32, 4  ;;  %4431 = vmatprep.subr.mxu0 %v6862_v1  ;;  %v477_v53 = vrot.slane %v476_v48, 1  ;;  %v5166_v2 = vld [vmem:[#allocation5 + $0x28] sm:$0xff] }
 0x15b   :  { %v480_v50 = vsel %vm239_vm7, %v415_v34, -inf  ;;  %v479_v35 = vsel %vm239_vm7, %v414_v29, -inf  ;;  %v667_v58 = vmul.f32 0.0625, %v627_v63  ;;  %4432 = vmatpush3.msra.mxu0 %v902_v3  ;;  %v668_v29 = vmul.f32 0.0625, %v636_v59  ;;  %6995 = vst [vmem:[#allocation31_spill] sm:$0xff] %v5166_v2 }
 0x15c   :  { %v652_v11 = vadd.f32 %v651_v19, %v650_v30  ;;  %v659_v49 = vadd.f32 %v658_v57, %v657_v32  ;;  %v481_v42 = vmax.f32 %v479_v35, %v480_v50  ;;  %v645_v31 = vadd.f32 %v644_v24, %v643_v33  ;;  %v5164_v35 = vld [vmem:[#allocation5 + $0x20] sm:$0xff] }
 0x15d   :  { %v664_v30 = vmul.f32 0.0625, %v600_v0  ;;  %v666_v32 = vmul.f32 0.0625, %v618_v37  ;;  %v460_v33 = vmax.f32 %v5125_v14, %v459_v60  ;;  %v752_v24 = vsel %vm239_vm7, %v5146_v20, 0.0  ;;  %6994 = vst [vmem:[#allocation30_spill] sm:$0xff] %v5164_v35 }
 0x15e   :  { %v653_v62 = vrot.slane %v652_v11, 1  ;;  %v660_v23 = vrot.slane %v659_v49, 2  ;;  %v482_v12 = vrot.slane %v481_v42, 4  ;;  %v753_v19 = vsel %vm239_vm7, %v5148_v18, 0.0 }
 0x15f   :  { %v669_v37 = vmul.f32 0.0625, %v645_v31  ;;  %v881_v50 = vsel %vm840_vm8, %v665_v52, %v664_v30  ;;  %v761_v63 = vsel %vm239_vm7, %v5150_v4, 0.0  ;;  %v469_v52 = vmax.f32 %v5134_v16, %v468_v26  ;;  %v5177_v31 = vld [vmem:[#allocation5 + $0x30] sm:$0xff] }
 0x160   :  { %v483_v43 = vmax.f32 %v481_v42, %v482_v12  ;;  %v654_v44 = vadd.f32 %v653_v62, %v652_v11  ;;  %v661_v34 = vadd.f32 %v660_v23, %v659_v49  ;;  %v882_v60 = vsel %vm842_vm9, %v666_v32, %v881_v50  ;;  %6996 = vst [vmem:[#allocation32_spill] sm:$0xff] %v5177_v31  ;;  %v5179_v62 = vld [vmem:[#allocation5 + $0x38] sm:$0xff] }
 0x161   :  { %v762_v11 = vsel %vm239_vm7, %v5152_v5, 0.0  ;;  %v883_v42 = vsel %vm844_vm10, %v667_v58, %v882_v60  ;;  %v478_v59 = vmax.f32 %v476_v48, %v477_v53  ;;  %6997 = vst [vmem:[#allocation33_spill] sm:$0xff] %v5179_v62  ;;  %v770_v30 = vsel %vm239_vm7, %v5164_v35, 0.0 }
 0x162   :  { %v484_v57 = vrot.slane %v483_v43, 2  ;;  %v662_v0 = vrot.slane %v661_v34, 1  ;;  %v670_v14 = vmul.f32 0.0625, %v654_v44  ;;  %v884_v23 = vsel %vm846_vm11, %v668_v29, %v883_v42 }
 0x163   :  { %v771_v32 = vsel %vm239_vm7, %v5166_v2, 0.0  ;;  %v885_v44 = vsel %vm848_vm12, %v669_v37, %v884_v23  ;;  %v754_v58 = vadd.f32 %v753_v19, %v752_v24  ;;  %v779_v26 = vsel %vm239_vm7, %v5177_v31, 0.0 }
 0x164   :  { %v663_v49 = vadd.f32 %v662_v0, %v661_v34  ;;  %v485_v12 = vmax.f32 %v483_v43, %v484_v57  ;;  %v763_v34 = vadd.f32 %v762_v11, %v761_v63  ;;  %v886_v16 = vsel %vm850_vm14, %v670_v14, %v885_v44 }
 0x165   :  { %v780_v53 = vsel %vm239_vm7, %v5179_v62, 0.0  ;;  %v731_v43 = vrot.slane %v5077_v36, 2  ;;  %v866_v57 = vsel %vm846_vm11, %v460_v33, %v865_v61  ;;  %v772_v0 = vadd.f32 %v771_v32, %v770_v30 }
 0x166   :  { %v671_v3 = vmul.f32 0.0625, %v663_v49  ;;  %v486_v48 = vrot.slane %v485_v12, 1  ;;  %v707_v24 = vadd.f32 %v706_v55, %v5060_v25  ;;  %v715_v19 = vrot.slane %v5075_v41, 1  ;;  %v5208_v49 = vld [vmem:[#allocation5 + $0x40] sm:$0xff] }
 0x167   :  { %v867_v50 = vsel %vm848_vm12, %v469_v52, %v866_v57  ;;  %v755_v60 = vrot.slane %v754_v58, 4  ;;  %v764_v63 = vrot.slane %v763_v34, 4  ;;  %v781_v11 = vadd.f32 %v780_v53, %v779_v26  ;;  %6999 = vst [vmem:[#allocation35_spill] sm:$0xff] %v5208_v49 }
 0x168   :  { %v887_v29 = vsel %vm852_vm13, %v671_v3, %v886_v16  ;;  %v487_v37 = vmax.f32 %v485_v12, %v486_v48  ;;  %v868_v14 = vsel %vm850_vm14, %v478_v59, %v867_v50  ;;  %v5203_v61 = vmul.f32 0.0625, %v5072_v40  ;;  %v5216_v59 = vld [vmem:[#allocation5 + $0x48] sm:$0xff] }
 0x169   :  { %888 = vrot.lane.b32.xlu1 %v887_v29, %s4821_s2  ;;  %v724_v33 = vrot.slane %v5087_v47, 1  ;;  %v740_v25 = vrot.slane %v5089_v56, 2  ;;  %v732_v42 = vadd.f32 %v731_v43, %v5077_v36  ;;  %v3472_v52 = vmul.f32 %v5063_v38, %v5063_v38  ;;  %7000 = vst [vmem:[#allocation36_spill] sm:$0xff] %v5216_v59 }
 0x16a   :  { %6998 = vst [vmem:[#allocation34_spill] sm:$0xff] %v5203_v61  ;;  %v869_v55 = vsel %vm852_vm13, %v487_v37, %v868_v14  ;;  %v3473_v40 = vmul.f32 %v5065_v39, %v5065_v39  ;;  %v773_v23 = vrot.slane %v772_v0, 4  ;;  %v716_v12 = vadd.f32 %v715_v19, %v5075_v41 }
 0x16b   :  { %870 = vrot.lane.b32.xlu0 %v869_v55, %s4822_s3  ;;  %v782_v30 = vrot.slane %v781_v11, 4  ;;  %v5219_v32 = vmul.f32 0.0625, %v707_v24  ;;  %v756_v3 = vadd.f32 %v755_v60, %v754_v58  ;;  %v765_v44 = vadd.f32 %v764_v63, %v763_v34 }
 0x16c   :  { %v788_v36 = vsel %vm239_vm7, %v5208_v49, 0.0  ;;  %v725_v16 = vadd.f32 %v724_v33, %v5087_v47  ;;  %v741_v48 = vadd.f32 %v740_v25, %v5089_v56  ;;  %v3474_v26 = vmul.f32 %v5203_v61, %v5203_v61 }
 0x16d   :  { %7001 = vst [vmem:[#allocation37_spill] sm:$0xff] %v5219_v32  ;;  %v789_v53 = vsel %vm239_vm7, %v5216_v59, 0.0  ;;  %v733_v43 = vrot.slane %v732_v42, 1  ;;  %v3488_v41 = vsel %vm840_vm8, %v3473_v40, %v3472_v52  ;;  %v774_v29 = vadd.f32 %v773_v23, %v772_v0  ;;  %v5240_v23 = vld [vmem:[#allocation5 + $0x50] sm:$0xff]  ;;  %v4640_v59 = vld [vmem:[#allocation2 + $0x20] sm:$0xff] }
 0x16e   :  { %v783_v57 = vadd.f32 %v782_v30, %v781_v11  ;;  %v5230_v58 = vmul.f32 0.0625, %v716_v12  ;;  %v790_v34 = vadd.f32 %v789_v53, %v788_v36  ;;  %v3475_v24 = vmul.f32 %v5219_v32, %v5219_v32  ;;  %7004 = vst [vmem:[#allocation40_spill] sm:$0xff] %v5240_v23  ;;  %v5246_v36 = vld [vmem:[#allocation5 + $0x58] sm:$0xff] }
 0x16f   :  { %v757_v47 = vrot.slane %v756_v3, 2  ;;  %v766_v19 = vrot.slane %v765_v44, 2  ;;  %v742_v56 = vrot.slane %v741_v48, 1  ;;  %v3489_v37 = vsel %vm842_vm9, %v3474_v26, %v3488_v41  ;;  %7006 = vst [vmem:[#allocation42_spill] sm:$0xff] %v5246_v36  ;;  %v5249_v41 = vld [vmem:[#allocation5 + $0x60] sm:$0xff] }
 0x170   :  { %7002 = vst [vmem:[#allocation38_spill] sm:$0xff] %v5230_v58  ;;  %v791_v50 = vrot.slane %v790_v34, 4  ;;  %v734_v14 = vadd.f32 %v733_v43, %v732_v42  ;;  %v5235_v60 = vmul.f32 0.0625, %v725_v16  ;;  %v775_v63 = vrot.slane %v774_v29, 2  ;;  %7007 = vst [vmem:[#allocation43_spill] sm:$0xff] %v5249_v41 }
 0x171   :  { %v784_v33 = vrot.slane %v783_v57, 2  ;;  %v3476_v0 = vmul.f32 %v5230_v58, %v5230_v58  ;;  %v3490_v25 = vsel %vm844_vm10, %v3475_v24, %v3489_v37  ;;  %v758_v55 = vadd.f32 %v757_v47, %v756_v3  ;;  %v5251_v3 = vld [vmem:[#allocation5 + $0x68] sm:$0xff] }
 0x172   :  { %7003 = vst [vmem:[#allocation39_spill] sm:$0xff] %v5235_v60  ;;  %v792_v11 = vadd.f32 %v791_v50, %v790_v34  ;;  %v767_v52 = vadd.f32 %v766_v19, %v765_v44  ;;  %v743_v40 = vadd.f32 %v742_v56, %v741_v48  ;;  %v5242_v30 = vmul.f32 0.0625, %v734_v14  ;;  %7008 = vst [vmem:[#allocation44_spill] sm:$0xff] %v5251_v3  ;;  %v5262_v19 = vld [vmem:[#allocation5 + $0x70] sm:$0xff]  ;;  %v5264_v56 = vld [vmem:[#allocation5 + $0x78] sm:$0xff] }
 0x173   :  { %v3477_v42 = vmul.f32 %v5235_v60, %v5235_v60  ;;  %v776_v16 = vadd.f32 %v775_v63, %v774_v29  ;;  %v785_v26 = vadd.f32 %v784_v33, %v783_v57  ;;  %v3491_v53 = vsel %vm846_vm11, %v3476_v0, %v3490_v25  ;;  %7010 = vst [vmem:[#allocation46_spill] sm:$0xff] %v5262_v19 }
 0x174   :  { %v793_v12 = vrot.slane %v792_v11, 2  ;;  %7005 = vst [vmem:[#allocation41_spill] sm:$0xff] %v5242_v30  ;;  %v759_v44 = vrot.slane %v758_v55, 1  ;;  %v768_v48 = vrot.slane %v767_v52, 1  ;;  %v797_v34 = vsel %vm239_vm7, %v5240_v23, 0.0  ;;  %7011 = vst [vmem:[#allocation47_spill] sm:$0xff] %v5264_v56 }
 0x175   :  { %v5255_v24 = vmul.f32 0.0625, %v743_v40  ;;  %v798_v47 = vsel %vm239_vm7, %v5246_v36, 0.0  ;;  %v3478_v29 = vmul.f32 %v5242_v30, %v5242_v30  ;;  %v3492_v57 = vsel %vm848_vm12, %v3477_v42, %v3491_v53  ;;  %v4639_v36 = vld [vmem:[#allocation2 + $0x28] sm:$0xff] }
 0x176   :  { %v794_v43 = vadd.f32 %v793_v12, %v792_v11  ;;  %v777_v37 = vrot.slane %v776_v16, 1  ;;  %v786_v50 = vrot.slane %v785_v26, 1  ;;  %v799_v63 = vadd.f32 %v798_v47, %v797_v34 }
 0x177   :  { %7009 = vst [vmem:[#allocation45_spill] sm:$0xff] %v5255_v24  ;;  %v806_v33 = vsel %vm239_vm7, %v5249_v41, 0.0  ;;  %v807_v0 = vsel %vm239_vm7, %v5251_v3, 0.0  ;;  %v760_v11 = vadd.f32 %v759_v44, %v758_v55  ;;  %v769_v25 = vadd.f32 %v768_v48, %v767_v52 }
 0x178   :  { %v795_v14 = vrot.slane %v794_v43, 1  ;;  %v800_v40 = vrot.slane %v799_v63, 4  ;;  %v808_v12 = vadd.f32 %v807_v0, %v806_v33  ;;  %v815_v42 = vsel %vm239_vm7, %v5262_v19, 0.0 }
 0x179   :  { %v816_v53 = vsel %vm239_vm7, %v5264_v56, 0.0  ;;  %v3479_v1 = vmul.f32 %v5255_v24, %v5255_v24  ;;  %v3493_v34 = vsel %vm850_vm14, %v3478_v29, %v3492_v57  ;;  %v778_v47 = vadd.f32 %v777_v37, %v776_v16 }
 0x17a   :  { %v817_v17 = vadd.f32 %v816_v53, %v815_v42  ;;  %v787_v8 = vadd.f32 %v786_v50, %v785_v26  ;;  %v796_v41 = vadd.f32 %v795_v14, %v794_v43  ;;  %v801_v23 = vadd.f32 %v800_v40, %v799_v63 }
 0x17b   :  { %v809_v55 = vrot.slane %v808_v12, 4  ;;  %v5277_v44 = vmul.f32 0.0625, %v760_v11  ;;  %v5279_v0 = vmul.f32 0.0625, %v769_v25  ;;  %v3494_v19 = vsel %vm852_vm13, %v3479_v1, %v3493_v34 }
 0x17c   :  { %v818_v52 = vrot.slane %v817_v17, 4  ;;  %v802_v48 = vrot.slane %v801_v23, 2  ;;  %v5282_v56 = vmul.f32 0.0625, %v778_v47  ;;  %v5284_v16 = vmul.f32 0.0625, %v787_v8 }
 0x17d   :  { %7012 = vst [vmem:[#allocation48_spill] sm:$0xff] %v5277_v44  ;;  %v810_v33 = vadd.f32 %v809_v55, %v808_v12  ;;  %7013 = vst [vmem:[#allocation49_spill] sm:$0xff] %v5279_v0  ;;  %v5286_v26 = vmul.f32 0.0625, %v796_v41  ;;  %v3525_v57 = vmul.f32 %v5277_v44, %v5277_v44  ;;  %v3526_v14 = vmul.f32 %v5279_v0, %v5279_v0  ;;  %v145_v55 = vpop.permute.xlu1 %144 }
 0x17e   :  { %v819_v31 = vadd.f32 %v818_v52, %v817_v17  ;;  %7014 = vst [vmem:[#allocation50_spill] sm:$0xff] %v5282_v56  ;;  %v803_v3 = vadd.f32 %v802_v48, %v801_v23  ;;  %7015 = vst [vmem:[#allocation51_spill] sm:$0xff] %v5284_v16  ;;  %v3496_v1 = vsel %vm239_vm7, %v3494_v19, 0.0  ;;  %v3527_v23 = vmul.f32 %v5282_v56, %v5282_v56  ;;  %v141_v52 = vpop.permute.xlu0 %140 }
 0x17f   :  { %v811_v29 = vrot.slane %v810_v33, 2  ;;  %7016 = vst [vmem:[#allocation52_spill] sm:$0xff] %v5286_v26  ;;  %v3528_v41 = vmul.f32 %v5284_v16, %v5284_v16  ;;  %v3529_v11 = vmul.f32 %v5286_v26, %v5286_v26  ;;  %v3541_v40 = vsel %vm840_vm8, %v3526_v14, %v3525_v57 }
 0x180   :  { %v820_v43 = vrot.slane %v819_v31, 2  ;;  %v804_v37 = vrot.slane %v803_v3, 1 }
 0x181   :  { %v812_v50 = vadd.f32 %v811_v29, %v810_v33  ;;  %v156_v14 = vpop.permute.xlu1 %155 }
 0x182   :  { %v821_v17 = vadd.f32 %v820_v43, %v819_v31  ;;  %v805_v63 = vadd.f32 %v804_v37, %v803_v3  ;;  %v3542_v31 = vsel %vm842_vm9, %v3527_v23, %v3541_v40 }
 0x183   :  { %v813_v8 = vrot.slane %v812_v50, 1  ;;  %v3543_v53 = vsel %vm844_vm10, %v3528_v41, %v3542_v31 }
 0x184   :  { %v822_v25 = vrot.slane %v821_v17, 1  ;;  %v5300_v42 = vmul.f32 0.0625, %v805_v63  ;;  %v3544_v47 = vsel %vm846_vm11, %v3529_v11, %v3543_v53  ;;  %v5322_v63 = vld [vmem:[%s6848_s5] sm:$0x7]  ;;  %s4824_s5 = smov 96  }
 0x185   :  { %v814_v12 = vadd.f32 %v813_v8, %v812_v50  ;;  %v1914_v8 = vrot.slane %v5322_v63, %v4912_v13 }
 0x186   :  { %7017 = vst [vmem:[#allocation53_spill] sm:$0xff] %v5300_v42  ;;  %v823_v19 = vadd.f32 %v822_v25, %v821_v17  ;;  %v3530_v34 = vmul.f32 %v5300_v42, %v5300_v42  ;;  %v167_v17 = vpop.permute.xlu1 %166  ;;  %v5328_v25 = vrot.slane %v5322_v63, %v4906_v9 }
 0x187   :  { %v5304_v3 = vmul.f32 0.0625, %v814_v12  ;;  %v228_v62 = vmul.f32 %v4639_v36, %v167_v17 }
 0x188   :  { %v5309_v48 = vmul.f32 0.0625, %v823_v19  ;;  %v3545_v29 = vsel %vm848_vm12, %v3530_v34, %v3544_v47  ;;  %v4635_v47 = vld [vmem:[#allocation2 + $0x8] sm:$0xff] }
 0x189   :  { %7018 = vst [vmem:[#allocation54_spill] sm:$0xff] %v5304_v3  ;;  %v3531_v33 = vmul.f32 %v5304_v3, %v5304_v3 }
 0x18a   :  { %3497 = vadd.xlane.f32.xlu0 %v3496_v1  ;;  %7019 = vst [vmem:[#allocation55_spill] sm:$0xff] %v5309_v48  ;;  %v3532_v43 = vmul.f32 %v5309_v48, %v5309_v48  ;;  %v152_v1 = vpop.permute.xlu0 %151  ;;  %v178_v41 = vpop.permute.xlu1 %177 }
 0x18b   :  { %v3546_v57 = vsel %vm850_vm14, %v3531_v33, %v3545_v29  ;;  %v224_v33 = vmul.f32 %v4635_v47, %v145_v55  ;;  %v4636_v29 = vld [vmem:[#allocation2] sm:$0xff] }
 0x18c   :  { %v3547_v37 = vsel %vm852_vm13, %v3532_v43, %v3546_v57  ;;  %v223_v43 = vmul.f32 %v4636_v29, %v141_v52  ;;  %v4637_v57 = vld [vmem:[#allocation2 + $0x18] sm:$0xff] }
 0x18d   :  { %v3549_v50 = vsel %vm239_vm7, %v3547_v37, 0.0  ;;  %v226_v37 = vmul.f32 %v4637_v57, %v156_v14  ;;  %v241_v5 = vsel %vm239_vm7, %v224_v33, -inf }
 0x18e   :  { %3550 = vadd.xlane.f32.xlu1 %v3549_v50  ;;  %v163_v23 = vpop.permute.xlu0 %162  ;;  %v189_v40 = vpop.permute.xlu1 %188  ;;  %v4638_v50 = vld [vmem:[#allocation2 + $0x10] sm:$0xff]  ;;  %v240_v35 = vsel %vm239_vm7, %v223_v43, -inf }
 0x18f   :  { %v225_v13 = vmul.f32 %v4638_v50, %v152_v1  ;;  %v227_v2 = vmul.f32 %v4640_v59, %v163_v23  ;;  %v232_v55 = vmul.f32 %v189_v40, %v4992_v27  ;;  %v250_v1 = vsel %vm239_vm7, %v226_v37, -inf }
 0x191   :  { %v249_v36 = vsel %vm239_vm7, %v225_v13, -inf  ;;  %v258_v17 = vsel %vm239_vm7, %v227_v2, -inf }
 0x192   :  { %v174_v11 = vpop.permute.xlu0 %173  ;;  %v200_v31 = vpop.permute.xlu1 %199  ;;  %v251_v40 = vmax.f32 %v249_v36, %v250_v1 }
 0x193   :  { %v229_v49 = vmul.f32 %v174_v11, %v4986_v10  ;;  %v234_v59 = vmul.f32 %v200_v31, %v5006_v45  ;;  %v259_v10 = vsel %vm239_vm7, %v228_v62, -inf  ;;  %v277_v45 = vsel %vm239_vm7, %v232_v55, -inf }
 0x194   :  { %v260_v62 = vmax.f32 %v258_v17, %v259_v10 }
 0x195   :  { %v286_v2 = vsel %vm239_vm7, %v234_v59, -inf }
 0x196   :  { %v185_v12 = vpop.permute.xlu0 %184  ;;  %v211_v53 = vpop.permute.xlu1 %210  ;;  %v261_v33 = vrot.slane %v260_v62, 4 }
 0x197   :  { %v231_v52 = vmul.f32 %v185_v12, %v4994_v28  ;;  %v236_v23 = vmul.f32 %v211_v53, %v5028_v21  ;;  %v242_v12 = vmax.f32 %v240_v35, %v241_v5  ;;  %v252_v53 = vrot.slane %v251_v40, 4 }
 0x198   :  { %v262_v35 = vmax.f32 %v260_v62, %v261_v33 }
 0x199   :  { %v295_v31 = vsel %vm239_vm7, %v236_v23, -inf  ;;  %v243_v43 = vrot.slane %v242_v12, 4 }
 0x19a   :  { %v196_v19 = vpop.permute.xlu0 %195  ;;  %v222_v47 = vpop.permute.xlu1 %221 }
 0x19b   :  { %v238_v11 = vmul.f32 %v222_v47, %v5044_v51 }
 0x19d   :  { %v304_v51 = vsel %vm239_vm7, %v238_v11, -inf }
 0x19e   :  { %v207_v34 = vpop.permute.xlu0 %206 }
 0x19f   :  { %1917 = vbcast.lane.b32.xlu1 %v1914_v8, 256  ;;  %v235_v27 = vmul.f32 %v207_v34, %v5030_v22 }
 0x1a0   :  { %1921 = vbcast.lane.b32.xlu0 %v1914_v8, 264  ;;  %v230_v8 = vmul.f32 %v178_v41, %v4984_v6  ;;  %v233_v6 = vmul.f32 %v196_v19, %v5008_v46  ;;  %v267_v41 = vsel %vm239_vm7, %v229_v49, -inf  ;;  %v276_v46 = vsel %vm239_vm7, %v231_v52, -inf }
 0x1a1   :  { %v294_v49 = vsel %vm239_vm7, %v235_v27, -inf  ;;  %v278_v19 = vmax.f32 %v276_v46, %v277_v45  ;;  %v244_v52 = vmax.f32 %v242_v12, %v243_v43 }
 0x1a2   :  { %v218_v14 = vpop.permute.xlu0 %217  ;;  %v268_v28 = vsel %vm239_vm7, %v230_v8, -inf  ;;  %v285_v21 = vsel %vm239_vm7, %v233_v6, -inf  ;;  %v296_v29 = vmax.f32 %v294_v49, %v295_v31  ;;  %v253_v8 = vmax.f32 %v251_v40, %v252_v53 }
 0x1a3   :  { %v237_v13 = vmul.f32 %v218_v14, %v5046_v54  ;;  %v269_v22 = vmax.f32 %v267_v41, %v268_v28  ;;  %v287_v34 = vmax.f32 %v285_v21, %v286_v2  ;;  %v279_v50 = vrot.slane %v278_v19, 4 }
 0x1a4   :  { %1152 = vbcast.lane.b32.xlu0 %v5328_v25, 264  ;;  %v297_v55 = vrot.slane %v296_v29, 4  ;;  %v254_v36 = vrot.slane %v253_v8, 2  ;;  %v263_v6 = vrot.slane %v262_v35, 2  ;;  %v245_v17 = vrot.slane %v244_v52, 2 }
 0x1a5   :  { %v303_v54 = vsel %vm239_vm7, %v237_v13, -inf  ;;  %v270_v57 = vrot.slane %v269_v22, 4  ;;  %v288_v5 = vrot.slane %v287_v34, 4  ;;  %v280_v1 = vmax.f32 %v278_v19, %v279_v50 }
 0x1a6   :  { %v305_v37 = vmax.f32 %v303_v54, %v304_v51  ;;  %v298_v10 = vmax.f32 %v296_v29, %v297_v55  ;;  %v255_v41 = vmax.f32 %v253_v8, %v254_v36  ;;  %v264_v13 = vmax.f32 %v262_v35, %v263_v6 }
 0x1a7   :  { %v271_v47 = vmax.f32 %v269_v22, %v270_v57  ;;  %v289_v59 = vmax.f32 %v287_v34, %v288_v5  ;;  %v281_v28 = vrot.slane %v280_v1, 2  ;;  %v246_v40 = vmax.f32 %v244_v52, %v245_v17 }
 0x1a8   :  { %v306_v14 = vrot.slane %v305_v37, 4  ;;  %v299_v45 = vrot.slane %v298_v10, 2  ;;  %v256_v21 = vrot.slane %v255_v41, 1  ;;  %v265_v22 = vrot.slane %v264_v13, 1 }
 0x1a9   :  { %v272_v23 = vrot.slane %v271_v47, 2  ;;  %v290_v11 = vrot.slane %v289_v59, 2  ;;  %v282_v2 = vmax.f32 %v280_v1, %v281_v28  ;;  %v247_v49 = vrot.slane %v246_v40, 1 }
 0x1aa   :  { %v307_v27 = vmax.f32 %v305_v37, %v306_v14  ;;  %v300_v31 = vmax.f32 %v298_v10, %v299_v45  ;;  %v257_v53 = vmax.f32 %v255_v41, %v256_v21  ;;  %v266_v33 = vmax.f32 %v264_v13, %v265_v22 }
 0x1ab   :  { %v273_v46 = vmax.f32 %v271_v47, %v272_v23  ;;  %v291_v12 = vmax.f32 %v289_v59, %v290_v11  ;;  %v283_v54 = vrot.slane %v282_v2, 1  ;;  %v248_v43 = vmax.f32 %v246_v40, %v247_v49 }
 0x1ac   :  { %v308_v62 = vrot.slane %v307_v27, 2  ;;  %v301_v29 = vrot.slane %v300_v31, 1  ;;  %v2680_v41 = vrot.slane %v5322_v63, %v4916_v15 }
 0x1ad   :  { %v274_v19 = vrot.slane %v273_v46, 1  ;;  %v292_v34 = vrot.slane %v291_v12, 1  ;;  %v284_v50 = vmax.f32 %v282_v2, %v283_v54  ;;  %v841_v8 = vsel %vm840_vm8, %v257_v53, %v248_v43 }
 0x1ae   :  { %v309_v51 = vmax.f32 %v307_v27, %v308_v62  ;;  %v302_v35 = vmax.f32 %v300_v31, %v301_v29  ;;  %v843_v55 = vsel %vm842_vm9, %v266_v33, %v841_v8  ;;  %2683 = vbcast.lane.b32.xlu1 %v2680_v41, 256 }
 0x1af   :  { %v275_v57 = vmax.f32 %v273_v46, %v274_v19  ;;  %v293_v5 = vmax.f32 %v291_v12, %v292_v34 }
 0x1b0   :  { %v310_v37 = vrot.slane %v309_v51, 1 }
 0x1b1   :  { %v845_v47 = vsel %vm844_vm10, %v275_v57, %v843_v55 }
 0x1b2   :  { %v311_v52 = vmax.f32 %v309_v51, %v310_v37  ;;  %v847_v14 = vsel %vm846_vm11, %v284_v50, %v845_v47  ;;  %2687 = vbcast.lane.b32.xlu1 %v2680_v41, 264 }
 0x1b3   :  { %v849_v1 = vsel %vm848_vm12, %v293_v5, %v847_v14 }
 0x1b4   :  { %v851_v36 = vsel %vm850_vm14, %v302_v35, %v849_v1 }
 0x1b5   :  { %v853_v6 = vsel %vm852_vm13, %v311_v52, %v851_v36 }
 0x1b6   :  { %1148 = vbcast.lane.b32.xlu1 %v5328_v25, 256 }
 0x1db   :  { %v889_v10 = vpop.permute.xlu1 %888 }
 0x1dd   :  { %v871_v59 = vpop.permute.xlu0 %870 }
 0x1de   :  { %v891_v17 = vsel %vm239_vm7, %v853_v6, %v871_v59 }
 0x1df   :  { %v5366_v23 = vsel %vm892_vm0, %v891_v17, %v889_v10 }
 0x1e0   :  { %4434 = vmatmul.mubr.msk.f32.vlgmr.msra.gmra.mxu0 %vm895_vm1, %v5366_v23  ;;  %v894_v27 = vmul.f32 %v5366_v23, %v5366_v23 }
 0x1e2   :  { %v896_v28 = vsel %vm895_vm1, %v894_v27, 0.0 }
 0x1e3   :  { %897 = vadd.xlane.f32.xlu0 %v896_v28 }
 0x213   :  { %v3498_v11 = vpop.xlane.xlu0 %3497 }
 0x214   :  { %v3499_v13 = vmax.f32 %v3498_v11, 1e-16 }
 0x216   :  { %4469 = vrsqrt.f32 %v3499_v13 }
 0x217   :  { %v3551_v45 = vpop.xlane.xlu1 %3550 }
 0x218   :  { %v3552_v40 = vmax.f32 %v3551_v45, 1e-16 }
 0x21a   :  { %4471 = vrsqrt.f32 %v3552_v40 }
 0x223   :  { %v4470_v46 = vpop.eup %4469 }
 0x224   :  { %v3502_v62 = vrot.slane %v4470_v46, 1  ;;  %v3503_v2 = vrot.slane %v4470_v46, 2  ;;  %v3504_v21 = vrot.slane %v4470_v46, 3  ;;  %v3505_v12 = vrot.slane %v4470_v46, 4 }
 0x225   :  { %v3517_v22 = vmul.f32 %v4470_v46, %v5063_v38  ;;  %v3506_v25 = vrot.slane %v4470_v46, 5  ;;  %v3507_v19 = vrot.slane %v4470_v46, 6  ;;  %v3508_v29 = vrot.slane %v4470_v46, 7 }
 0x226   :  { %v3518_v31 = vmul.f32 %v3502_v62, %v5065_v39  ;;  %v3519_v63 = vmul.f32 %v3503_v2, %v5203_v61  ;;  %v3520_v49 = vmul.f32 %v3504_v21, %v5219_v32  ;;  %v3521_v51 = vmul.f32 %v3505_v12, %v5230_v58 }
 0x227   :  { %v4472_v57 = vpop.eup %4471  ;;  %v3522_v37 = vmul.f32 %v3506_v25, %v5235_v60  ;;  %v3523_v50 = vmul.f32 %v3507_v19, %v5242_v30  ;;  %v3524_v21 = vmul.f32 %v3508_v29, %v5255_v24 }
 0x228   :  { %v3586_v54 = vrot.slane %v3518_v31, 7  ;;  %v3588_v53 = vrot.slane %v3519_v63, 6  ;;  %v3590_v34 = vrot.slane %v3520_v49, 5  ;;  %v3592_v5 = vrot.slane %v3521_v51, 4 }
 0x229   :  { %v3555_v35 = vrot.slane %v4472_v57, 1  ;;  %v3556_v55 = vrot.slane %v4472_v57, 2  ;;  %v3557_v52 = vrot.slane %v4472_v57, 3  ;;  %v3558_v47 = vrot.slane %v4472_v57, 4 }
 0x22a   :  { %v3587_v33 = vsel %vm840_vm8, %v3586_v54, %v3517_v22  ;;  %v3559_v14 = vrot.slane %v4472_v57, 5  ;;  %v3560_v1 = vrot.slane %v4472_v57, 6  ;;  %v3561_v36 = vrot.slane %v4472_v57, 7 }
 0x22b   :  { %v3589_v43 = vsel %vm842_vm9, %v3588_v53, %v3587_v33  ;;  %v3570_v59 = vmul.f32 %v4472_v57, %v5277_v44  ;;  %v3571_v6 = vmul.f32 %v3555_v35, %v5279_v0  ;;  %v3572_v10 = vmul.f32 %v3556_v55, %v5282_v56 }
 0x22c   :  { %v3591_v8 = vsel %vm844_vm10, %v3590_v34, %v3589_v43  ;;  %v3573_v17 = vmul.f32 %v3557_v52, %v5284_v16  ;;  %v3574_v27 = vmul.f32 %v3558_v47, %v5286_v26  ;;  %v3575_v28 = vmul.f32 %v3559_v14, %v5300_v42 }
 0x22d   :  { %v3576_v41 = vmul.f32 %v3560_v1, %v5304_v3  ;;  %v3577_v11 = vmul.f32 %v3561_v36, %v5309_v48  ;;  %v3594_v13 = vrot.slane %v3522_v37, 3  ;;  %v3608_v45 = vrot.slane %v3571_v6, 7 }
 0x22e   :  { %v3610_v40 = vrot.slane %v3572_v10, 6  ;;  %v3612_v46 = vrot.slane %v3573_v17, 5  ;;  %v3593_v62 = vsel %vm846_vm11, %v3592_v5, %v3591_v8  ;;  %v3614_v2 = vrot.slane %v3574_v27, 4 }
 0x22f   :  { %v3609_v12 = vsel %vm840_vm8, %v3608_v45, %v3570_v59  ;;  %v3616_v22 = vrot.slane %v3575_v28, 3  ;;  %v3596_v31 = vrot.slane %v3523_v50, 2  ;;  %v3618_v49 = vrot.slane %v3576_v41, 2  ;;  %v5411_v50 = vpop.permute.xlu0 %1921 }
 0x230   :  { %v3611_v63 = vsel %vm842_vm9, %v3610_v40, %v3609_v12  ;;  %v3595_v25 = vsel %vm848_vm12, %v3594_v13, %v3593_v62  ;;  %v3620_v51 = vrot.slane %v3577_v11, 1  ;;  %v3598_v53 = vrot.slane %v3524_v21, 1 }
 0x231   :  { %v3613_v19 = vsel %vm844_vm10, %v3612_v46, %v3611_v63  ;;  %v3597_v33 = vsel %vm850_vm14, %v3596_v31, %v3595_v25  ;;  %v7020_v37 = vmov 0.0   ;;  %v4823_v1 = vmov 1966171168  }
 0x232   :  { %v3615_v54 = vsel %vm846_vm11, %v3614_v2, %v3613_v19  ;;  %v3599_v57 = vsel %vm852_vm13, %v3598_v53, %v3597_v33  ;;  %v991_v36 = vunpack.c.l.s4 %v4823_v1  ;;  %v7024_v1 = vld [vmem:[#allocation29_spill] sm:$0xff] }
 0x233   :  { %v3617_v34 = vsel %vm848_vm12, %v3616_v22, %v3615_v54  ;;  %v5413_v8 = vpop.permute.xlu0 %1152 }
 0x234   :  { %v3619_v29 = vsel %vm850_vm14, %v3618_v49, %v3617_v34  ;;  %v992_v59 = vunpack.c.0.s8 %v991_v36 }
 0x235   :  { %v3621_v43 = vsel %vm852_vm13, %v3620_v51, %v3619_v29 }
 0x236   :  { %4437 = vmatpush3.xpose.msk.msra.mxu1 %vm239_vm7, %v3621_v43  ;;  %v995_v6 = vsub.s32 %v992_v59, %v4901_v7 }
 0x237   :  { %4441 = vmatprep.subr.mxu1 %v7020_v37 }
 0x239   :  { %4439 = vmatmul.mubr.msk.f32.vlgmr.msra.gmra.mxu1 %vm239_vm7, %v3599_v57 }
 0x23a   :  { %4443 = vmatprep.mubr.msk.f32.mxu1 %vm4820_vm15, %v7020_v37 }
 0x26c   :  { %v898_v5 = vpop.xlane.xlu0 %897 }
 0x26d   :  { %v899_v35 = vmax.f32 %v898_v5, 1e-24 }
 0x26f   :  { %4473 = vrsqrt.f32 %v899_v35  ;;  %v5462_v35 = vpop.permute.xlu1 %1917 }
 0x27c   :  { %v4474_v55 = vpop.eup %4473 }
 0x27d   :  { %v5416_v52 = vmul.f32 %v4474_v55, %v5366_v23 }
 0x27f   :  { %7021 = vst [vmem:[#allocation56_spill] sm:$0xff] %v5416_v52  ;;  %v3696_v47 = vmul.f32 %v5416_v52, %v5416_v52 }
 0x281   :  { %v3697_v14 = vsel %vm895_vm1, %v3696_v47, 0.0  ;;  %v7023_v47 = vld [vmem:[#allocation30_spill] sm:$0xff] }
 0x282   :  { %3698 = vadd.xlane.f32.xlu0 %v3697_v14 }
 0x2a0   :  { %v983_v10 = vpop.f32.mrf.mxu0 }
 0x2a1   :  { %v996_v17 = vrot.slane %v983_v10, %v995_v6  ;;  %v989_v13 = vcombine.high %v983_v10, %v983_v10  ;;  %v7025_v10 = vld [vmem:[#allocation35_spill] sm:$0xff] }
 0x2a2   :  { %v4435_v27 = vpop.f32.mrf.mxu0 }
 0x2a3   :  { %v1004_v28 = vcombine.high %v996_v17, %v996_v17  ;;  %v1012_v41 = vrot.slane %v996_v17, %v995_v6  ;;  %v1003_v40 = vrot.slane %v989_v13, %v995_v6  ;;  %v7026_v27 = vld [vmem:[#allocation31_spill] sm:$0xff] }
 0x2a5   :  { %v1026_v11 = vrot.slane %v1004_v28, %v995_v6  ;;  %v1041_v23 = vrot.slane %v1012_v41, %v4906_v9  ;;  %v1034_v46 = vcombine.high %v1012_v41, %v1012_v41  ;;  %v1019_v62 = vrot.slane %v1003_v40, %v995_v6  ;;  %v5471_v41 = vpop.permute.xlu1 %2683 }
 0x2a6   :  { %v1005_v49 = vcombine.high %v1003_v40, %v1003_v40 }
 0x2a7   :  { %v1045_v45 = vrot.slane %v1026_v11, %v4906_v9  ;;  %1823 = vrot.lane.b32.xlu1 %v1041_v23, %s4824_s5  ;;  %v1049_v2 = vrot.slane %v1034_v46, %v4906_v9  ;;  %v1057_v21 = vrot.slane %v1019_v62, %v4906_v9  ;;  %v1078_v12 = vmul.f32 %v1041_v23, %v5146_v20 }
 0x2a8   :  { %v1079_v31 = vmul.f32 %v1041_v23, %v5148_v18  ;;  %v1036_v25 = vcombine.high %v1026_v11, %v1026_v11  ;;  %v1033_v19 = vrot.slane %v1005_v49, %v995_v6  ;;  %v1035_v54 = vcombine.high %v1019_v62, %v1019_v62 }
 0x2a9   :  { %1825 = vrot.lane.b32.xlu0 %v1045_v45, %s4824_s5  ;;  %v1094_v22 = vsel %vm239_vm7, %v1078_v12, 0.0  ;;  %v1080_v5 = vmul.f32 %v1045_v45, %v5150_v4  ;;  %v1082_v14 = vmul.f32 %v1049_v2, %v7023_v47  ;;  %v1081_v36 = vmul.f32 %v1045_v45, %v7024_v1  ;;  %v5476_v46 = vpop.permute.xlu1 %2687 }
 0x2aa   :  { %v1097_v63 = vsel %vm239_vm7, %v1079_v31, 0.0  ;;  %v5439_v51 = vrot.slane %v1036_v25, %v4906_v9  ;;  %v5446_v53 = vrot.slane %v1033_v19, %v4906_v9  ;;  %v5453_v34 = vrot.slane %v1035_v54, %v4906_v9 }
 0x2ab   :  { %2589 = vrot.lane.b32.xlu1 %v1041_v23, %s4821_s2  ;;  %v1100_v55 = vsel %vm239_vm7, %v1080_v5, 0.0  ;;  %v1106_v59 = vsel %vm239_vm7, %v1082_v14, 0.0  ;;  %v1103_v6 = vsel %vm239_vm7, %v1081_v36, 0.0  ;;  %v1086_v17 = vmul.f32 %v1057_v21, %v7025_v10  ;;  %v7027_v23 = vld [vmem:[#allocation36_spill] sm:$0xff] }
 0x2ac   :  { %v1083_v28 = vmul.f32 %v1049_v2, %v7026_v27  ;;  %v1087_v40 = vmul.f32 %v1057_v21, %v7027_v23  ;;  %v1037_v49 = vcombine.high %v1033_v19, %v1033_v19  ;;  %v7031_v19 = vld [vmem:[#allocation47_spill] sm:$0xff] }
 0x2ad   :  { %2591 = vrot.lane.b32.xlu0 %v1045_v45, %s4821_s2  ;;  %v1118_v11 = vsel %vm239_vm7, %v1086_v17, 0.0  ;;  %v5487_v25 = vpop.permute.xlu1 %1148 }
 0x2ae   :  { %v1109_v13 = vsel %vm239_vm7, %v1083_v28, 0.0  ;;  %v1121_v62 = vsel %vm239_vm7, %v1087_v40, 0.0 }
 0x2af   :  { %1827 = vrot.lane.b32.xlu1 %v1049_v2, %s4824_s5 }
 0x2b1   :  { %2593 = vrot.lane.b32.xlu0 %v1049_v2, %s4821_s2  ;;  %v7028_v2 = vld [vmem:[#allocation33_spill] sm:$0xff] }
 0x2b3   :  { %1831 = vrot.lane.b32.xlu1 %v1057_v21, %s4824_s5 }
 0x2b5   :  { %2597 = vrot.lane.b32.xlu0 %v1057_v21, %s4821_s2  ;;  %v7029_v21 = vld [vmem:[#allocation42_spill] sm:$0xff] }
 0x2d4   :  { %1095 = vadd.xlane.f32.xlu0 %v1094_v22  ;;  %v1085_v22 = vmul.f32 %v5439_v51, %v7028_v2 }
 0x2d6   :  { %v1115_v31 = vsel %vm239_vm7, %v1085_v22, 0.0 }
 0x2d7   :  { %1098 = vadd.xlane.f32.xlu1 %v1097_v63  ;;  %v1089_v63 = vmul.f32 %v5446_v53, %v7029_v21 }
 0x2d9   :  { %v1127_v54 = vsel %vm239_vm7, %v1089_v63, 0.0 }
 0x2e8   :  { %1829 = vrot.lane.b32.xlu1 %v5439_v51, %s4824_s5 }
 0x2ea   :  { %2595 = vrot.lane.b32.xlu0 %v5439_v51, %s4821_s2 }
 0x2ec   :  { %1833 = vrot.lane.b32.xlu1 %v5446_v53, %s4824_s5 }
 0x2ee   :  { %2599 = vrot.lane.b32.xlu0 %v5446_v53, %s4821_s2 }
 0x2f0   :  { %1835 = vrot.lane.b32.xlu1 %v5453_v34, %s4824_s5 }
 0x2f2   :  { %2601 = vrot.lane.b32.xlu0 %v5453_v34, %s4821_s2 }
 0x2f9   :  { %v5459_v33 = vpop.f32.mrf.mxu1 }
 0x2fa   :  { %7022 = vst [vmem:[#allocation57_spill] sm:$0xff] %v5459_v33 }
 0x2fb   :  { %v4440_v29 = vpop.f32.mrf.mxu1 }
 0x2fc   :  { %v1069_v29 = vrot.slane %v1037_v49, %v4906_v9 }
 0x2fe   :  { %v1093_v47 = vmul.f32 %v1069_v29, %v7031_v19 }
 0x300   :  { %v1139_v14 = vsel %vm239_vm7, %v1093_v47, 0.0 }
 0x30b   :  { %v3699_v43 = vpop.xlane.xlu0 %3698 }
 0x30c   :  { %v3700_v57 = vmax.f32 %v3699_v43, 1e-16  ;;  %v7030_v43 = vld [vmem:[#allocation44_spill] sm:$0xff] }
 0x30e   :  { %4475 = vrsqrt.f32 %v3700_v57  ;;  %v1091_v57 = vmul.f32 %v5453_v34, %v7030_v43 }
 0x311   :  { %1101 = vadd.xlane.f32.xlu0 %v1100_v55  ;;  %v1133_v55 = vsel %vm239_vm7, %v1091_v57, 0.0 }
 0x314   :  { %1107 = vadd.xlane.f32.xlu1 %v1106_v59 }
 0x315   :  { %1104 = vadd.xlane.f32.xlu0 %v1103_v6 }
 0x318   :  { %1119 = vadd.xlane.f32.xlu1 %v1118_v11 }
 0x319   :  { %1110 = vadd.xlane.f32.xlu0 %v1109_v13  ;;  %v1824_v5 = vpop.permute.xlu1 %1823 }
 0x31a   :  { %v1847_v36 = vmul.f32 %v1824_v5, %v5146_v20 }
 0x31b   :  { %v4476_v45 = vpop.eup %4475  ;;  %v1826_v28 = vpop.permute.xlu0 %1825 }
 0x31c   :  { %v3702_v12 = vmul.f32 %v4476_v45, %v5416_v52  ;;  %v1863_v17 = vsel %vm239_vm7, %v1847_v36, 0.0  ;;  %v1849_v11 = vmul.f32 %v1826_v28, %v5150_v4  ;;  %v1850_v40 = vmul.f32 %v1826_v28, %v7024_v1 }
 0x31d   :  { %1122 = vadd.xlane.f32.xlu0 %v1121_v62  ;;  %v2590_v59 = vpop.permute.xlu1 %2589 }
 0x31e   :  { %4442 = vmatpush3.xpose.msk.msra.mxu1 %vm895_vm1, %v3702_v12  ;;  %v2614_v6 = vmul.f32 %v2590_v59, %v5148_v18  ;;  %v1869_v45 = vsel %vm239_vm7, %v1849_v11, 0.0  ;;  %v1872_v18 = vsel %vm239_vm7, %v1850_v40, 0.0 }
 0x31f   :  { %4446 = vmatprep.subr.mxu1 %v7020_v37  ;;  %v2592_v62 = vpop.permute.xlu0 %2591 }
 0x320   :  { %v2632_v13 = vsel %vm239_vm7, %v2614_v6, 0.0  ;;  %v2616_v2 = vmul.f32 %v2592_v62, %v7024_v1 }
 0x321   :  { %1116 = vadd.xlane.f32.xlu0 %v1115_v31  ;;  %4444 = vmatmul.mubr.msk.f32.vlgmr.msra.gmra.mxu1 %vm895_vm1, %v3702_v12  ;;  %v1828_v20 = vpop.permute.xlu1 %1827 }
 0x322   :  { %4448 = vmatprep.mubr.msk.f32.mxu1 %vm4820_vm15, %v7020_v37  ;;  %v1852_v12 = vmul.f32 %v1828_v20, %v7026_v27  ;;  %v2638_v63 = vsel %vm239_vm7, %v2616_v2, 0.0 }
 0x323   :  { %v2594_v4 = vpop.permute.xlu0 %2593 }
 0x324   :  { %v1878_v22 = vsel %vm239_vm7, %v1852_v12, 0.0  ;;  %v2618_v31 = vmul.f32 %v2594_v4, %v7026_v27 }
 0x325   :  { %1128 = vadd.xlane.f32.xlu0 %v1127_v54  ;;  %v1832_v49 = vpop.permute.xlu1 %1831 }
 0x326   :  { %v1856_v54 = vmul.f32 %v1832_v49, %v7027_v23  ;;  %v2644_v57 = vsel %vm239_vm7, %v2618_v31, 0.0 }
 0x328   :  { %v1890_v1 = vsel %vm239_vm7, %v1856_v54, 0.0 }
 0x329   :  { %1134 = vadd.xlane.f32.xlu0 %v1133_v55  ;;  %1837 = vrot.lane.b32.xlu1 %v1069_v29, %s4824_s5  ;;  %v2598_v55 = vpop.permute.xlu0 %2597 }
 0x32a   :  { %v2622_v47 = vmul.f32 %v2598_v55, %v7027_v23 }
 0x32c   :  { %v2656_v27 = vsel %vm239_vm7, %v2622_v47, 0.0 }
 0x32d   :  { %1140 = vadd.xlane.f32.xlu0 %v1139_v14  ;;  %2603 = vrot.lane.b32.xlu1 %v1069_v29, %s4821_s2  ;;  %v7032_v14 = vld [vmem:[#allocation32_spill] sm:$0xff] }
 0x32e   :  { %v1084_v36 = vmul.f32 %v5439_v51, %v7032_v14  ;;  %v4644_v14 = vld [vmem:[#allocation5 + $0x38] sm:$0xff] }
 0x330   :  { %v1112_v6 = vsel %vm239_vm7, %v1084_v36, 0.0 }
 0x331   :  { %1864 = vadd.xlane.f32.xlu0 %v1863_v17  ;;  %v7033_v17 = vld [vmem:[#allocation40_spill] sm:$0xff] }
 0x332   :  { %v1088_v28 = vmul.f32 %v5446_v53, %v7033_v17  ;;  %v4642_v53 = vld [vmem:[#allocation5] sm:$0xff] }
 0x333   :  { %v2613_v31 = vmul.f32 %v4642_v53, %v2590_v59  ;;  %v1855_v53 = vmul.f32 %v1832_v49, %v7025_v10  ;;  %v4646_v49 = vld [vmem:[#allocation5 + $0x30] sm:$0xff] }
 0x334   :  { %v1124_v11 = vsel %vm239_vm7, %v1088_v28, 0.0 }
 0x335   :  { %2633 = vadd.xlane.f32.xlu0 %v2632_v13  ;;  %v7034_v13 = vld [vmem:[#allocation43_spill] sm:$0xff] }
 0x336   :  { %v1090_v23 = vmul.f32 %v5453_v34, %v7034_v13  ;;  %v4643_v34 = vld [vmem:[#allocation5 + $0x20] sm:$0xff] }
 0x338   :  { %v1130_v40 = vsel %vm239_vm7, %v1090_v23, 0.0 }
 0x339   :  { %1870 = vadd.xlane.f32.xlu0 %v1869_v45  ;;  %v7035_v45 = vld [vmem:[#allocation46_spill] sm:$0xff] }
 0x33a   :  { %v1092_v12 = vmul.f32 %v1069_v29, %v7035_v45  ;;  %v2629_v29 = vsel %vm239_vm7, %v2613_v31, 0.0 }
 0x33c   :  { %v1136_v51 = vsel %vm239_vm7, %v1092_v12, 0.0 }
 0x33d   :  { %1873 = vadd.xlane.f32.xlu0 %v1872_v18  ;;  %v4641_v18 = vld [vmem:[#allocation5 + $0x8] sm:$0xff] }
 0x33e   :  { %v1848_v2 = vmul.f32 %v4641_v18, %v1824_v5 }
 0x340   :  { %v1866_v54 = vsel %vm239_vm7, %v1848_v2, 0.0 }
 0x341   :  { %1879 = vadd.xlane.f32.xlu0 %v1878_v22 }
 0x345   :  { %2639 = vadd.xlane.f32.xlu0 %v2638_v63 }
 0x349   :  { %2645 = vadd.xlane.f32.xlu0 %v2644_v57  ;;  %v1851_v57 = vmul.f32 %v4643_v34, %v1828_v20 }
 0x34d   :  { %1891 = vadd.xlane.f32.xlu0 %v1890_v1 }
 0x351   :  { %2657 = vadd.xlane.f32.xlu0 %v2656_v27  ;;  %1113 = vadd.xlane.f32.xlu1 %v1112_v6  ;;  %v4645_v6 = vld [vmem:[#allocation5 + $0x10] sm:$0xff] }
 0x352   :  { %v2615_v28 = vmul.f32 %v4645_v6, %v2592_v62 }
 0x355   :  { %1125 = vadd.xlane.f32.xlu1 %v1124_v11  ;;  %v1875_v11 = vsel %vm239_vm7, %v1851_v57, 0.0 }
 0x359   :  { %1131 = vadd.xlane.f32.xlu1 %v1130_v40  ;;  %v2617_v40 = vmul.f32 %v4643_v34, %v2594_v4  ;;  %v2621_v34 = vmul.f32 %v2598_v55, %v7025_v10 }
 0x35b   :  { %v2641_v31 = vsel %vm239_vm7, %v2617_v40, 0.0 }
 0x35d   :  { %1137 = vadd.xlane.f32.xlu1 %v1136_v51  ;;  %v5530_v22 = vpop.xlane.xlu0 %1095  ;;  %v2635_v51 = vsel %vm239_vm7, %v2615_v28, 0.0 }
 0x360   :  { %v5532_v63 = vpop.xlane.xlu1 %1098 }
 0x361   :  { %1867 = vadd.xlane.f32.xlu1 %v1866_v54  ;;  %v2596_v47 = vpop.permute.xlu0 %2595 }
 0x362   :  { %v2620_v5 = vmul.f32 %v4644_v14, %v2596_v47  ;;  %v2619_v6 = vmul.f32 %v4646_v49, %v2596_v47 }
 0x364   :  { %v1830_v1 = vpop.permute.xlu1 %1829  ;;  %v2650_v20 = vsel %vm239_vm7, %v2620_v5, 0.0  ;;  %v2647_v28 = vsel %vm239_vm7, %v2619_v6, 0.0 }
 0x365   :  { %v1854_v36 = vmul.f32 %v4644_v14, %v1830_v1  ;;  %2630 = vadd.xlane.f32.xlu1 %v2629_v29  ;;  %v2600_v18 = vpop.permute.xlu0 %2599  ;;  %v1887_v29 = vsel %vm239_vm7, %v1855_v53, 0.0  ;;  %v1853_v5 = vmul.f32 %v4646_v49, %v1830_v1 }
 0x366   :  { %v2624_v54 = vmul.f32 %v2600_v18, %v7029_v21 }
 0x367   :  { %v1884_v27 = vsel %vm239_vm7, %v1854_v36, 0.0  ;;  %v1881_v10 = vsel %vm239_vm7, %v1853_v5, 0.0 }
 0x368   :  { %v1834_v59 = vpop.permute.xlu1 %1833  ;;  %1885 = vadd.xlane.f32.xlu0 %v1884_v27  ;;  %v2662_v36 = vsel %vm239_vm7, %v2624_v54, 0.0  ;;  %v2653_v27 = vsel %vm239_vm7, %v2621_v34, 0.0 }
 0x369   :  { %1876 = vadd.xlane.f32.xlu1 %v1875_v11  ;;  %v1858_v23 = vmul.f32 %v1834_v59, %v7029_v21  ;;  %v2602_v57 = vpop.permute.xlu0 %2601  ;;  %v1857_v55 = vmul.f32 %v1834_v59, %v7033_v17  ;;  %v2623_v11 = vmul.f32 %v2600_v18, %v7033_v17 }
 0x36a   :  { %v2626_v14 = vmul.f32 %v2602_v57, %v7030_v43  ;;  %v2625_v47 = vmul.f32 %v2602_v57, %v7034_v13 }
 0x36b   :  { %v1896_v62 = vsel %vm239_vm7, %v1858_v23, 0.0  ;;  %v1893_v1 = vsel %vm239_vm7, %v1857_v55, 0.0 }
 0x36c   :  { %v1836_v12 = vpop.permute.xlu1 %1835  ;;  %2651 = vadd.xlane.f32.xlu0 %v2650_v20  ;;  %v2668_v21 = vsel %vm239_vm7, %v2626_v14, 0.0  ;;  %v2659_v20 = vsel %vm239_vm7, %v2623_v11, 0.0  ;;  %v2665_v59 = vsel %vm239_vm7, %v2625_v47, 0.0 }
 0x36d   :  { %2636 = vadd.xlane.f32.xlu1 %v2635_v51  ;;  %v1860_v2 = vmul.f32 %v1836_v12, %v7030_v43  ;;  %v1859_v43 = vmul.f32 %v1836_v12, %v7034_v13 }
 0x36f   :  { %v1902_v4 = vsel %vm239_vm7, %v1860_v2, 0.0  ;;  %v1899_v23 = vsel %vm239_vm7, %v1859_v43, 0.0 }
 0x370   :  { %1897 = vadd.xlane.f32.xlu0 %v1896_v62 }
 0x371   :  { %2642 = vadd.xlane.f32.xlu1 %v2641_v31 }
 0x374   :  { %1903 = vadd.xlane.f32.xlu0 %v1902_v4 }
 0x375   :  { %1888 = vadd.xlane.f32.xlu1 %v1887_v29 }
 0x378   :  { %2663 = vadd.xlane.f32.xlu0 %v2662_v36 }
 0x379   :  { %2654 = vadd.xlane.f32.xlu1 %v2653_v27 }
 0x37c   :  { %2669 = vadd.xlane.f32.xlu0 %v2668_v21  ;;  %v1156_v21 = vadd.f32 %v5487_v25, %v5530_v22 }
 0x37d   :  { %1882 = vadd.xlane.f32.xlu1 %v1881_v10 }
 0x381   :  { %2648 = vadd.xlane.f32.xlu1 %v2647_v28 }
 0x385   :  { %1894 = vadd.xlane.f32.xlu1 %v1893_v1 }
 0x389   :  { %1900 = vadd.xlane.f32.xlu1 %v1899_v23 }
 0x38d   :  { %2660 = vadd.xlane.f32.xlu1 %v2659_v20 }
 0x391   :  { %2666 = vadd.xlane.f32.xlu1 %v2665_v59 }
 0x39a   :  { %v5563_v40 = vpop.xlane.xlu0 %1101 }
 0x39d   :  { %v5565_v51 = vpop.xlane.xlu1 %1107 }
 0x39e   :  { %v5567_v12 = vpop.xlane.xlu0 %1104 }
 0x3a1   :  { %v5569_v2 = vpop.xlane.xlu1 %1119 }
 0x3a2   :  { %v5571_v17 = vpop.xlane.xlu0 %1110 }
 0x3a5   :  { %v1838_v18 = vpop.permute.xlu1 %1837 }
 0x3a6   :  { %v5573_v62 = vpop.xlane.xlu0 %1122  ;;  %v1861_v13 = vmul.f32 %v1838_v18, %v7035_v45  ;;  %v1862_v53 = vmul.f32 %v1838_v18, %v7031_v19 }
 0x3a8   :  { %v1908_v31 = vsel %vm239_vm7, %v1862_v53, 0.0  ;;  %v1905_v54 = vsel %vm239_vm7, %v1861_v13, 0.0 }
 0x3a9   :  { %v2604_v4 = vpop.permute.xlu1 %2603  ;;  %1909 = vadd.xlane.f32.xlu0 %v1908_v31  ;;  %1906 = vadd.xlane.f32.xlu1 %v1905_v54 }
 0x3aa   :  { %v5579_v34 = vpop.xlane.xlu0 %1116  ;;  %v2627_v57 = vmul.f32 %v2604_v4, %v7035_v45  ;;  %v2628_v29 = vmul.f32 %v2604_v4, %v7031_v19  ;;  %v1172_v19 = vmax.f32 %v1156_v21, 0.0 }
 0x3ac   :  { %v2674_v14 = vsel %vm239_vm7, %v2628_v29, 0.0  ;;  %v2671_v36 = vsel %vm239_vm7, %v2627_v57, 0.0  ;;  %v5597_v28 = vmul.f32 2.0, %v1172_v19 }
 0x3ad   :  { %2675 = vadd.xlane.f32.xlu0 %v2674_v14  ;;  %2672 = vadd.xlane.f32.xlu1 %v2671_v36 }
 0x3ae   :  { %v5585_v49 = vpop.xlane.xlu0 %1128 }
 0x3b2   :  { %v5587_v5 = vpop.xlane.xlu0 %1134 }
 0x3b6   :  { %v5589_v27 = vpop.xlane.xlu0 %1140 }
 0x3ba   :  { %v1865_v6 = vpop.xlane.xlu0 %1864 }
 0x3bb   :  { %v1925_v45 = vadd.f32 %v5462_v35, %v1865_v6 }
 0x3bd   :  { %v1941_v10 = vmax.f32 %v1925_v45, 0.0 }
 0x3be   :  { %v2634_v43 = vpop.xlane.xlu0 %2633 }
 0x3bf   :  { %v5594_v55 = vmul.f32 2.0, %v1941_v10  ;;  %v2692_v4 = vadd.f32 %v5476_v46, %v2634_v43 }
 0x3c1   :  { %1990 = vperm.xlu1 %4468, %v5594_v55   ;;  %v2708_v21 = vmax.f32 %v2692_v4, 0.0 }
 0x3c2   :  { %v1871_v1 = vpop.xlane.xlu0 %1870 }
 0x3c3   :  { %1221 = vperm.xlu0 %4467, %v5597_v28   ;;  %v1927_v14 = vadd.f32 %v5462_v35, %v1871_v1 }
 0x3c5   :  { %v1943_v37 = vmax.f32 %v1927_v14, 0.0 }
 0x3c6   :  { %v1874_v11 = vpop.xlane.xlu0 %1873 }
 0x3c7   :  { %v1928_v6 = vadd.f32 %v5411_v50, %v1874_v11  ;;  %v5626_v11 = vmul.f32 2.0, %v1943_v37 }
 0x3ca   :  { %v1880_v47 = vpop.xlane.xlu0 %1879 }
 0x3cb   :  { %v1930_v43 = vadd.f32 %v5411_v50, %v1880_v47 }
 0x3ce   :  { %v2640_v13 = vpop.xlane.xlu0 %2639 }
 0x3cf   :  { %v2694_v47 = vadd.f32 %v5476_v46, %v2640_v13 }
 0x3d2   :  { %v2646_v31 = vpop.xlane.xlu0 %2645 }
 0x3d6   :  { %v1892_v19 = vpop.xlane.xlu0 %1891 }
 0x3da   :  { %v5600_v23 = vpop.xlane.xlu1 %1113 }
 0x3de   :  { %v5602_v22 = vpop.xlane.xlu1 %1125 }
 0x3e1   :  { %v5604_v20 = vpop.f32.mrf.mxu1 }
 0x3e2   :  { %v5606_v59 = vpop.xlane.xlu1 %1131 }
 0x3e3   :  { %v4445_v18 = vpop.f32.mrf.mxu1 }
 0x3e6   :  { %v5608_v53 = vpop.xlane.xlu1 %1137 }
 0x3ea   :  { %v1868_v54 = vpop.xlane.xlu1 %1867 }
 0x3eb   :  { %v1926_v57 = vadd.f32 %v5411_v50, %v1868_v54  ;;  %v5619_v54 = vmul.f32 2.0, %v2708_v21 }
 0x3ed   :  { %v1942_v29 = vmax.f32 %v1926_v57, 0.0  ;;  %v1944_v57 = vmax.f32 %v1928_v6, 0.0 }
 0x3ee   :  { %v2631_v36 = vpop.xlane.xlu1 %2630 }
 0x3ef   :  { %v5614_v45 = vmul.f32 2.0, %v1942_v29  ;;  %v2691_v10 = vadd.f32 %v5471_v41, %v2631_v36  ;;  %v1946_v29 = vmax.f32 %v1930_v43, 0.0  ;;  %v2658_v36 = vpop.xlane.xlu0 %2657  ;;  %v5628_v14 = vmul.f32 2.0, %v1944_v57 }
 0x3f0   :  { %v2710_v43 = vmax.f32 %v2694_v47, 0.0 }
 0x3f1   :  { %v2707_v18 = vmax.f32 %v2691_v10, 0.0  ;;  %1993 = vperm.xlu1 %4468, %v5614_v45  }
 0x3f2   :  { %v1877_v24 = vpop.xlane.xlu1 %1876 }
 0x3f3   :  { %v5621_v1 = vmul.f32 2.0, %v2707_v18  ;;  %v1929_v4 = vadd.f32 %v5462_v35, %v1877_v24  ;;  %v5634_v24 = vmul.f32 2.0, %v1946_v29  ;;  %v2696_v18 = vadd.f32 %v5476_v46, %v2646_v31  ;;  %v1886_v37 = vpop.xlane.xlu0 %1885 }
 0x3f4   :  { %v5643_v29 = vmul.f32 2.0, %v2710_v43 }
 0x3f5   :  { %2756 = vperm.xlu0 %4467, %v5621_v1   ;;  %2759 = vperm.xlu1 %4468, %v5619_v54   ;;  %v1945_v21 = vmax.f32 %v1929_v4, 0.0  ;;  %v2712_v13 = vmax.f32 %v2696_v18, 0.0  ;;  %v1934_v4 = vadd.f32 %v5411_v50, %v1892_v19  ;;  %v2700_v18 = vadd.f32 %v5476_v46, %v2658_v36 }
 0x3f6   :  { %v2637_v10 = vpop.xlane.xlu1 %2636 }
 0x3f7   :  { %v2693_v6 = vadd.f32 %v5471_v41, %v2637_v10  ;;  %v5637_v60 = vmul.f32 2.0, %v1945_v21  ;;  %v2652_v21 = vpop.xlane.xlu0 %2651  ;;  %v2716_v38 = vmax.f32 %v2700_v18, 0.0 }
 0x3f9   :  { %1996 = vperm.xlu0 %4467, %v5626_v11   ;;  %1999 = vperm.xlu1 %4468, %v5628_v14   ;;  %v2709_v57 = vmax.f32 %v2693_v6, 0.0  ;;  %v1950_v6 = vmax.f32 %v1934_v4, 0.0 }
 0x3fa   :  { %v2643_v30 = vpop.xlane.xlu1 %2642 }
 0x3fb   :  { %v2695_v58 = vadd.f32 %v5471_v41, %v2643_v30  ;;  %v5645_v32 = vmul.f32 2.0, %v2709_v57  ;;  %v5650_v30 = vmul.f32 2.0, %v2712_v13  ;;  %v1898_v39 = vpop.xlane.xlu0 %1897 }
 0x3fd   :  { %2002 = vperm.xlu0 %4467, %v5637_v60   ;;  %2005 = vperm.xlu1 %4468, %v5634_v24   ;;  %v2711_v31 = vmax.f32 %v2695_v58, 0.0  ;;  %v5658_v58 = vmul.f32 2.0, %v1950_v6  ;;  %v5667_v6 = vmul.f32 2.0, %v2716_v38 }
 0x3fe   :  { %v1889_v10 = vpop.xlane.xlu1 %1888 }
 0x3ff   :  { %v1933_v47 = vadd.f32 %v5462_v35, %v1889_v10  ;;  %v5653_v19 = vmul.f32 2.0, %v2711_v31  ;;  %v1932_v10 = vadd.f32 %v5411_v50, %v1886_v37  ;;  %v2698_v31 = vadd.f32 %v5476_v46, %v2652_v21  ;;  %7036 = vst [vmem:[#allocation30_spill] sm:$0xff] %v5667_v6 }
 0x401   :  { %2762 = vperm.xlu0 %4467, %v5645_v32   ;;  %2765 = vperm.xlu1 %4468, %v5643_v29   ;;  %v1949_v43 = vmax.f32 %v1933_v47, 0.0 }
 0x402   :  { %v2655_v61 = vpop.xlane.xlu1 %2654 }
 0x403   :  { %v2699_v57 = vadd.f32 %v5471_v41, %v2655_v61  ;;  %v5661_v4 = vmul.f32 2.0, %v1949_v43  ;;  %v1948_v61 = vmax.f32 %v1932_v10, 0.0  ;;  %v1904_v43 = vpop.xlane.xlu0 %1903  ;;  %v1936_v10 = vadd.f32 %v5411_v50, %v1898_v39 }
 0x405   :  { %2768 = vperm.xlu0 %4467, %v5653_v19   ;;  %2771 = vperm.xlu1 %4468, %v5650_v30   ;;  %v2715_v48 = vmax.f32 %v2699_v57, 0.0  ;;  %v5674_v57 = vmul.f32 2.0, %v1948_v61  ;;  %v1952_v16 = vmax.f32 %v1936_v10, 0.0 }
 0x406   :  { %v1883_v13 = vpop.xlane.xlu1 %1882 }
 0x407   :  { %v1931_v36 = vadd.f32 %v5462_v35, %v1883_v13  ;;  %v5669_v3 = vmul.f32 2.0, %v2715_v48  ;;  %v2714_v13 = vmax.f32 %v2698_v31, 0.0  ;;  %v2664_v26 = vpop.xlane.xlu0 %2663 }
 0x409   :  { %2014 = vperm.xlu0 %4467, %v5661_v4   ;;  %2017 = vperm.xlu1 %4468, %v5658_v58   ;;  %7037 = vst [vmem:[#allocation29_spill] sm:$0xff] %v5669_v3  ;;  %v1947_v37 = vmax.f32 %v1931_v36, 0.0  ;;  %v5682_v36 = vmul.f32 2.0, %v2714_v13  ;;  %v5691_v13 = vmul.f32 2.0, %v1952_v16 }
 0x40a   :  { %v2649_v47 = vpop.xlane.xlu1 %2648 }
 0x40b   :  { %v2697_v18 = vadd.f32 %v5471_v41, %v2649_v47  ;;  %v5677_v21 = vmul.f32 2.0, %v1947_v37  ;;  %7038 = vst [vmem:[#allocation35_spill] sm:$0xff] %v5682_v36  ;;  %v1938_v47 = vadd.f32 %v5411_v50, %v1904_v43  ;;  %v2702_v37 = vadd.f32 %v5476_v46, %v2664_v26  ;;  %7039 = vst [vmem:[#allocation31_spill] sm:$0xff] %v5691_v13 }
 0x40d   :  { %2780 = vperm.xlu0 %4467, %v5669_v3   ;;  %2783 = vperm.xlu1 %4468, %v5667_v6   ;;  %v2713_v38 = vmax.f32 %v2697_v18, 0.0 }
 0x40e   :  { %v1895_v42 = vpop.xlane.xlu1 %1894 }
 0x40f   :  { %v1935_v48 = vadd.f32 %v5462_v35, %v1895_v42  ;;  %v5685_v31 = vmul.f32 2.0, %v2713_v38  ;;  %v1954_v42 = vmax.f32 %v1938_v47, 0.0  ;;  %v2670_v38 = vpop.xlane.xlu0 %2669 }
 0x410   :  { %v2704_v47 = vadd.f32 %v5476_v46, %v2670_v38 }
 0x411   :  { %2008 = vperm.xlu0 %4467, %v5677_v21   ;;  %2011 = vperm.xlu1 %4468, %v5674_v57   ;;  %v1951_v56 = vmax.f32 %v1935_v48, 0.0  ;;  %v5698_v48 = vmul.f32 2.0, %v1954_v42 }
 0x412   :  { %v1901_v61 = vpop.xlane.xlu1 %1900 }
 0x413   :  { %v1937_v39 = vadd.f32 %v5462_v35, %v1901_v61  ;;  %v5693_v0 = vmul.f32 2.0, %v1951_v56  ;;  %7041 = vst [vmem:[#allocation33_spill] sm:$0xff] %v5698_v48  ;;  %v2718_v61 = vmax.f32 %v2702_v37, 0.0 }
 0x415   :  { %2774 = vperm.xlu0 %4467, %v5685_v31   ;;  %2777 = vperm.xlu1 %4468, %v5682_v36   ;;  %7040 = vst [vmem:[#allocation36_spill] sm:$0xff] %v5693_v0  ;;  %v1953_v43 = vmax.f32 %v1937_v39, 0.0  ;;  %v5706_v39 = vmul.f32 2.0, %v2718_v61 }
 0x416   :  { %v2661_v18 = vpop.xlane.xlu1 %2660 }
 0x417   :  { %v2701_v10 = vadd.f32 %v5471_v41, %v2661_v18  ;;  %v5701_v26 = vmul.f32 2.0, %v1953_v43  ;;  %7043 = vst [vmem:[#allocation44_spill] sm:$0xff] %v5706_v39  ;;  %v2720_v18 = vmax.f32 %v2704_v47, 0.0 }
 0x419   :  { %2020 = vperm.xlu0 %4467, %v5693_v0   ;;  %2023 = vperm.xlu1 %4468, %v5691_v13   ;;  %7042 = vst [vmem:[#allocation42_spill] sm:$0xff] %v5701_v26  ;;  %v2717_v16 = vmax.f32 %v2701_v10, 0.0  ;;  %v5712_v37 = vmul.f32 2.0, %v2720_v18  ;;  %v1158_v18 = vadd.f32 %v5487_v25, %v5563_v40  ;;  %v1160_v40 = vadd.f32 %v5487_v25, %v5565_v51 }
 0x41a   :  { %v2667_v44 = vpop.xlane.xlu1 %2666  ;;  %v1161_v51 = vadd.f32 %v5413_v8, %v5571_v17 }
 0x41b   :  { %v2703_v56 = vadd.f32 %v5471_v41, %v2667_v44  ;;  %v5708_v52 = vmul.f32 2.0, %v2717_v16  ;;  %7045 = vst [vmem:[#allocation32_spill] sm:$0xff] %v5712_v37 }
 0x41d   :  { %2026 = vperm.xlu0 %4467, %v5701_v26   ;;  %2029 = vperm.xlu1 %4468, %v5698_v48   ;;  %7044 = vst [vmem:[#allocation47_spill] sm:$0xff] %v5708_v52  ;;  %v2719_v42 = vmax.f32 %v2703_v56, 0.0  ;;  %v1157_v56 = vadd.f32 %v5413_v8, %v5532_v63 }
 0x41f   :  { %v5714_v43 = vmul.f32 2.0, %v2719_v42  ;;  %v1173_v63 = vmax.f32 %v1157_v56, 0.0  ;;  %v1164_v56 = vadd.f32 %v5487_v25, %v5569_v2  ;;  %v1166_v2 = vadd.f32 %v5487_v25, %v5602_v22 }
 0x421   :  { %2786 = vperm.xlu0 %4467, %v5708_v52   ;;  %2789 = vperm.xlu1 %4468, %v5706_v39   ;;  %7046 = vst [vmem:[#allocation40_spill] sm:$0xff] %v5714_v43  ;;  %v1180_v17 = vmax.f32 %v1164_v56, 0.0 }
 0x425   :  { %2792 = vperm.xlu0 %4467, %v5714_v43   ;;  %2795 = vperm.xlu1 %4468, %v5712_v37  }
 0x432   :  { %v1907_v44 = vpop.xlane.xlu1 %1906  ;;  %v1910_v10 = vpop.xlane.xlu0 %1909 }
 0x433   :  { %v1939_v38 = vadd.f32 %v5462_v35, %v1907_v44  ;;  %v1940_v61 = vadd.f32 %v5411_v50, %v1910_v10  ;;  %v1174_v10 = vmax.f32 %v1158_v18, 0.0 }
 0x435   :  { %v1955_v47 = vmax.f32 %v1939_v38, 0.0  ;;  %v1956_v16 = vmax.f32 %v1940_v61, 0.0  ;;  %v1159_v38 = vadd.f32 %v5413_v8, %v5567_v12  ;;  %v1162_v12 = vadd.f32 %v5487_v25, %v5600_v23 }
 0x436   :  { %v2673_v42 = vpop.xlane.xlu1 %2672  ;;  %v2676_v39 = vpop.xlane.xlu0 %2675  ;;  %v1165_v23 = vadd.f32 %v5413_v8, %v5573_v62  ;;  %v1182_v62 = vmax.f32 %v1166_v2, 0.0 }
 0x437   :  { %v5724_v48 = vmul.f32 2.0, %v1955_v47  ;;  %v5726_v43 = vmul.f32 2.0, %v1956_v16  ;;  %v2705_v37 = vadd.f32 %v5471_v41, %v2673_v42  ;;  %v2706_v35 = vadd.f32 %v5476_v46, %v2676_v39 }
 0x438   :  { %v5742_v41 = vmul.f32 2.0, %v1173_v63  ;;  %v1176_v46 = vmax.f32 %v1160_v40, 0.0  ;;  %v5744_v39 = vmul.f32 2.0, %v1174_v10  ;;  %v1177_v42 = vmax.f32 %v1161_v51, 0.0 }
 0x439   :  { %7047 = vst [vmem:[#allocation43_spill] sm:$0xff] %v5724_v48  ;;  %7048 = vst [vmem:[#allocation46_spill] sm:$0xff] %v5726_v43  ;;  %v2721_v44 = vmax.f32 %v2705_v37, 0.0  ;;  %v2722_v50 = vmax.f32 %v2706_v35, 0.0  ;;  %2032 = vperm.xlu0 %4467, %v5724_v48   ;;  %2035 = vperm.xlu1 %4468, %v5726_v43   ;;  %v1175_v37 = vmax.f32 %v1159_v38, 0.0  ;;  %v1163_v35 = vadd.f32 %v5413_v8, %v5579_v34 }
 0x43a   :  { %7051 = vst [vmem:[#allocation60_spill] sm:$0xff] %v5744_v39  ;;  %v5752_v16 = vmul.f32 2.0, %v1176_v46  ;;  %v1181_v34 = vmax.f32 %v1165_v23, 0.0  ;;  %v1167_v10 = vadd.f32 %v5413_v8, %v5585_v49  ;;  %v5774_v38 = vmul.f32 2.0, %v1180_v17 }
 0x43b   :  { %v5736_v61 = vmul.f32 2.0, %v2721_v44  ;;  %v5738_v47 = vmul.f32 2.0, %v2722_v50  ;;  %v5756_v18 = vmul.f32 2.0, %v1175_v37  ;;  %v1178_v44 = vmax.f32 %v1162_v12, 0.0 }
 0x43c   :  { %7052 = vst [vmem:[#allocation61_spill] sm:$0xff] %v5752_v16  ;;  %v5764_v50 = vmul.f32 2.0, %v1177_v42  ;;  %v1179_v63 = vmax.f32 %v1163_v35, 0.0  ;;  %7056 = vst [vmem:[#allocation65_spill] sm:$0xff] %v5774_v38  ;;  %v1168_v37 = vadd.f32 %v5487_v25, %v5606_v59  ;;  %v5782_v22 = vmul.f32 2.0, %v1181_v34 }
 0x43d   :  { %7049 = vst [vmem:[#allocation58_spill] sm:$0xff] %v5736_v61  ;;  %7050 = vst [vmem:[#allocation59_spill] sm:$0xff] %v5738_v47  ;;  %2798 = vperm.xlu0 %4467, %v5736_v61   ;;  %2801 = vperm.xlu1 %4468, %v5738_v47   ;;  %v5766_v40 = vmul.f32 2.0, %v1178_v44  ;;  %v1183_v51 = vmax.f32 %v1167_v10, 0.0  ;;  %v1169_v12 = vadd.f32 %v5413_v8, %v5587_v5  ;;  %v5786_v56 = vmul.f32 2.0, %v1182_v62 }
 0x43e   :  { %7053 = vst [vmem:[#allocation62_spill] sm:$0xff] %v5756_v18  ;;  %7054 = vst [vmem:[#allocation63_spill] sm:$0xff] %v5764_v50  ;;  %v5776_v46 = vmul.f32 2.0, %v1179_v63  ;;  %v1184_v49 = vmax.f32 %v1168_v37, 0.0  ;;  %v1170_v42 = vadd.f32 %v5487_v25, %v5608_v53  ;;  %v1171_v44 = vadd.f32 %v5413_v8, %v5589_v27  ;;  %v5809_v8 = vpop.permute.xlu1 %1990  ;;  %v5811_v27 = vpop.permute.xlu0 %1221 }
 0x43f   :  { %7055 = vst [vmem:[#allocation64_spill] sm:$0xff] %v5766_v40  ;;  %7058 = vst [vmem:[#allocation67_spill] sm:$0xff] %v5782_v22  ;;  %v5792_v59 = vmul.f32 2.0, %v1183_v51  ;;  %v1185_v35 = vmax.f32 %v1169_v12, 0.0 }
 0x440   :  { %7057 = vst [vmem:[#allocation66_spill] sm:$0xff] %v5776_v46  ;;  %7059 = vst [vmem:[#allocation68_spill] sm:$0xff] %v5786_v56  ;;  %v5796_v17 = vmul.f32 2.0, %v1184_v49  ;;  %v1186_v23 = vmax.f32 %v1170_v42, 0.0  ;;  %v1187_v25 = vmax.f32 %v1171_v44, 0.0 }
 0x441   :  { %1227 = vperm.xlu0 %4467, %v5744_v39   ;;  %1224 = vperm.xlu1 %4468, %v5742_v41   ;;  %7060 = vst [vmem:[#allocation69_spill] sm:$0xff] %v5792_v59  ;;  %v5800_v5 = vmul.f32 2.0, %v1185_v35 }
 0x442   :  { %7061 = vst [vmem:[#allocation70_spill] sm:$0xff] %v5796_v17  ;;  %v5802_v53 = vmul.f32 2.0, %v1186_v23  ;;  %v5806_v63 = vmul.f32 2.0, %v1187_v25  ;;  %v3849_v23 = vsel %vm3846_vm2, %v5459_v33, -inf }
 0x443   :  { %7062 = vst [vmem:[#allocation71_spill] sm:$0xff] %v5800_v5 }
 0x444   :  { %7063 = vst [vmem:[#allocation72_spill] sm:$0xff] %v5802_v53  ;;  %7064 = vst [vmem:[#allocation73_spill] sm:$0xff] %v5806_v63 }
 0x445   :  { %1233 = vperm.xlu0 %4467, %v5752_v16   ;;  %1230 = vperm.xlu1 %4468, %v5756_v18  }
 0x449   :  { %1239 = vperm.xlu0 %4467, %v5766_v40   ;;  %1236 = vperm.xlu1 %4468, %v5764_v50  }
 0x44d   :  { %1245 = vperm.xlu0 %4467, %v5774_v38   ;;  %1242 = vperm.xlu1 %4468, %v5776_v46  }
 0x451   :  { %1251 = vperm.xlu0 %4467, %v5786_v56   ;;  %1248 = vperm.xlu1 %4468, %v5782_v22  }
 0x455   :  { %1257 = vperm.xlu0 %4467, %v5796_v17   ;;  %1254 = vperm.xlu1 %4468, %v5792_v59  }
 0x459   :  { %1263 = vperm.xlu0 %4467, %v5802_v53   ;;  %1260 = vperm.xlu1 %4468, %v5800_v5  }
 0x45d   :  { %1266 = vperm.xlu1 %4468, %v5806_v63  }
 0x46c   :  { %v5813_v2 = vpop.permute.xlu1 %1993 }
 0x470   :  { %v2760_v34 = vpop.permute.xlu1 %2759  ;;  %v2757_v10 = vpop.permute.xlu0 %2756 }
 0x474   :  { %v5815_v62 = vpop.permute.xlu1 %1999  ;;  %v5817_v37 = vpop.permute.xlu0 %1996 }
 0x478   :  { %v5819_v51 = vpop.permute.xlu1 %2005  ;;  %v5821_v12 = vpop.permute.xlu0 %2002 }
 0x47c   :  { %v2766_v49 = vpop.permute.xlu1 %2765  ;;  %v2763_v42 = vpop.permute.xlu0 %2762 }
 0x480   :  { %v2772_v35 = vpop.permute.xlu1 %2771  ;;  %v2769_v44 = vpop.permute.xlu0 %2768 }
 0x481   :  { %3850 = vmax.xlane.f32.xlu1 %v3849_v23  ;;  %v7065_v23 = vld [vmem:[#allocation20_spill] sm:$0xff] }
 0x482   :  { %v1272_v46 = vadd.s32 4294967288, %v7065_v23  ;;  %v5844_v39 = vsub.s32 %v7065_v23, %v4901_v7 }
 0x484   :  { %v5825_v25 = vpop.permute.xlu1 %2017  ;;  %v5827_v53 = vpop.permute.xlu0 %2014  ;;  %v5847_v40 = vsub.s32 %v1272_v46, %v4901_v7  ;;  %v2815_v43 = vrot.slane %v2763_v42, %v5844_v39  ;;  %v2806_v52 = vrot.slane %v2757_v10, %v5844_v39  ;;  %v2824_v26 = vrot.slane %v2769_v44, %v5844_v39 }
 0x486   :  { %v2819_v61 = vrot.slane %v2766_v49, %v5847_v40  ;;  %v2810_v48 = vrot.slane %v2760_v34, %v5847_v40  ;;  %v2828_v6 = vrot.slane %v2772_v35, %v5847_v40 }
 0x488   :  { %v2784_v63 = vpop.permute.xlu1 %2783  ;;  %v2781_v17 = vpop.permute.xlu0 %2780  ;;  %v2820_v7 = vsel %vm1277_vm3, %v2819_v61, %v2815_v43  ;;  %v2811_v49 = vsel %vm1277_vm3, %v2810_v48, %v2806_v52  ;;  %v2829_v42 = vsel %vm1277_vm3, %v2828_v6, %v2824_v26 }
 0x489   :  { %v2875_v34 = vsel %vm840_vm8, %v2820_v7, %v2811_v49 }
 0x48a   :  { %v2876_v7 = vsel %vm842_vm9, %v2829_v42, %v2875_v34 }
 0x48c   :  { %v5829_v5 = vpop.permute.xlu1 %2011  ;;  %v5831_v56 = vpop.permute.xlu0 %2008 }
 0x490   :  { %v2778_v59 = vpop.permute.xlu1 %2777  ;;  %v2775_v22 = vpop.permute.xlu0 %2774 }
 0x491   :  { %v2837_v13 = vrot.slane %v2778_v59, %v5847_v40  ;;  %v2833_v46 = vrot.slane %v2775_v22, %v5844_v39  ;;  %v2846_v59 = vrot.slane %v2784_v63, %v5847_v40  ;;  %v2842_v22 = vrot.slane %v2781_v17, %v5844_v39 }
 0x493   :  { %v2838_v10 = vsel %vm1277_vm3, %v2837_v13, %v2833_v46  ;;  %v2847_v48 = vsel %vm1277_vm3, %v2846_v59, %v2842_v22 }
 0x494   :  { %v5833_v50 = vpop.permute.xlu1 %2023  ;;  %v5835_v38 = vpop.permute.xlu0 %2020  ;;  %v2877_v6 = vsel %vm844_vm10, %v2838_v10, %v2876_v7 }
 0x495   :  { %v2878_v17 = vsel %vm846_vm11, %v2847_v48, %v2877_v6  ;;  %v2044_v48 = vrot.slane %v5813_v2, %v5847_v40 }
 0x498   :  { %v5837_v18 = vpop.permute.xlu1 %2029  ;;  %v5839_v33 = vpop.permute.xlu0 %2026 }
 0x49c   :  { %v2790_v47 = vpop.permute.xlu1 %2789  ;;  %v2787_v16 = vpop.permute.xlu0 %2786 }
 0x49d   :  { %v2855_v35 = vrot.slane %v2790_v47, %v5847_v40  ;;  %v2851_v44 = vrot.slane %v2787_v16, %v5844_v39 }
 0x49f   :  { %v2856_v13 = vsel %vm1277_vm3, %v2855_v35, %v2851_v44 }
 0x4a0   :  { %v2796_v3 = vpop.permute.xlu1 %2795  ;;  %v2793_v36 = vpop.permute.xlu0 %2792  ;;  %v2879_v63 = vsel %vm848_vm12, %v2856_v13, %v2878_v17  ;;  %v2040_v17 = vrot.slane %v5809_v8, %v5844_v39 }
 0x4a1   :  { %v2864_v43 = vrot.slane %v2796_v3, %v5847_v40  ;;  %v2860_v61 = vrot.slane %v2793_v36, %v5844_v39 }
 0x4a3   :  { %v2865_v26 = vsel %vm1277_vm3, %v2864_v43, %v2860_v61 }
 0x4a4   :  { %v2880_v49 = vsel %vm850_vm14, %v2865_v26, %v2879_v63  ;;  %v2053_v26 = vrot.slane %v5815_v62, %v5847_v40  ;;  %v1271_v62 = vrot.slane %v5811_v27, %v5844_v39 }
 0x4b4   :  { %v5868_v0 = vpop.permute.xlu1 %2035  ;;  %v5870_v52 = vpop.permute.xlu0 %2032 }
 0x4b8   :  { %v2802_v47 = vpop.permute.xlu1 %2801  ;;  %v2799_v16 = vpop.permute.xlu0 %2798 }
 0x4b9   :  { %v2873_v3 = vrot.slane %v2802_v47, %v5847_v40  ;;  %v2869_v36 = vrot.slane %v2799_v16, %v5844_v39  ;;  %v2049_v47 = vrot.slane %v5817_v37, %v5844_v39  ;;  %v2062_v16 = vrot.slane %v5819_v51, %v5847_v40 }
 0x4bb   :  { %v2874_v46 = vsel %vm1277_vm3, %v2873_v3, %v2869_v36  ;;  %v2058_v3 = vrot.slane %v5821_v12, %v5844_v39  ;;  %v2045_v12 = vsel %vm1277_vm3, %v2044_v48, %v2040_v17 }
 0x4bc   :  { %v1225_v42 = vpop.permute.xlu1 %1224  ;;  %v1228_v34 = vpop.permute.xlu0 %1227  ;;  %v2881_v10 = vsel %vm852_vm13, %v2874_v46, %v2880_v49 }
 0x4bd   :  { %v2883_v35 = vsel %vm1350_vm4, %v2881_v10, -inf  ;;  %v1276_v37 = vrot.slane %v1225_v42, %v5847_v40  ;;  %v1282_v49 = vrot.slane %v1228_v34, %v5844_v39  ;;  %v2054_v10 = vsel %vm1277_vm3, %v2053_v26, %v2049_v47 }
 0x4be   :  { %2884 = vmax.xlane.f32.xlu1 %v2883_v35  ;;  %v2071_v34 = vrot.slane %v5829_v5, %v5847_v40 }
 0x4c0   :  { %v1231_v44 = vpop.permute.xlu1 %1230  ;;  %v1234_v59 = vpop.permute.xlu0 %1233 }
 0x4c1   :  { %v1286_v36 = vrot.slane %v1231_v44, %v5847_v40  ;;  %v1291_v35 = vrot.slane %v1234_v59, %v5844_v39  ;;  %v2063_v44 = vsel %vm1277_vm3, %v2062_v16, %v2058_v3  ;;  %v2109_v3 = vsel %vm840_vm8, %v2054_v10, %v2045_v12 }
 0x4c2   :  { %v2085_v12 = vrot.slane %v5835_v38, %v5844_v39  ;;  %v2107_v38 = vrot.slane %v5868_v0, %v5847_v40 }
 0x4c4   :  { %v1237_v22 = vpop.permute.xlu1 %1236  ;;  %v1240_v43 = vpop.permute.xlu0 %1239 }
 0x4c5   :  { %v1295_v63 = vrot.slane %v1237_v22, %v5847_v40  ;;  %v1287_v22 = vsel %vm1277_vm3, %v1286_v36, %v1282_v49  ;;  %v1300_v27 = vrot.slane %v1240_v43, %v5844_v39 }
 0x4c7   :  { %v1296_v48 = vsel %vm1277_vm3, %v1295_v63, %v1291_v35  ;;  %v2080_v63 = vrot.slane %v5825_v25, %v5847_v40 }
 0x4c8   :  { %v1243_v61 = vpop.permute.xlu1 %1242  ;;  %v1246_v7 = vpop.permute.xlu0 %1245 }
 0x4c9   :  { %v1304_v51 = vrot.slane %v1243_v61, %v5847_v40  ;;  %v2067_v61 = vrot.slane %v5831_v56, %v5844_v39  ;;  %v1309_v59 = vrot.slane %v1246_v7, %v5844_v39  ;;  %v2110_v7 = vsel %vm842_vm9, %v2063_v44, %v2109_v3 }
 0x4ca   :  { %v2094_v44 = vrot.slane %v5839_v33, %v5844_v39 }
 0x4cb   :  { %v1305_v47 = vsel %vm1277_vm3, %v1304_v51, %v1300_v27  ;;  %v2103_v27 = vrot.slane %v5870_v52, %v5844_v39 }
 0x4cc   :  { %v1249_v6 = vpop.permute.xlu1 %1248  ;;  %v1252_v13 = vpop.permute.xlu0 %1251 }
 0x4cd   :  { %v1313_v8 = vrot.slane %v1249_v6, %v5847_v40  ;;  %v1278_v6 = vsel %vm1277_vm3, %v1276_v37, %v1271_v62  ;;  %v1318_v16 = vrot.slane %v1252_v13, %v5844_v39  ;;  %v2072_v62 = vsel %vm1277_vm3, %v2071_v34, %v2067_v61 }
 0x4ce   :  { %v1342_v5 = vsel %vm840_vm8, %v1287_v22, %v1278_v6  ;;  %v2089_v37 = vrot.slane %v5833_v50, %v5847_v40  ;;  %v2098_v50 = vrot.slane %v5837_v18, %v5847_v40  ;;  %v2108_v0 = vsel %vm1277_vm3, %v2107_v38, %v2103_v27 }
 0x4cf   :  { %v1314_v36 = vsel %vm1277_vm3, %v1313_v8, %v1309_v59  ;;  %v2076_v8 = vrot.slane %v5827_v53, %v5844_v39  ;;  %v2111_v53 = vsel %vm844_vm10, %v2072_v62, %v2110_v7  ;;  %v3890_v6 = vsel %vm3846_vm2, %v5604_v20, -inf }
 0x4d0   :  { %v1255_v2 = vpop.permute.xlu1 %1254  ;;  %v1258_v46 = vpop.permute.xlu0 %1257  ;;  %v2090_v18 = vsel %vm1277_vm3, %v2089_v37, %v2085_v12  ;;  %v2099_v59 = vsel %vm1277_vm3, %v2098_v50, %v2094_v44 }
 0x4d1   :  { %v1322_v42 = vrot.slane %v1255_v2, %v5847_v40  ;;  %v1327_v56 = vrot.slane %v1258_v46, %v5844_v39  ;;  %v1343_v2 = vsel %vm842_vm9, %v1296_v48, %v1342_v5  ;;  %v2081_v48 = vsel %vm1277_vm3, %v2080_v63, %v2076_v8 }
 0x4d2   :  { %v1344_v49 = vsel %vm844_vm10, %v1305_v47, %v1343_v2  ;;  %v2112_v52 = vsel %vm846_vm11, %v2081_v48, %v2111_v53  ;;  %v5976_v2 = vcvt.s32.f32 %v7065_v23 }
 0x4d3   :  { %v1323_v13 = vsel %vm1277_vm3, %v1322_v42, %v1318_v16  ;;  %v1345_v10 = vsel %vm846_vm11, %v1314_v36, %v1344_v49  ;;  %v7067_v49 = vld [vmem:[#allocation21_spill] sm:$0xff] }
 0x4d4   :  { %v1261_v26 = vpop.permute.xlu1 %1260  ;;  %v1264_v17 = vpop.permute.xlu0 %1263  ;;  %v1346_v22 = vsel %vm848_vm12, %v1323_v13, %v1345_v10  ;;  %7066 = vst [vmem:[#allocation74_spill] sm:$0xff] %v5976_v2 }
 0x4d5   :  { %v1331_v43 = vrot.slane %v1261_v26, %v5847_v40  ;;  %v1336_v25 = vrot.slane %v1264_v17, %v5844_v39  ;;  %v2113_v26 = vsel %vm848_vm12, %v2090_v18, %v2112_v52  ;;  %v7070_v18 = vld [vmem:[#allocation22_spill] sm:$0xff] }
 0x4d6   :  { %v2114_v47 = vsel %vm850_vm14, %v2099_v59, %v2113_v26 }
 0x4d7   :  { %v1332_v51 = vsel %vm1277_vm3, %v1331_v43, %v1327_v56  ;;  %v2115_v16 = vsel %vm852_vm13, %v2108_v0, %v2114_v47  ;;  %v7071_v47 = vld [vmem:[#allocation23_spill] sm:$0xff] }
 0x4d8   :  { %v1267_v46 = vpop.permute.xlu1 %1266  ;;  %v1347_v34 = vsel %vm850_vm14, %v1332_v51, %v1346_v22  ;;  %v2117_v43 = vsel %vm1350_vm4, %v2115_v16, -inf }
 0x4d9   :  { %v1340_v35 = vrot.slane %v1267_v46, %v5847_v40 }
 0x4db   :  { %v1341_v42 = vsel %vm1277_vm3, %v1340_v35, %v1336_v25 }
 0x4dc   :  { %v1348_v61 = vsel %vm852_vm13, %v1341_v42, %v1347_v34 }
 0x4dd   :  { %v1351_v33 = vsel %vm1350_vm4, %v1348_v61, -inf }
 0x4de   :  { %1352 = vmax.xlane.f32.xlu0 %v1351_v33 }
 0x4e2   :  { %3891 = vmax.xlane.f32.xlu0 %v3890_v6 }
 0x4e6   :  { %2118 = vmax.xlane.f32.xlu0 %v2117_v43 }
 0x567   :  { %v5968_v3 = vpop.xlane.xlu0 %1352 }
 0x568   :  { %v1358_v5 = vrot.slane %v5968_v3, %v4906_v9 }
 0x56a   :  { %v1395_v36 = vsub.f32 %v5597_v28, %v1358_v5  ;;  %v1396_v17 = vsub.f32 %v5742_v41, %v1358_v5  ;;  %v5984_v41 = vpop.xlane.xlu1 %3850 }
 0x56b   :  { %v3892_v56 = vpop.xlane.xlu0 %3891 }
 0x56c   :  { %v1411_v7 = vmul.f32 1.442695, %v1395_v36  ;;  %v1413_v63 = vmul.f32 1.442695, %v1396_v17  ;;  %vm3893_vm5 = vcmp.ge.f32.partialorder %v5604_v20, %v3892_v56 }
 0x56d   :  { %v3894_v62 = vsel %vm3893_vm5, %v5976_v2, 8.0 }
 0x56e   :  { %4477 = vpow2.f32 %v1411_v7  ;;  %v3895_v37 = vsel %vm3846_vm2, %v3894_v62, inf  ;;  %v5992_v25 = vpop.xlane.xlu1 %2884 }
 0x56f   :  { %v5978_v13 = vpop.xlane.xlu0 %2118  ;;  %4479 = vpow2.f32 %v1413_v63  ;;  %3896 = vmin.xlane.f32.xlu0 %v3895_v37  ;;  %v2890_v44 = vrot.slane %v5992_v25, %v4906_v9  ;;  %v7072_v37 = vld [vmem:[#allocation24_spill] sm:$0xff] }
 0x570   :  { %v2124_v28 = vrot.slane %v5978_v13, %v4906_v9  ;;  %v2128_v51 = vrot.slane %v5978_v13, %v7067_v49  ;;  %v2132_v12 = vrot.slane %v5978_v13, %v4916_v15  ;;  %v2136_v33 = vrot.slane %v5978_v13, %v7070_v18 }
 0x571   :  { %v2927_v42 = vsub.f32 %v5621_v1, %v2890_v44  ;;  %v2928_v48 = vsub.f32 %v5619_v54, %v2890_v44  ;;  %v2898_v1 = vrot.slane %v5992_v25, %v4916_v15  ;;  %v2140_v54 = vrot.slane %v5978_v13, %v7071_v47 }
 0x572   :  { %v2161_v46 = vsub.f32 %v5594_v55, %v2124_v28  ;;  %v2162_v10 = vsub.f32 %v5614_v45, %v2124_v28  ;;  %v2163_v35 = vsub.f32 %v5626_v11, %v2128_v51  ;;  %v2165_v22 = vsub.f32 %v5637_v60, %v2132_v12 }
 0x573   :  { %v2164_v55 = vsub.f32 %v5628_v14, %v2128_v51  ;;  %v2894_v11 = vrot.slane %v5992_v25, %v7067_v49  ;;  %v2166_v60 = vsub.f32 %v5634_v24, %v2132_v12  ;;  %v2943_v14 = vmul.f32 1.442695, %v2927_v42  ;;  %v7076_v42 = vld [vmem:[#allocation25_spill] sm:$0xff] }
 0x574   :  { %v2177_v8 = vmul.f32 1.442695, %v2161_v46  ;;  %v2179_v38 = vmul.f32 1.442695, %v2162_v10  ;;  %v2181_v27 = vmul.f32 1.442695, %v2163_v35  ;;  %v2167_v24 = vsub.f32 %v5677_v21, %v2136_v33 }
 0x575   :  { %v2185_v34 = vmul.f32 1.442695, %v2165_v22  ;;  %v2183_v53 = vmul.f32 1.442695, %v2164_v55  ;;  %v2929_v61 = vsub.f32 %v5645_v32, %v2894_v11  ;;  %v2187_v59 = vmul.f32 1.442695, %v2166_v60 }
 0x576   :  { %4481 = vpow2.f32 %v2177_v8  ;;  %v2930_v52 = vsub.f32 %v5643_v29, %v2894_v11  ;;  %v2945_v26 = vmul.f32 1.442695, %v2928_v48  ;;  %v2931_v6 = vsub.f32 %v5653_v19, %v2898_v1  ;;  %v7073_v35 = vld [vmem:[#allocation36_spill] sm:$0xff]  ;;  %v7074_v22 = vld [vmem:[#allocation35_spill] sm:$0xff] }
 0x577   :  { %4483 = vpow2.f32 %v2179_v38  ;;  %v2947_v0 = vmul.f32 1.442695, %v2929_v61  ;;  %v2189_v16 = vmul.f32 1.442695, %v2167_v24  ;;  %v2168_v29 = vsub.f32 %v5674_v57, %v2136_v33 }
 0x578   :  { %4485 = vpow2.f32 %v2181_v27  ;;  %v2949_v21 = vmul.f32 1.442695, %v2930_v52  ;;  %v2902_v19 = vrot.slane %v5992_v25, %v7070_v18  ;;  %v2951_v36 = vmul.f32 1.442695, %v2931_v6  ;;  %v7075_v27 = vld [vmem:[#allocation29_spill] sm:$0xff] }
 0x579   :  { %4487 = vpow2.f32 %v2185_v34  ;;  %v2169_v56 = vsub.f32 %v5661_v4, %v2140_v54  ;;  %v2932_v7 = vsub.f32 %v5650_v30, %v2898_v1  ;;  %v2191_v63 = vmul.f32 1.442695, %v2168_v29 }
 0x57a   :  { %4489 = vpow2.f32 %v2183_v53  ;;  %v2933_v62 = vsub.f32 %v5685_v31, %v2902_v19  ;;  %v2144_v28 = vrot.slane %v5978_v13, %v7072_v37  ;;  %v2170_v30 = vsub.f32 %v5658_v58, %v2140_v54 }
 0x57b   :  { %v5995_v50 = vpop.eup %4477  ;;  %4491 = vpow2.f32 %v2943_v14  ;;  %v2193_v4 = vmul.f32 1.442695, %v2169_v56  ;;  %v2953_v46 = vmul.f32 1.442695, %v2932_v7  ;;  %v2906_v31 = vrot.slane %v5992_v25, %v7071_v47  ;;  %v7077_v14 = vld [vmem:[#allocation31_spill] sm:$0xff] }
 0x57c   :  { %7068 = vst [vmem:[#allocation21_spill] sm:$0xff] %v5995_v50  ;;  %1460 = vperm.xlu1 %4468, %v5995_v50   ;;  %v6002_v45 = vpop.eup %4479  ;;  %4493 = vpow2.f32 %v2187_v59  ;;  %v2955_v10 = vmul.f32 1.442695, %v2933_v62  ;;  %v2171_v8 = vsub.f32 %v7073_v35, %v2144_v28  ;;  %v2934_v38 = vsub.f32 %v7074_v22, %v2902_v19  ;;  %v7081_v19 = vld [vmem:[#allocation26_spill] sm:$0xff]  ;;  %v7082_v62 = vld [vmem:[#allocation33_spill] sm:$0xff]  ;;  %v7085_v35 = vld [vmem:[#allocation44_spill] sm:$0xff] }
 0x57d   :  { %7069 = vst [vmem:[#allocation75_spill] sm:$0xff] %v6002_v45  ;;  %4495 = vpow2.f32 %v2947_v0  ;;  %v2195_v58 = vmul.f32 1.442695, %v2170_v30  ;;  %v2935_v11 = vsub.f32 %v7075_v27, %v2906_v31  ;;  %v2148_v34 = vrot.slane %v5978_v13, %v7076_v42  ;;  %v7078_v0 = vld [vmem:[#allocation42_spill] sm:$0xff]  ;;  %v7086_v27 = vld [vmem:[#allocation40_spill] sm:$0xff] }
 0x57e   :  { %4497 = vpow2.f32 %v2945_v26  ;;  %v2197_v60 = vmul.f32 1.442695, %v2171_v8  ;;  %v2957_v61 = vmul.f32 1.442695, %v2934_v38  ;;  %v2172_v33 = vsub.f32 %v7077_v14, %v2144_v28  ;;  %v7079_v26 = vld [vmem:[#allocation30_spill] sm:$0xff] }
 0x57f   :  { %4499 = vpow2.f32 %v2189_v16  ;;  %v2910_v59 = vrot.slane %v5992_v25, %v7072_v37  ;;  %v2959_v1 = vmul.f32 1.442695, %v2935_v11  ;;  %v2173_v24 = vsub.f32 %v7078_v0, %v2148_v34  ;;  %v7088_v14 = vld [vmem:[#allocation46_spill] sm:$0xff] }
 0x580   :  { %1463 = vperm.xlu1 %4468, %v6002_v45   ;;  %4501 = vpow2.f32 %v2949_v21  ;;  %v2936_v6 = vsub.f32 %v7079_v26, %v2906_v31  ;;  %v2199_v54 = vmul.f32 1.442695, %v2172_v33  ;;  %v7080_v21 = vld [vmem:[#allocation47_spill] sm:$0xff]  ;;  %v2174_v28 = vsub.f32 %v7082_v62, %v2148_v34 }
 0x581   :  { %4503 = vpow2.f32 %v2951_v36  ;;  %v2937_v29 = vsub.f32 %v7080_v21, %v2910_v59  ;;  %v2152_v36 = vrot.slane %v5978_v13, %v7081_v19  ;;  %v2201_v56 = vmul.f32 1.442695, %v2173_v24  ;;  %v7083_v31 = vld [vmem:[#allocation43_spill] sm:$0xff] }
 0x582   :  { %4505 = vpow2.f32 %v2191_v63  ;;  %v2961_v63 = vmul.f32 1.442695, %v2936_v6  ;;  %v2938_v8 = vsub.f32 %v7085_v35, %v2910_v59  ;;  %v2203_v22 = vmul.f32 1.442695, %v2174_v28  ;;  %v7092_v6 = vld [vmem:[#allocation32_spill] sm:$0xff] }
 0x583   :  { %v6017_v32 = vpop.eup %4481  ;;  %4507 = vpow2.f32 %v2193_v4  ;;  %v2963_v30 = vmul.f32 1.442695, %v2937_v29  ;;  %v2176_v33 = vsub.f32 %v7088_v14, %v2152_v36 }
 0x584   :  { %v6022_v43 = vpop.eup %4483  ;;  %2226 = vperm.xlu1 %4468, %v6017_v32   ;;  %4509 = vpow2.f32 %v2953_v46  ;;  %v2914_v46 = vrot.slane %v5992_v25, %v7076_v42 }
 0x585   :  { %2229 = vperm.xlu0 %4467, %v6022_v43   ;;  %v6027_v5 = vpop.eup %4485  ;;  %4511 = vpow2.f32 %v2955_v10  ;;  %v2175_v10 = vsub.f32 %v7083_v31, %v2152_v36  ;;  %v2207_v21 = vmul.f32 1.442695, %v2176_v33  ;;  %v1374_v33 = vrot.slane %v5968_v3, %v7071_v47 }
 0x586   :  { %v6032_v17 = vpop.eup %4487  ;;  %4513 = vpow2.f32 %v2195_v58  ;;  %v2918_v58 = vrot.slane %v5992_v25, %v7081_v19  ;;  %v2939_v11 = vsub.f32 %v7086_v27, %v2914_v46  ;;  %v1366_v25 = vrot.slane %v5968_v3, %v4916_v15 }
 0x587   :  { %v6037_v57 = vpop.eup %4489  ;;  %4515 = vpow2.f32 %v2197_v60  ;;  %v2205_v34 = vmul.f32 1.442695, %v2175_v10  ;;  %v1362_v10 = vrot.slane %v5968_v3, %v7067_v49 }
 0x588   :  { %2232 = vperm.xlu1 %4468, %v6027_v5   ;;  %v6042_v51 = vpop.eup %4491  ;;  %4517 = vpow2.f32 %v2957_v61  ;;  %v2965_v61 = vmul.f32 1.442695, %v2938_v8  ;;  %v2967_v24 = vmul.f32 1.442695, %v2939_v11  ;;  %v7098_v8 = vld [vmem:[#allocation64_spill] sm:$0xff] }
 0x589   :  { %2238 = vperm.xlu0 %4467, %v6032_v17   ;;  %v6047_v12 = vpop.eup %4493  ;;  %4519 = vpow2.f32 %v2959_v1  ;;  %v7090_v1 = vld [vmem:[#allocation58_spill] sm:$0xff] }
 0x58a   :  { %v6052_v44 = vpop.eup %4495  ;;  %4521 = vpow2.f32 %v2199_v54  ;;  %v2941_v0 = vsub.f32 %v7090_v1, %v2918_v58  ;;  %v2940_v54 = vsub.f32 %v7092_v6, %v2914_v46  ;;  %v7102_v1 = vld [vmem:[#allocation66_spill] sm:$0xff] }
 0x58b   :  { %v6057_v55 = vpop.eup %4497  ;;  %4523 = vpow2.f32 %v2201_v56  ;;  %v1370_v56 = vrot.slane %v5968_v3, %v7070_v18 }
 0x58c   :  { %2235 = vperm.xlu1 %4468, %v6037_v57   ;;  %v6062_v53 = vpop.eup %4499  ;;  %4525 = vpow2.f32 %v2961_v63  ;;  %v2971_v36 = vmul.f32 1.442695, %v2941_v0  ;;  %v7094_v63 = vld [vmem:[#allocation61_spill] sm:$0xff]  ;;  %v2969_v46 = vmul.f32 1.442695, %v2940_v54  ;;  %v7104_v54 = vld [vmem:[#allocation62_spill] sm:$0xff] }
 0x58d   :  { %2992 = vperm.xlu0 %4467, %v6042_v51   ;;  %v6067_v48 = vpop.eup %4501  ;;  %4527 = vpow2.f32 %v2963_v30  ;;  %v1399_v62 = vsub.f32 %v7094_v63, %v1366_v25  ;;  %v7096_v30 = vld [vmem:[#allocation59_spill] sm:$0xff]  ;;  %v1402_v0 = vsub.f32 %v7102_v1, %v1370_v56 }
 0x58e   :  { %v6072_v52 = vpop.eup %4503  ;;  %4529 = vpow2.f32 %v2203_v22  ;;  %v2942_v31 = vsub.f32 %v7096_v30, %v2918_v58  ;;  %v1401_v22 = vsub.f32 %v7098_v8, %v1370_v56  ;;  %v7100_v58 = vld [vmem:[#allocation60_spill] sm:$0xff]  ;;  %v1378_v56 = vrot.slane %v5968_v3, %v7072_v37  ;;  %v7108_v8 = vld [vmem:[#allocation63_spill] sm:$0xff] }
 0x58f   :  { %v6077_v16 = vpop.eup %4505  ;;  %4531 = vpow2.f32 %v2205_v34  ;;  %v1419_v27 = vmul.f32 1.442695, %v1399_v62  ;;  %v7106_v62 = vld [vmem:[#allocation65_spill] sm:$0xff] }
 0x590   :  { %2241 = vperm.xlu1 %4468, %v6047_v12   ;;  %v6082_v7 = vpop.eup %4507  ;;  %4533 = vpow2.f32 %v2965_v61  ;;  %v2973_v34 = vmul.f32 1.442695, %v2942_v31  ;;  %v1397_v61 = vsub.f32 %v7100_v58, %v1362_v10  ;;  %v1403_v30 = vsub.f32 %v7106_v62, %v1374_v33 }
 0x591   :  { %2998 = vperm.xlu0 %4467, %v6052_v44   ;;  %v6087_v4 = vpop.eup %4509  ;;  %4535 = vpow2.f32 %v2967_v24  ;;  %v1423_v24 = vmul.f32 1.442695, %v1401_v22  ;;  %v1425_v31 = vmul.f32 1.442695, %v1402_v0  ;;  %v1400_v22 = vsub.f32 %v7108_v8, %v1366_v25  ;;  %v7116_v8 = vld [vmem:[#allocation71_spill] sm:$0xff] }
 0x592   :  { %v6092_v13 = vpop.eup %4511  ;;  %4537 = vpow2.f32 %v2207_v21  ;;  %v1398_v21 = vsub.f32 %v7104_v54, %v1362_v10  ;;  %v1382_v0 = vrot.slane %v5968_v3, %v7076_v42 }
 0x593   :  { %7084 = vst [vmem:[#allocation22_spill] sm:$0xff] %v6092_v13  ;;  %v6097_v38 = vpop.eup %4513  ;;  %4539 = vpow2.f32 %v2971_v36  ;;  %v1415_v36 = vmul.f32 1.442695, %v1397_v61  ;;  %v1427_v61 = vmul.f32 1.442695, %v1403_v30 }
 0x594   :  { %2995 = vperm.xlu1 %4468, %v6057_v55   ;;  %v6102_v60 = vpop.eup %4515  ;;  %4541 = vpow2.f32 %v2969_v46  ;;  %v1417_v10 = vmul.f32 1.442695, %v1398_v21  ;;  %v1421_v25 = vmul.f32 1.442695, %v1400_v22 }
 0x595   :  { %2244 = vperm.xlu0 %4467, %v6062_v53   ;;  %7087 = vst [vmem:[#allocation23_spill] sm:$0xff] %v6102_v60  ;;  %v6107_v59 = vpop.eup %4517  ;;  %4543 = vpow2.f32 %v1419_v27 }
 0x596   :  { %7089 = vst [vmem:[#allocation24_spill] sm:$0xff] %v6107_v59  ;;  %v6112_v26 = vpop.eup %4519  ;;  %4545 = vpow2.f32 %v2973_v34  ;;  %v7110_v34 = vld [vmem:[#allocation67_spill] sm:$0xff] }
 0x597   :  { %7091 = vst [vmem:[#allocation36_spill] sm:$0xff] %v6112_v26  ;;  %v6117_v29 = vpop.eup %4521  ;;  %4547 = vpow2.f32 %v1423_v24  ;;  %v1404_v58 = vsub.f32 %v7110_v34, %v1374_v33  ;;  %v7112_v24 = vld [vmem:[#allocation69_spill] sm:$0xff]  ;;  %v1408_v34 = vsub.f32 %v7116_v8, %v1382_v0 }
 0x598   :  { %3001 = vperm.xlu1 %4468, %v6067_v48   ;;  %7093 = vst [vmem:[#allocation35_spill] sm:$0xff] %v6117_v29  ;;  %v6122_v28 = vpop.eup %4523  ;;  %4549 = vpow2.f32 %v1415_v36  ;;  %v1406_v54 = vsub.f32 %v7112_v24, %v1378_v56  ;;  %v7114_v36 = vld [vmem:[#allocation68_spill] sm:$0xff]  ;;  %v7118_v24 = vld [vmem:[#allocation70_spill] sm:$0xff] }
 0x599   :  { %3004 = vperm.xlu0 %4467, %v6072_v52   ;;  %7095 = vst [vmem:[#allocation29_spill] sm:$0xff] %v6122_v28  ;;  %v6129_v35 = vpop.eup %4525  ;;  %4551 = vpow2.f32 %v1425_v31  ;;  %v1405_v62 = vsub.f32 %v7114_v36, %v1378_v56  ;;  %v1429_v33 = vmul.f32 1.442695, %v1404_v58  ;;  %v1386_v31 = vrot.slane %v5968_v3, %v7081_v19 }
 0x59a   :  { %7097 = vst [vmem:[#allocation25_spill] sm:$0xff] %v6129_v35  ;;  %v6132_v11 = vpop.eup %4527  ;;  %4553 = vpow2.f32 %v1417_v10  ;;  %v1433_v10 = vmul.f32 1.442695, %v1406_v54  ;;  %v1407_v23 = vsub.f32 %v7118_v24, %v1382_v0  ;;  %v1437_v3 = vmul.f32 1.442695, %v1408_v34 }
 0x59b   :  { %7099 = vst [vmem:[#allocation31_spill] sm:$0xff] %v6132_v11  ;;  %v6137_v14 = vpop.eup %4529  ;;  %4555 = vpow2.f32 %v1427_v61  ;;  %v1431_v56 = vmul.f32 1.442695, %v1405_v62  ;;  %v7120_v61 = vld [vmem:[#allocation73_spill] sm:$0xff] }
 0x59c   :  { %2247 = vperm.xlu1 %4468, %v6077_v16   ;;  %7101 = vst [vmem:[#allocation42_spill] sm:$0xff] %v6137_v14  ;;  %v6142_v6 = vpop.eup %4531  ;;  %4557 = vpow2.f32 %v1421_v25  ;;  %v1410_v36 = vsub.f32 %v7120_v61, %v1386_v31  ;;  %v7122_v25 = vld [vmem:[#allocation72_spill] sm:$0xff]  ;;  %v1435_v8 = vmul.f32 1.442695, %v1407_v23 }
 0x59d   :  { %2250 = vperm.xlu0 %4467, %v6082_v7   ;;  %7103 = vst [vmem:[#allocation30_spill] sm:$0xff] %v6142_v6  ;;  %v6147_v63 = vpop.eup %4533  ;;  %4559 = vpow2.f32 %v1429_v33  ;;  %v1409_v54 = vsub.f32 %v7122_v25, %v1386_v31 }
 0x59e   :  { %7105 = vst [vmem:[#allocation47_spill] sm:$0xff] %v6147_v63  ;;  %v6150_v46 = vpop.eup %4535  ;;  %4561 = vpow2.f32 %v1433_v10  ;;  %v1441_v0 = vmul.f32 1.442695, %v1410_v36 }
 0x59f   :  { %7107 = vst [vmem:[#allocation33_spill] sm:$0xff] %v6150_v46  ;;  %v6157_v27 = vpop.eup %4537  ;;  %4563 = vpow2.f32 %v1431_v56  ;;  %v1439_v33 = vmul.f32 1.442695, %v1409_v54  ;;  %v7134_v54 = vld [vmem:[#allocation57_spill] sm:$0xff] }
 0x5a0   :  { %3007 = vperm.xlu1 %4468, %v6087_v4   ;;  %7109 = vst [vmem:[#allocation43_spill] sm:$0xff] %v6157_v27  ;;  %v6160_v1 = vpop.eup %4539  ;;  %4565 = vpow2.f32 %v1437_v3  ;;  %vm3852_vm6 = vcmp.ge.f32.partialorder %v7134_v54, %v5984_v41 }
 0x5a1   :  { %3010 = vperm.xlu0 %4467, %v6092_v13   ;;  %7111 = vst [vmem:[#allocation44_spill] sm:$0xff] %v6160_v1  ;;  %v6167_v21 = vpop.eup %4541  ;;  %4567 = vpow2.f32 %v1435_v8 }
 0x5a2   :  { %7113 = vst [vmem:[#allocation40_spill] sm:$0xff] %v6167_v21  ;;  %v6170_v30 = vpop.eup %4543  ;;  %4569 = vpow2.f32 %v1441_v0  ;;  %v3853_v0 = vsel %vm3852_vm6, %v5976_v2, 8.0 }
 0x5a3   :  { %7115 = vst [vmem:[#allocation46_spill] sm:$0xff] %v6170_v30  ;;  %v6177_v22 = vpop.eup %4545  ;;  %4571 = vpow2.f32 %v1439_v33 }
 0x5a4   :  { %2253 = vperm.xlu1 %4468, %v6097_v38   ;;  %7117 = vst [vmem:[#allocation58_spill] sm:$0xff] %v6177_v22  ;;  %v6180_v58 = vpop.eup %4547 }
 0x5a5   :  { %2256 = vperm.xlu0 %4467, %v6102_v60   ;;  %7119 = vst [vmem:[#allocation32_spill] sm:$0xff] %v6180_v58 }
 0x5a8   :  { %3013 = vperm.xlu1 %4468, %v6107_v59  }
 0x5a9   :  { %3016 = vperm.xlu0 %4467, %v6112_v26  }
 0x5ac   :  { %2259 = vperm.xlu1 %4468, %v6117_v29  }
 0x5ad   :  { %2262 = vperm.xlu0 %4467, %v6122_v28  }
 0x5b0   :  { %3019 = vperm.xlu1 %4468, %v6129_v35  }
 0x5b1   :  { %3022 = vperm.xlu0 %4467, %v6132_v11  }
 0x5b4   :  { %2265 = vperm.xlu1 %4468, %v6137_v14  }
 0x5b5   :  { %2268 = vperm.xlu0 %4467, %v6142_v6  }
 0x5b8   :  { %3025 = vperm.xlu1 %4468, %v6147_v63  }
 0x5b9   :  { %3028 = vperm.xlu0 %4467, %v6150_v46  }
 0x5bc   :  { %2271 = vperm.xlu1 %4468, %v6157_v27  }
 0x5bd   :  { %3034 = vperm.xlu0 %4467, %v6160_v1  }
 0x5c0   :  { %3031 = vperm.xlu1 %4468, %v6167_v21  }
 0x5c1   :  { %1472 = vperm.xlu0 %4467, %v6170_v30   ;;  %v6185_v30 = vpop.eup %4549 }
 0x5c2   :  { %7121 = vst [vmem:[#allocation61_spill] sm:$0xff] %v6185_v30  ;;  %v6188_v50 = vpop.eup %4551 }
 0x5c3   :  { %7123 = vst [vmem:[#allocation59_spill] sm:$0xff] %v6188_v50  ;;  %v6192_v62 = vpop.eup %4553 }
 0x5c4   :  { %3037 = vperm.xlu1 %4468, %v6177_v22   ;;  %7124 = vst [vmem:[#allocation64_spill] sm:$0xff] %v6192_v62  ;;  %v6194_v10 = vpop.eup %4555 }
 0x5c5   :  { %1478 = vperm.xlu0 %4467, %v6180_v58   ;;  %7125 = vst [vmem:[#allocation60_spill] sm:$0xff] %v6194_v10  ;;  %v6198_v23 = vpop.eup %4557 }
 0x5c6   :  { %7126 = vst [vmem:[#allocation66_spill] sm:$0xff] %v6198_v23  ;;  %v6200_v31 = vpop.eup %4559 }
 0x5c7   :  { %7127 = vst [vmem:[#allocation62_spill] sm:$0xff] %v6200_v31  ;;  %v6204_v34 = vpop.eup %4561 }
 0x5c8   :  { %1466 = vperm.xlu1 %4468, %v6185_v30   ;;  %7128 = vst [vmem:[#allocation65_spill] sm:$0xff] %v6204_v34  ;;  %v6206_v24 = vpop.eup %4563 }
 0x5c9   :  { %1481 = vperm.xlu0 %4467, %v6188_v50   ;;  %7129 = vst [vmem:[#allocation63_spill] sm:$0xff] %v6206_v24  ;;  %v6210_v56 = vpop.eup %4565 }
 0x5ca   :  { %7130 = vst [vmem:[#allocation67_spill] sm:$0xff] %v6210_v56  ;;  %v6212_v61 = vpop.eup %4567 }
 0x5cb   :  { %7131 = vst [vmem:[#allocation69_spill] sm:$0xff] %v6212_v61  ;;  %v6216_v36 = vpop.eup %4569 }
 0x5cc   :  { %1469 = vperm.xlu1 %4468, %v6192_v62   ;;  %7132 = vst [vmem:[#allocation68_spill] sm:$0xff] %v6216_v36  ;;  %v6218_v3 = vpop.eup %4571 }
 0x5cd   :  { %1484 = vperm.xlu0 %4467, %v6194_v10   ;;  %7133 = vst [vmem:[#allocation71_spill] sm:$0xff] %v6218_v3 }
 0x5d0   :  { %1475 = vperm.xlu1 %4468, %v6198_v23  }
 0x5d1   :  { %1487 = vperm.xlu0 %4467, %v6200_v31  }
 0x5d4   :  { %1493 = vperm.xlu1 %4468, %v6204_v34  }
 0x5d5   :  { %1490 = vperm.xlu0 %4467, %v6206_v24  }
 0x5d8   :  { %1499 = vperm.xlu1 %4468, %v6210_v56   ;;  %v3854_v56 = vsel %vm3846_vm2, %v3853_v0, inf }
 0x5d9   :  { %1496 = vperm.xlu0 %4467, %v6212_v61  }
 0x5dc   :  { %1505 = vperm.xlu1 %4468, %v6216_v36  }
 0x5dd   :  { %1502 = vperm.xlu0 %4467, %v6218_v3  }
 0x5f7   :  { %v6222_v25 = vpop.permute.xlu1 %1460 }
 0x5f8   :  { %v3897_v8 = vpop.xlane.xlu0 %3896 }
 0x5f9   :  { %vm3898_vm15 = vcmp.eq.f32.partialorder %v5976_v2, %v3897_v8 }
 0x5fa   :  { %v6232_v61 = vsel %vm3898_vm15, -1e+30, %v5604_v20 }
 0x5fb   :  { %v6228_v33 = vpop.permute.xlu1 %1463  ;;  %7135 = vst [vmem:[#allocation70_spill] sm:$0xff] %v6232_v61  ;;  %v3900_v3 = vsel %vm3846_vm2, %v6232_v61, -inf }
 0x5fc   :  { %3855 = vmin.xlane.f32.xlu0 %v3854_v56 }
 0x5ff   :  { %v2227_v36 = vpop.permute.xlu1 %2226 }
 0x600   :  { %3901 = vmax.xlane.f32.xlu0 %v3900_v3  ;;  %v2230_v34 = vpop.permute.xlu0 %2229  ;;  %v2276_v11 = vrot.slane %v2227_v36, %v5844_v39 }
 0x601   :  { %v2280_v14 = vrot.slane %v2230_v34, %v5847_v40 }
 0x603   :  { %v2233_v41 = vpop.permute.xlu1 %2232 }
 0x604   :  { %v2239_v24 = vpop.permute.xlu0 %2238  ;;  %v2285_v28 = vrot.slane %v2233_v41, %v5844_v39 }
 0x605   :  { %v2294_v29 = vrot.slane %v2239_v24, %v5844_v39 }
 0x607   :  { %v2236_v31 = vpop.permute.xlu1 %2235 }
 0x608   :  { %v6236_v10 = vpop.permute.xlu0 %2992  ;;  %v2289_v27 = vrot.slane %v2236_v31, %v5847_v40 }
 0x60a   :  { %v2290_v59 = vsel %vm1277_vm3, %v2289_v27, %v2285_v28 }
 0x60b   :  { %v2242_v8 = vpop.permute.xlu1 %2241 }
 0x60c   :  { %v6238_v50 = vpop.permute.xlu0 %2998  ;;  %v2298_v6 = vrot.slane %v2242_v8, %v5847_v40 }
 0x60e   :  { %v2299_v13 = vsel %vm1277_vm3, %v2298_v6, %v2294_v29 }
 0x60f   :  { %v6240_v58 = vpop.permute.xlu1 %2995 }
 0x610   :  { %v2245_v0 = vpop.permute.xlu0 %2244 }
 0x611   :  { %v2303_v31 = vrot.slane %v2245_v0, %v5844_v39 }
 0x613   :  { %v6242_v20 = vpop.permute.xlu1 %3001 }
 0x614   :  { %v6244_v56 = vpop.permute.xlu0 %3004 }
 0x617   :  { %v2248_v23 = vpop.permute.xlu1 %2247 }
 0x618   :  { %v2251_v62 = vpop.permute.xlu0 %2250  ;;  %v2307_v35 = vrot.slane %v2248_v23, %v5847_v40  ;;  %v2281_v23 = vsel %vm1277_vm3, %v2280_v14, %v2276_v11 }
 0x619   :  { %v2312_v36 = vrot.slane %v2251_v62, %v5844_v39  ;;  %v2345_v28 = vsel %vm840_vm8, %v2290_v59, %v2281_v23 }
 0x61a   :  { %v2308_v24 = vsel %vm1277_vm3, %v2307_v35, %v2303_v31  ;;  %v2346_v6 = vsel %vm842_vm9, %v2299_v13, %v2345_v28 }
 0x61b   :  { %v6246_v30 = vpop.permute.xlu1 %3007 }
 0x61c   :  { %v6248_v3 = vpop.permute.xlu0 %3010 }
 0x61f   :  { %v2254_v45 = vpop.permute.xlu1 %2253 }
 0x620   :  { %v2257_v61 = vpop.permute.xlu0 %2256  ;;  %v2316_v60 = vrot.slane %v2254_v45, %v5847_v40 }
 0x621   :  { %v2321_v45 = vrot.slane %v2257_v61, %v5844_v39 }
 0x622   :  { %v2317_v27 = vsel %vm1277_vm3, %v2316_v60, %v2312_v36 }
 0x623   :  { %v6250_v54 = vpop.permute.xlu1 %3013 }
 0x624   :  { %v6252_v2 = vpop.permute.xlu0 %3016 }
 0x627   :  { %v2260_v22 = vpop.permute.xlu1 %2259 }
 0x628   :  { %v2263_v1 = vpop.permute.xlu0 %2262  ;;  %v2325_v8 = vrot.slane %v2260_v22, %v5847_v40  ;;  %v2347_v22 = vsel %vm844_vm10, %v2308_v24, %v2346_v6 }
 0x629   :  { %v2330_v29 = vrot.slane %v2263_v1, %v5844_v39  ;;  %v2348_v35 = vsel %vm846_vm11, %v2317_v27, %v2347_v22  ;;  %v3055_v27 = vrot.slane %v6242_v20, %v5847_v40  ;;  %v3046_v22 = vrot.slane %v6240_v58, %v5847_v40 }
 0x62a   :  { %v3042_v20 = vrot.slane %v6236_v10, %v5844_v39  ;;  %v1510_v58 = vrot.slane %v6222_v25, %v5844_v39  ;;  %v3073_v25 = vrot.slane %v6250_v54, %v5847_v40 }
 0x62b   :  { %v6254_v21 = vpop.permute.xlu1 %3019 }
 0x62c   :  { %v6256_v46 = vpop.permute.xlu0 %3022 }
 0x62f   :  { %v2266_v63 = vpop.permute.xlu1 %2265 }
 0x630   :  { %v2269_v26 = vpop.permute.xlu0 %2268  ;;  %v2334_v34 = vrot.slane %v2266_v63, %v5847_v40  ;;  %v2326_v63 = vsel %vm1277_vm3, %v2325_v8, %v2321_v45 }
 0x631   :  { %v2339_v62 = vrot.slane %v2269_v26, %v5844_v39  ;;  %v2349_v60 = vsel %vm848_vm12, %v2326_v63, %v2348_v35  ;;  %v3051_v63 = vrot.slane %v6238_v50, %v5844_v39  ;;  %v1514_v35 = vrot.slane %v6228_v33, %v5847_v40 }
 0x632   :  { %v2335_v11 = vsel %vm1277_vm3, %v2334_v34, %v2330_v29  ;;  %v3047_v33 = vsel %vm1277_vm3, %v3046_v22, %v3042_v20 }
 0x633   :  { %v6272_v41 = vpop.permute.xlu1 %3025  ;;  %v2350_v13 = vsel %vm850_vm14, %v2335_v11, %v2349_v60  ;;  %v3064_v60 = vrot.slane %v6246_v30, %v5847_v40 }
 0x634   :  { %v6277_v19 = vpop.permute.xlu0 %3028  ;;  %v3091_v20 = vrot.slane %v6272_v41, %v5847_v40 }
 0x637   :  { %v2272_v14 = vpop.permute.xlu1 %2271 }
 0x638   :  { %v2343_v61 = vrot.slane %v2272_v14, %v5847_v40  ;;  %v6289_v59 = vpop.permute.xlu0 %3034 }
 0x63a   :  { %v2344_v1 = vsel %vm1277_vm3, %v2343_v61, %v2339_v62  ;;  %v3056_v61 = vsel %vm1277_vm3, %v3055_v27, %v3051_v63 }
 0x63b   :  { %v6294_v0 = vpop.permute.xlu1 %3031  ;;  %v2351_v31 = vsel %vm852_vm13, %v2344_v1, %v2350_v13  ;;  %v3111_v30 = vsel %vm840_vm8, %v3056_v61, %v3047_v33 }
 0x63c   :  { %v1473_v8 = vpop.permute.xlu0 %1472  ;;  %v2353_v36 = vsel %vm1350_vm4, %v2351_v31, 0.0  ;;  %v3060_v31 = vrot.slane %v6244_v56, %v5844_v39 }
 0x63d   :  { %2354 = vadd.xlane.f32.xlu0 %v2353_v36  ;;  %v1528_v50 = vrot.slane %v1473_v8, %v5844_v39 }
 0x63f   :  { %v6298_v34 = vpop.permute.xlu1 %3037 }
 0x640   :  { %v1479_v26 = vpop.permute.xlu0 %1478  ;;  %v3109_v41 = vrot.slane %v6298_v34, %v5847_v40 }
 0x641   :  { %v1537_v56 = vrot.slane %v1479_v26, %v5844_v39 }
 0x643   :  { %v1467_v23 = vpop.permute.xlu1 %1466 }
 0x644   :  { %v1482_v24 = vpop.permute.xlu0 %1481  ;;  %v1519_v62 = vrot.slane %v1467_v23, %v5844_v39  ;;  %v1515_v23 = vsel %vm1277_vm3, %v1514_v35, %v1510_v58  ;;  %v3082_v35 = vrot.slane %v6254_v21, %v5847_v40  ;;  %v3100_v21 = vrot.slane %v6294_v0, %v5847_v40 }
 0x645   :  { %v1541_v8 = vrot.slane %v1482_v24, %v5847_v40  ;;  %v3069_v24 = vrot.slane %v6248_v3, %v5844_v39  ;;  %v3078_v3 = vrot.slane %v6252_v2, %v5844_v39  ;;  %v3096_v0 = vrot.slane %v6277_v19, %v5844_v39 }
 0x647   :  { %v1470_v45 = vpop.permute.xlu1 %1469  ;;  %v1542_v61 = vsel %vm1277_vm3, %v1541_v8, %v1537_v56  ;;  %v3074_v58 = vsel %vm1277_vm3, %v3073_v25, %v3069_v24  ;;  %v3083_v2 = vsel %vm1277_vm3, %v3082_v35, %v3078_v3 }
 0x648   :  { %v1485_v28 = vpop.permute.xlu0 %1484  ;;  %v1523_v29 = vrot.slane %v1470_v45, %v5847_v40  ;;  %v3065_v45 = vsel %vm1277_vm3, %v3064_v60, %v3060_v31 }
 0x649   :  { %v1546_v54 = vrot.slane %v1485_v28, %v5844_v39  ;;  %v3112_v26 = vsel %vm842_vm9, %v3065_v45, %v3111_v30  ;;  %v3101_v45 = vsel %vm1277_vm3, %v3100_v21, %v3096_v0 }
 0x64a   :  { %v1524_v1 = vsel %vm1277_vm3, %v1523_v29, %v1519_v62  ;;  %v3113_v8 = vsel %vm844_vm10, %v3074_v58, %v3112_v26 }
 0x64b   :  { %v1476_v6 = vpop.permute.xlu1 %1475  ;;  %v1579_v27 = vsel %vm840_vm8, %v1524_v1, %v1515_v23  ;;  %v3087_v1 = vrot.slane %v6256_v46, %v5844_v39  ;;  %v3105_v46 = vrot.slane %v6289_v59, %v5844_v39  ;;  %v3114_v25 = vsel %vm846_vm11, %v3083_v2, %v3113_v8 }
 0x64c   :  { %v1532_v11 = vrot.slane %v1476_v6, %v5847_v40  ;;  %v1488_v14 = vpop.permute.xlu0 %1487 }
 0x64d   :  { %v1550_v29 = vrot.slane %v1488_v14, %v5847_v40  ;;  %v3092_v23 = vsel %vm1277_vm3, %v3091_v20, %v3087_v1 }
 0x64e   :  { %v1533_v10 = vsel %vm1277_vm3, %v1532_v11, %v1528_v50  ;;  %v3115_v56 = vsel %vm848_vm12, %v3092_v23, %v3114_v25  ;;  %v7136_v25 = vld [vmem:[#allocation26_spill] sm:$0xff] }
 0x64f   :  { %v1494_v13 = vpop.permute.xlu1 %1493  ;;  %v1580_v6 = vsel %vm842_vm9, %v1533_v10, %v1579_v27  ;;  %v1551_v50 = vsel %vm1277_vm3, %v1550_v29, %v1546_v54  ;;  %v3110_v29 = vsel %vm1277_vm3, %v3109_v41, %v3105_v46 }
 0x650   :  { %v1491_v36 = vpop.permute.xlu0 %1490  ;;  %v1559_v63 = vrot.slane %v1494_v13, %v5847_v40  ;;  %v1581_v28 = vsel %vm844_vm10, %v1542_v61, %v1580_v6  ;;  %v3116_v6 = vsel %vm850_vm14, %v3101_v45, %v3115_v56  ;;  %v7140_v56 = vld [vmem:[#allocation35_spill] sm:$0xff] }
 0x651   :  { %v1555_v22 = vrot.slane %v1491_v36, %v5844_v39  ;;  %v1582_v34 = vsel %vm846_vm11, %v1551_v50, %v1581_v28 }
 0x653   :  { %v1500_v11 = vpop.permute.xlu1 %1499  ;;  %v1560_v13 = vsel %vm1277_vm3, %v1559_v63, %v1555_v22  ;;  %v3117_v63 = vsel %vm852_vm13, %v3110_v29, %v3116_v6 }
 0x654   :  { %v1568_v62 = vrot.slane %v1500_v11, %v5847_v40  ;;  %v1497_v14 = vpop.permute.xlu0 %1496  ;;  %v1583_v19 = vsel %vm848_vm12, %v1560_v13, %v1582_v34  ;;  %v3119_v22 = vsel %vm1350_vm4, %v3117_v63, 0.0 }
 0x655   :  { %v1564_v60 = vrot.slane %v1497_v14, %v5844_v39 }
 0x657   :  { %v1506_v33 = vpop.permute.xlu1 %1505  ;;  %v1569_v31 = vsel %vm1277_vm3, %v1568_v62, %v1564_v60 }
 0x658   :  { %v1577_v10 = vrot.slane %v1506_v33, %v5847_v40  ;;  %v1503_v36 = vpop.permute.xlu0 %1502  ;;  %v1584_v27 = vsel %vm850_vm14, %v1569_v31, %v1583_v19 }
 0x659   :  { %v1573_v30 = vrot.slane %v1503_v36, %v5844_v39 }
 0x65b   :  { %v1578_v40 = vsel %vm1277_vm3, %v1577_v10, %v1573_v30 }
 0x65c   :  { %v1585_v59 = vsel %vm852_vm13, %v1578_v40, %v1584_v27  ;;  %v7137_v40 = vld [vmem:[#allocation22_spill] sm:$0xff]  ;;  %v7138_v27 = vld [vmem:[#allocation24_spill] sm:$0xff] }
 0x65d   :  { %v1587_v39 = vsel %vm1350_vm4, %v1585_v59, 0.0 }
 0x65e   :  { %1588 = vadd.xlane.f32.xlu1 %v1587_v39 }
 0x662   :  { %3120 = vadd.xlane.f32.xlu1 %v3119_v22  ;;  %v7141_v22 = vld [vmem:[#allocation36_spill] sm:$0xff] }
 0x685   :  { %v6382_v11 = vpop.xlane.xlu0 %3855 }
 0x689   :  { %v6384_v24 = vpop.xlane.xlu0 %3901 }
 0x6c6   :  { %v6386_v35 = vpop.xlane.xlu0 %2354 }
 0x6c7   :  { %v2360_v54 = vrot.slane %v6386_v35, %v4906_v9  ;;  %v2364_v62 = vrot.slane %v6386_v35, %v7067_v49  ;;  %v2368_v14 = vrot.slane %v6386_v35, %v4916_v15  ;;  %v2380_v31 = vrot.slane %v6386_v35, %v7072_v37 }
 0x6c9   :  { %4573 = vrcp.f32 %v2360_v54  ;;  %v7142_v54 = vld [vmem:[#allocation25_spill] sm:$0xff] }
 0x6ca   :  { %4575 = vrcp.f32 %v2364_v62 }
 0x6cb   :  { %4577 = vrcp.f32 %v2368_v14 }
 0x6d6   :  { %v4574_v26 = vpop.eup %4573 }
 0x6d7   :  { %v2399_v20 = vmul.f32 %v4574_v26, %v6022_v43  ;;  %v2398_v61 = vmul.f32 %v4574_v26, %v6017_v32  ;;  %v4576_v60 = vpop.eup %4575 }
 0x6d8   :  { %v2401_v3 = vmul.f32 %v4576_v60, %v6027_v5  ;;  %v2402_v21 = vmul.f32 %v4576_v60, %v6037_v57  ;;  %v4578_v28 = vpop.eup %4577  ;;  %v2372_v57 = vrot.slane %v6386_v35, %v7070_v18  ;;  %v7144_v60 = vld [vmem:[#allocation42_spill] sm:$0xff] }
 0x6d9   :  { %2428 = vperm.xlu1 %4468, %v2399_v20   ;;  %2423 = vperm.xlu0 %4467, %v2398_v61   ;;  %v2404_v50 = vmul.f32 %v4578_v28, %v6032_v17  ;;  %v2405_v58 = vmul.f32 %v4578_v28, %v6047_v12  ;;  %v2376_v12 = vrot.slane %v6386_v35, %v7071_v47  ;;  %v7143_v20 = vld [vmem:[#allocation29_spill] sm:$0xff]  ;;  %v7145_v28 = vld [vmem:[#allocation31_spill] sm:$0xff] }
 0x6dd   :  { %2433 = vperm.xlu1 %4468, %v2401_v3   ;;  %2438 = vperm.xlu0 %4467, %v2402_v21  }
 0x6e1   :  { %2443 = vperm.xlu1 %4468, %v2404_v50   ;;  %2448 = vperm.xlu0 %4467, %v2405_v58   ;;  %v7146_v58 = vld [vmem:[#allocation47_spill] sm:$0xff] }
 0x6e7   :  { %v6400_v1 = vpop.xlane.xlu1 %1588 }
 0x6eb   :  { %v6402_v43 = vpop.xlane.xlu1 %3120 }
 0x6ec   :  { %v3126_v32 = vrot.slane %v6402_v43, %v4906_v9  ;;  %v3130_v5 = vrot.slane %v6402_v43, %v7067_v49  ;;  %v3134_v17 = vrot.slane %v6402_v43, %v4916_v15  ;;  %v3138_v2 = vrot.slane %v6402_v43, %v7070_v18 }
 0x6ed   :  { %v3142_v46 = vrot.slane %v6402_v43, %v7071_v47  ;;  %v3146_v45 = vrot.slane %v6402_v43, %v7072_v37  ;;  %v3150_v6 = vrot.slane %v6402_v43, %v7076_v42  ;;  %v3154_v14 = vrot.slane %v6402_v43, %v7136_v25 }
 0x6ee   :  { %4579 = vrcp.f32 %v3126_v32 }
 0x6ef   :  { %4581 = vrcp.f32 %v3130_v5 }
 0x6f0   :  { %4583 = vrcp.f32 %v2372_v57  ;;  %v7147_v57 = vld [vmem:[#allocation30_spill] sm:$0xff] }
 0x6f1   :  { %4585 = vrcp.f32 %v3134_v17  ;;  %v7148_v17 = vld [vmem:[#allocation43_spill] sm:$0xff] }
 0x6f2   :  { %4587 = vrcp.f32 %v2376_v12 }
 0x6f3   :  { %4589 = vrcp.f32 %v3138_v2  ;;  %v7150_v2 = vld [vmem:[#allocation40_spill] sm:$0xff] }
 0x6f4   :  { %4591 = vrcp.f32 %v2380_v31 }
 0x6f5   :  { %4593 = vrcp.f32 %v3142_v46  ;;  %v7154_v46 = vld [vmem:[#allocation57_spill] sm:$0xff] }
 0x6fb   :  { %v4580_v41 = vpop.eup %4579 }
 0x6fc   :  { %v3164_v13 = vmul.f32 %v4580_v41, %v6042_v51  ;;  %v3165_v33 = vmul.f32 %v4580_v41, %v6057_v55  ;;  %v4582_v0 = vpop.eup %4581 }
 0x6fd   :  { %v3167_v10 = vmul.f32 %v4582_v0, %v6052_v44  ;;  %v3168_v36 = vmul.f32 %v4582_v0, %v6067_v48  ;;  %v4584_v23 = vpop.eup %4583  ;;  %v2384_v44 = vrot.slane %v6386_v35, %v7076_v42 }
 0x6fe   :  { %3189 = vperm.xlu1 %4468, %v3164_v13   ;;  %3194 = vperm.xlu0 %4467, %v3165_v33   ;;  %v2407_v51 = vmul.f32 %v4584_v23, %v6062_v53  ;;  %v2408_v55 = vmul.f32 %v4584_v23, %v6077_v16  ;;  %v4586_v34 = vpop.eup %4585  ;;  %v7149_v13 = vld [vmem:[#allocation33_spill] sm:$0xff]  ;;  %v7152_v23 = vld [vmem:[#allocation58_spill] sm:$0xff] }
 0x6ff   :  { %v3170_v48 = vmul.f32 %v4586_v34, %v6072_v52  ;;  %v3171_v30 = vmul.f32 %v4586_v34, %v6087_v4  ;;  %v4588_v8 = vpop.eup %4587  ;;  %4595 = vrcp.f32 %v2384_v44  ;;  %v2388_v52 = vrot.slane %v6386_v35, %v7136_v25  ;;  %v7155_v44 = vld [vmem:[#allocation70_spill] sm:$0xff] }
 0x700   :  { %v2410_v53 = vmul.f32 %v4588_v8, %v6082_v7  ;;  %v2411_v16 = vmul.f32 %v4588_v8, %v6097_v38  ;;  %v4590_v19 = vpop.eup %4589  ;;  %4597 = vrcp.f32 %v3146_v45  ;;  %v7139_v7 = vld [vmem:[#allocation23_spill] sm:$0xff]  ;;  %vm3903_vm4 = vcmp.ge.f32.partialorder %v7155_v44, %v6384_v24 }
 0x701   :  { %v3173_v4 = vmul.f32 %v4590_v19, %v7137_v40  ;;  %v3174_v29 = vmul.f32 %v4590_v19, %v7138_v27  ;;  %v4592_v59 = vpop.eup %4591  ;;  %4599 = vrcp.f32 %v2388_v52  ;;  %v1602_v24 = vrot.slane %v6400_v1, %v4916_v15  ;;  %v7156_v52 = vld [vmem:[#allocation75_spill] sm:$0xff] }
 0x702   :  { %3199 = vperm.xlu1 %4468, %v3167_v10   ;;  %3204 = vperm.xlu0 %4467, %v3168_v36   ;;  %v2413_v38 = vmul.f32 %v4592_v59, %v7139_v7  ;;  %v2414_v39 = vmul.f32 %v4592_v59, %v7140_v56  ;;  %v4594_v63 = vpop.eup %4593  ;;  %4601 = vrcp.f32 %v3150_v6  ;;  %v7151_v10 = vld [vmem:[#allocation44_spill] sm:$0xff]  ;;  %v1610_v45 = vrot.slane %v6400_v1, %v7071_v47  ;;  %v7158_v7 = vld [vmem:[#allocation61_spill] sm:$0xff] }
 0x703   :  { %v3176_v35 = vmul.f32 %v4594_v63, %v7141_v22  ;;  %v3177_v62 = vmul.f32 %v4594_v63, %v7142_v54  ;;  %4603 = vrcp.f32 %v3154_v14  ;;  %v7159_v56 = vld [vmem:[#allocation64_spill] sm:$0xff]  ;;  %v1618_v6 = vrot.slane %v6400_v1, %v7076_v42  ;;  %v7160_v54 = vld [vmem:[#allocation46_spill] sm:$0xff] }
 0x704   :  { %v7161_v14 = vld [vmem:[#allocation66_spill] sm:$0xff] }
 0x706   :  { %2453 = vperm.xlu1 %4468, %v2407_v51   ;;  %2458 = vperm.xlu0 %4467, %v2408_v55   ;;  %v7153_v55 = vld [vmem:[#allocation74_spill] sm:$0xff] }
 0x707   :  { %vm3857_vm3 = vcmp.eq.f32.partialorder %v7153_v55, %v6382_v11  ;;  %v3904_v8 = vsel %vm3903_vm4, %v7153_v55, 8.0  ;;  %v1598_v11 = vrot.slane %v6400_v1, %v7067_v49 }
 0x708   :  { %v6459_v34 = vsel %vm3857_vm3, -1e+30, %v7154_v46  ;;  %v6501_v46 = vld [vmem:[#allocation5 + $0x10] sm:$0xff] }
 0x70a   :  { %3209 = vperm.xlu1 %4468, %v3170_v48   ;;  %3214 = vperm.xlu0 %4467, %v3171_v30   ;;  %v3859_v48 = vsel %vm3846_vm2, %v6459_v34, -inf  ;;  %v1594_v30 = vrot.slane %v6400_v1, %v4906_v9 }
 0x70c   :  { %v4596_v26 = vpop.eup %4595  ;;  %4605 = vrcp.f32 %v1594_v30  ;;  %v6504_v30 = vld [vmem:[#allocation5 + $0x18] sm:$0xff] }
 0x70d   :  { %v2416_v61 = vmul.f32 %v4596_v26, %v7143_v20  ;;  %v2417_v3 = vmul.f32 %v4596_v26, %v7144_v60  ;;  %v4598_v21 = vpop.eup %4597  ;;  %4607 = vrcp.f32 %v1598_v11  ;;  %v1622_v20 = vrot.slane %v6400_v1, %v7136_v25  ;;  %v7162_v60 = vld [vmem:[#allocation32_spill] sm:$0xff] }
 0x70e   :  { %2463 = vperm.xlu1 %4468, %v2410_v53   ;;  %2468 = vperm.xlu0 %4467, %v2411_v16   ;;  %v3179_v50 = vmul.f32 %v4598_v21, %v7145_v28  ;;  %v3180_v32 = vmul.f32 %v4598_v21, %v7146_v58  ;;  %v4600_v5 = vpop.eup %4599  ;;  %v3905_v53 = vsel %vm3846_vm2, %v3904_v8, inf  ;;  %4609 = vrcp.f32 %v1602_v24  ;;  %v7163_v21 = vld [vmem:[#allocation59_spill] sm:$0xff]  ;;  %v7168_v24 = vld [vmem:[#allocation69_spill] sm:$0xff] }
 0x70f   :  { %v2419_v43 = vmul.f32 %v4600_v5, %v7147_v57  ;;  %v2420_v12 = vmul.f32 %v4600_v5, %v7148_v17  ;;  %v4602_v41 = vpop.eup %4601  ;;  %v1606_v16 = vrot.slane %v6400_v1, %v7070_v18  ;;  %v7164_v5 = vld [vmem:[#allocation60_spill] sm:$0xff] }
 0x710   :  { %v3182_v33 = vmul.f32 %v4602_v41, %v7149_v13  ;;  %v3183_v0 = vmul.f32 %v4602_v41, %v7150_v2  ;;  %v4604_v31 = vpop.eup %4603  ;;  %v7166_v13 = vld [vmem:[#allocation63_spill] sm:$0xff]  ;;  %v7167_v2 = vld [vmem:[#allocation65_spill] sm:$0xff] }
 0x711   :  { %v3185_v36 = vmul.f32 %v4604_v31, %v7151_v10  ;;  %v3186_v51 = vmul.f32 %v4604_v31, %v7152_v23  ;;  %4611 = vrcp.f32 %v1606_v16  ;;  %v6495_v10 = vld [vmem:[#allocation5 + $0x8] sm:$0xff]  ;;  %v6498_v23 = vld [vmem:[#allocation5] sm:$0xff] }
 0x712   :  { %3219 = vperm.xlu1 %4468, %v3173_v4   ;;  %3224 = vperm.xlu0 %4467, %v3174_v29   ;;  %v7157_v4 = vld [vmem:[#allocation21_spill] sm:$0xff]  ;;  %4613 = vrcp.f32 %v1610_v45  ;;  %v1614_v29 = vrot.slane %v6400_v1, %v7072_v37  ;;  %v7169_v45 = vld [vmem:[#allocation67_spill] sm:$0xff] }
 0x714   :  { %4615 = vrcp.f32 %v1614_v29 }
 0x715   :  { %4617 = vrcp.f32 %v1618_v6 }
 0x716   :  { %2473 = vperm.xlu1 %4468, %v2413_v38   ;;  %2478 = vperm.xlu0 %4467, %v2414_v39   ;;  %4619 = vrcp.f32 %v1622_v20 }
 0x719   :  { %v4606_v19 = vpop.eup %4605 }
 0x71a   :  { %3229 = vperm.xlu1 %4468, %v3176_v35   ;;  %3234 = vperm.xlu0 %4467, %v3177_v62   ;;  %v1633_v40 = vmul.f32 %v4606_v19, %v7156_v52  ;;  %v1632_v27 = vmul.f32 %v4606_v19, %v7157_v4  ;;  %v4608_v59 = vpop.eup %4607 }
 0x71b   :  { %v1635_v38 = vmul.f32 %v4608_v59, %v7158_v7  ;;  %v1636_v39 = vmul.f32 %v4608_v59, %v7159_v56  ;;  %v4610_v63 = vpop.eup %4609 }
 0x71c   :  { %v1638_v62 = vmul.f32 %v4610_v63, %v7160_v54  ;;  %v1639_v26 = vmul.f32 %v4610_v63, %v7161_v14  ;;  %v7170_v63 = vld [vmem:[#allocation71_spill] sm:$0xff] }
 0x71e   :  { %2483 = vperm.xlu1 %4468, %v2416_v61   ;;  %2488 = vperm.xlu0 %4467, %v2417_v3   ;;  %v4612_v61 = vpop.eup %4611 }
 0x71f   :  { %v1641_v3 = vmul.f32 %v4612_v61, %v7162_v60  ;;  %v1642_v28 = vmul.f32 %v4612_v61, %v7163_v21 }
 0x722   :  { %3239 = vperm.xlu1 %4468, %v3179_v50   ;;  %3244 = vperm.xlu0 %4467, %v3180_v32   ;;  %v4614_v50 = vpop.eup %4613 }
 0x723   :  { %v1644_v57 = vmul.f32 %v4614_v50, %v7164_v5 }
 0x726   :  { %2493 = vperm.xlu1 %4468, %v2419_v43   ;;  %2498 = vperm.xlu0 %4467, %v2420_v12   ;;  %v7165_v43 = vld [vmem:[#allocation62_spill] sm:$0xff]  ;;  %v4616_v12 = vpop.eup %4615 }
 0x727   :  { %v1645_v17 = vmul.f32 %v4614_v50, %v7165_v43  ;;  %v4618_v31 = vpop.eup %4617  ;;  %v6523_v43 = vld [vmem:[#allocation5 + $0x30] sm:$0xff] }
 0x728   :  { %v1650_v16 = vmul.f32 %v4618_v31, %v7168_v24  ;;  %v1651_v19 = vmul.f32 %v4618_v31, %v7169_v45  ;;  %v4620_v52 = vpop.eup %4619 }
 0x72a   :  { %3249 = vperm.xlu1 %4468, %v3182_v33   ;;  %3254 = vperm.xlu0 %4467, %v3183_v0   ;;  %v1647_v33 = vmul.f32 %v4616_v12, %v7166_v13  ;;  %v1648_v0 = vmul.f32 %v4616_v12, %v7167_v2  ;;  %v6526_v12 = vld [vmem:[#allocation5 + $0x38] sm:$0xff] }
 0x72e   :  { %3259 = vperm.xlu1 %4468, %v3185_v36   ;;  %3264 = vperm.xlu0 %4467, %v3186_v51  }
 0x74d   :  { %3860 = vmax.xlane.f32.xlu0 %v3859_v48 }
 0x752   :  { %3906 = vmin.xlane.f32.xlu1 %v3905_v53 }
 0x754   :  { %v2429_v22 = vpop.permute.xlu1 %2428  ;;  %v2424_v35 = vpop.permute.xlu0 %2423 }
 0x755   :  { %v2502_v36 = vmul.f32 %v6495_v10, %v2429_v22  ;;  %v2501_v51 = vmul.f32 %v6498_v23, %v2424_v35  ;;  %v1653_v22 = vmul.f32 %v4620_v52, %v7170_v63  ;;  %v7171_v35 = vld [vmem:[#allocation68_spill] sm:$0xff] }
 0x756   :  { %v1654_v54 = vmul.f32 %v4620_v52, %v7171_v35 }
 0x757   :  { %v2518_v59 = vsel %vm239_vm7, %v2502_v36, 0.0  ;;  %v2517_v7 = vsel %vm239_vm7, %v2501_v51, 0.0 }
 0x758   :  { %v2434_v58 = vpop.permute.xlu1 %2433  ;;  %v2439_v32 = vpop.permute.xlu0 %2438 }
 0x759   :  { %v2503_v48 = vmul.f32 %v6501_v46, %v2434_v58  ;;  %v2504_v8 = vmul.f32 %v6504_v30, %v2439_v32 }
 0x75b   :  { %v2527_v56 = vsel %vm239_vm7, %v2504_v8, 0.0  ;;  %v6533_v8 = vld [vmem:[#allocation5 + $0x40] sm:$0xff] }
 0x75c   :  { %v2444_v1 = vpop.permute.xlu1 %2443  ;;  %v2449_v41 = vpop.permute.xlu0 %2448 }
 0x763   :  { %1662 = vperm.xlu1 %4468, %v1633_v40   ;;  %1657 = vperm.xlu0 %4467, %v1632_v27   ;;  %v6509_v40 = vld [vmem:[#allocation5 + $0x20] sm:$0xff]  ;;  %v6512_v27 = vld [vmem:[#allocation5 + $0x28] sm:$0xff] }
 0x764   :  { %v2505_v4 = vmul.f32 %v6509_v40, %v2444_v1  ;;  %v2506_v29 = vmul.f32 %v6512_v27, %v2449_v41 }
 0x766   :  { %v2536_v14 = vsel %vm239_vm7, %v2506_v29, 0.0 }
 0x767   :  { %1667 = vperm.xlu1 %4468, %v1635_v38   ;;  %1672 = vperm.xlu0 %4467, %v1636_v39   ;;  %v2526_v38 = vsel %vm239_vm7, %v2503_v48, 0.0 }
 0x768   :  { %v2528_v20 = vadd.f32 %v2527_v56, %v2526_v38 }
 0x76b   :  { %1677 = vperm.xlu1 %4468, %v1638_v62   ;;  %1682 = vperm.xlu0 %4467, %v1639_v26   ;;  %v2535_v62 = vsel %vm239_vm7, %v2505_v4, 0.0  ;;  %v2519_v26 = vadd.f32 %v2518_v59, %v2517_v7 }
 0x76c   :  { %v2537_v61 = vadd.f32 %v2536_v14, %v2535_v62 }
 0x76d   :  { %v2520_v21 = vrot.slane %v2519_v26, 4 }
 0x76e   :  { %v2538_v50 = vrot.slane %v2537_v61, 4 }
 0x76f   :  { %1687 = vperm.xlu1 %4468, %v1641_v3   ;;  %1692 = vperm.xlu0 %4467, %v1642_v28   ;;  %v2529_v28 = vrot.slane %v2528_v20, 4  ;;  %v2521_v5 = vadd.f32 %v2520_v21, %v2519_v26 }
 0x770   :  { %v2539_v41 = vadd.f32 %v2538_v50, %v2537_v61  ;;  %v6549_v61 = vld [vmem:[#allocation5 + $0x50] sm:$0xff] }
 0x771   :  { %v2522_v31 = vrot.slane %v2521_v5, 2 }
 0x773   :  { %1697 = vperm.xlu1 %4468, %v1644_v57   ;;  %1702 = vperm.xlu0 %4467, %v1645_v17   ;;  %v2530_v57 = vadd.f32 %v2529_v28, %v2528_v20  ;;  %v2523_v38 = vadd.f32 %v2522_v31, %v2521_v5 }
 0x775   :  { %v2531_v36 = vrot.slane %v2530_v57, 2 }
 0x777   :  { %1707 = vperm.xlu1 %4468, %v1647_v33   ;;  %1712 = vperm.xlu0 %4467, %v1648_v0   ;;  %v2532_v56 = vadd.f32 %v2531_v36, %v2530_v57 }
 0x779   :  { %v3190_v53 = vpop.permute.xlu1 %3189  ;;  %v3195_v11 = vpop.permute.xlu0 %3194 }
 0x77a   :  { %v3267_v2 = vmul.f32 %v6498_v23, %v3190_v53  ;;  %v3268_v0 = vmul.f32 %v6495_v10, %v3195_v11 }
 0x77b   :  { %1717 = vperm.xlu1 %4468, %v1650_v16   ;;  %1722 = vperm.xlu0 %4467, %v1651_v19   ;;  %v6536_v16 = vld [vmem:[#allocation5 + $0x48] sm:$0xff]  ;;  %v2540_v19 = vrot.slane %v2539_v41, 2 }
 0x77c   :  { %v3283_v29 = vsel %vm239_vm7, %v3267_v2, 0.0  ;;  %v3284_v59 = vsel %vm239_vm7, %v3268_v0, 0.0 }
 0x77d   :  { %v3200_v39 = vpop.permute.xlu1 %3199  ;;  %v3205_v6 = vpop.permute.xlu0 %3204  ;;  %v2541_v35 = vadd.f32 %v2540_v19, %v2539_v41 }
 0x77e   :  { %v3269_v52 = vmul.f32 %v6501_v46, %v3200_v39  ;;  %v3270_v53 = vmul.f32 %v6504_v30, %v3205_v6 }
 0x77f   :  { %1727 = vperm.xlu1 %4468, %v1653_v22   ;;  %1732 = vperm.xlu0 %4467, %v1654_v54   ;;  %v3285_v54 = vadd.f32 %v3284_v59, %v3283_v29  ;;  %v2542_v41 = vrot.slane %v2541_v35, 1 }
 0x780   :  { %v3292_v62 = vsel %vm239_vm7, %v3269_v52, 0.0  ;;  %v3293_v39 = vsel %vm239_vm7, %v3270_v53, 0.0 }
 0x781   :  { %v2454_v60 = vpop.permute.xlu1 %2453  ;;  %v2459_v3 = vpop.permute.xlu0 %2458 }
 0x782   :  { %v2507_v17 = vmul.f32 %v6523_v43, %v2454_v60  ;;  %v2508_v1 = vmul.f32 %v6526_v12, %v2459_v3  ;;  %v6552_v3 = vld [vmem:[#allocation5 + $0x58] sm:$0xff] }
 0x784   :  { %v2544_v51 = vsel %vm239_vm7, %v2507_v17, 0.0  ;;  %v2545_v48 = vsel %vm239_vm7, %v2508_v1, 0.0  ;;  %v2524_v17 = vrot.slane %v2523_v38, 1  ;;  %v2533_v1 = vrot.slane %v2532_v56, 1 }
 0x785   :  { %v3210_v58 = vpop.permute.xlu1 %3209  ;;  %v3215_v32 = vpop.permute.xlu0 %3214  ;;  %v2546_v7 = vadd.f32 %v2545_v48, %v2544_v51 }
 0x786   :  { %v3271_v26 = vmul.f32 %v6509_v40, %v3210_v58  ;;  %v3272_v20 = vmul.f32 %v6512_v27, %v3215_v32 }
 0x787   :  { %v2547_v28 = vrot.slane %v2546_v7, 4 }
 0x788   :  { %v3301_v36 = vsel %vm239_vm7, %v3271_v26, 0.0  ;;  %v3302_v51 = vsel %vm239_vm7, %v3272_v20, 0.0  ;;  %v6567_v26 = vld [vmem:[#allocation5 + $0x60] sm:$0xff]  ;;  %v6570_v20 = vld [vmem:[#allocation5 + $0x68] sm:$0xff] }
 0x789   :  { %v2464_v13 = vpop.permute.xlu1 %2463  ;;  %v2469_v33 = vpop.permute.xlu0 %2468  ;;  %v3303_v59 = vadd.f32 %v3302_v51, %v3301_v36 }
 0x78a   :  { %v2509_v24 = vmul.f32 %v6533_v8, %v2464_v13  ;;  %v2510_v45 = vmul.f32 %v6536_v16, %v2469_v33  ;;  %v3286_v13 = vrot.slane %v3285_v54, 4  ;;  %v3294_v33 = vadd.f32 %v3293_v39, %v3292_v62 }
 0x78c   :  { %v2553_v63 = vsel %vm239_vm7, %v2509_v24, 0.0  ;;  %v2554_v22 = vsel %vm239_vm7, %v2510_v45, 0.0  ;;  %v2548_v45 = vadd.f32 %v2547_v28, %v2546_v7  ;;  %v3287_v29 = vadd.f32 %v3286_v13, %v3285_v54 }
 0x78d   :  { %v3220_v11 = vpop.permute.xlu1 %3219  ;;  %v3225_v4 = vpop.permute.xlu0 %3224  ;;  %v2555_v50 = vadd.f32 %v2554_v22, %v2553_v63 }
 0x78e   :  { %v3273_v5 = vmul.f32 %v6523_v43, %v3220_v11  ;;  %v3274_v57 = vmul.f32 %v6526_v12, %v3225_v4  ;;  %v2534_v11 = vadd.f32 %v2533_v1, %v2532_v56  ;;  %v2525_v56 = vadd.f32 %v2524_v17, %v2523_v38 }
 0x78f   :  { %v2556_v19 = vrot.slane %v2555_v50, 4  ;;  %v2549_v54 = vrot.slane %v2548_v45, 2  ;;  %v3288_v13 = vrot.slane %v3287_v29, 2 }
 0x790   :  { %v3310_v52 = vsel %vm239_vm7, %v3273_v5, 0.0  ;;  %v3311_v53 = vsel %vm239_vm7, %v3274_v57, 0.0 }
 0x791   :  { %v2474_v6 = vpop.permute.xlu1 %2473  ;;  %v2479_v14 = vpop.permute.xlu0 %2478  ;;  %v2557_v28 = vadd.f32 %v2556_v19, %v2555_v50  ;;  %v2550_v17 = vadd.f32 %v2549_v54, %v2548_v45 }
 0x792   :  { %v2511_v60 = vmul.f32 %v6549_v61, %v2474_v6  ;;  %v2512_v21 = vmul.f32 %v6552_v3, %v2479_v14  ;;  %v3295_v6 = vrot.slane %v3294_v33, 4  ;;  %v3312_v14 = vadd.f32 %v3311_v53, %v3310_v52 }
 0x793   :  { %v2551_v54 = vrot.slane %v2550_v17, 1 }
 0x794   :  { %v2562_v58 = vsel %vm239_vm7, %v2511_v60, 0.0  ;;  %v2563_v32 = vsel %vm239_vm7, %v2512_v21, 0.0  ;;  %v2543_v21 = vadd.f32 %v2542_v41, %v2541_v35  ;;  %v2558_v41 = vrot.slane %v2557_v28, 2 }
 0x795   :  { %v2564_v2 = vadd.f32 %v2563_v32, %v2562_v58  ;;  %v3230_v0 = vpop.permute.xlu1 %3229  ;;  %v3235_v31 = vpop.permute.xlu0 %3234  ;;  %v3379_v32 = vsel %vm840_vm8, %v2534_v11, %v2525_v56  ;;  %v6588_v56 = vld [vmem:[#allocation5 + $0x78] sm:$0xff] }
 0x796   :  { %v3275_v48 = vmul.f32 %v6533_v8, %v3230_v0  ;;  %v3276_v24 = vmul.f32 %v6536_v16, %v3235_v31  ;;  %v3304_v0 = vrot.slane %v3303_v59, 4  ;;  %v6579_v50 = vsel %vm842_vm9, %v2543_v21, %v3379_v32 }
 0x797   :  { %v2565_v4 = vrot.slane %v2564_v2, 4 }
 0x798   :  { %v3319_v63 = vsel %vm239_vm7, %v3275_v48, 0.0  ;;  %v3320_v22 = vsel %vm239_vm7, %v3276_v24, 0.0  ;;  %v3296_v48 = vadd.f32 %v3295_v6, %v3294_v33  ;;  %v3313_v24 = vrot.slane %v3312_v14, 4 }
 0x799   :  { %v2484_v62 = vpop.permute.xlu1 %2483  ;;  %v2489_v39 = vpop.permute.xlu0 %2488  ;;  %v2566_v5 = vadd.f32 %v2565_v4, %v2564_v2  ;;  %v3321_v57 = vadd.f32 %v3320_v22, %v3319_v63  ;;  %v6583_v4 = vadd.f32 %v3288_v13, %v3287_v29  ;;  %v3305_v33 = vadd.f32 %v3304_v0, %v3303_v59 }
 0x79a   :  { %v2513_v7 = vmul.f32 %v6567_v26, %v2484_v62  ;;  %v2514_v60 = vmul.f32 %v6570_v20, %v2489_v39  ;;  %v3297_v6 = vrot.slane %v3296_v48, 2 }
 0x79b   :  { %v2567_v19 = vrot.slane %v2566_v5, 2  ;;  %v3322_v52 = vrot.slane %v3321_v57, 4 }
 0x79c   :  { %v2571_v1 = vsel %vm239_vm7, %v2513_v7, 0.0  ;;  %v2572_v58 = vsel %vm239_vm7, %v2514_v60, 0.0  ;;  %v3314_v7 = vadd.f32 %v3313_v24, %v3312_v14  ;;  %v6585_v60 = vld [vmem:[#allocation5 + $0x70] sm:$0xff]  ;;  %v3290_v14 = vrot.slane %v6583_v4, 1 }
 0x79d   :  { %v2573_v31 = vadd.f32 %v2572_v58, %v2571_v1  ;;  %v3240_v36 = vpop.permute.xlu1 %3239  ;;  %v3245_v51 = vpop.permute.xlu0 %3244  ;;  %v2559_v1 = vadd.f32 %v2558_v41, %v2557_v28  ;;  %v2568_v32 = vadd.f32 %v2567_v19, %v2566_v5  ;;  %v3323_v59 = vadd.f32 %v3322_v52, %v3321_v57 }
 0x79e   :  { %v3277_v38 = vmul.f32 %v6549_v61, %v3240_v36  ;;  %v3278_v35 = vmul.f32 %v6552_v3, %v3245_v51  ;;  %v3298_v41 = vadd.f32 %v3297_v6, %v3296_v48  ;;  %v2552_v5 = vadd.f32 %v2551_v54, %v2550_v17 }
 0x79f   :  { %v2574_v2 = vrot.slane %v2573_v31, 4  ;;  %v2560_v57 = vrot.slane %v2559_v1, 1  ;;  %v2569_v52 = vrot.slane %v2568_v32, 1 }
 0x7a0   :  { %v3328_v53 = vsel %vm239_vm7, %v3277_v38, 0.0  ;;  %v3329_v11 = vsel %vm239_vm7, %v3278_v35, 0.0  ;;  %v3315_v35 = vrot.slane %v3314_v7, 2  ;;  %v3299_v17 = vrot.slane %v3298_v41, 1 }
 0x7a1   :  { %v2575_v63 = vadd.f32 %v2574_v2, %v2573_v31  ;;  %v3330_v22 = vadd.f32 %v3329_v11, %v3328_v53  ;;  %v2494_v62 = vpop.permute.xlu1 %2493  ;;  %v2499_v39 = vpop.permute.xlu0 %2498  ;;  %v3306_v31 = vrot.slane %v3305_v33, 2  ;;  %v3324_v11 = vrot.slane %v3323_v59, 2 }
 0x7a2   :  { %v2515_v45 = vmul.f32 %v6585_v60, %v2494_v62  ;;  %v2516_v21 = vmul.f32 %v6588_v56, %v2499_v39  ;;  %v2561_v6 = vadd.f32 %v2560_v57, %v2559_v1  ;;  %v2570_v25 = vadd.f32 %v2569_v52, %v2568_v32 }
 0x7a3   :  { %v2576_v58 = vrot.slane %v2575_v63, 2  ;;  %v3331_v29 = vrot.slane %v3330_v22, 4 }
 0x7a4   :  { %v2580_v13 = vsel %vm239_vm7, %v2515_v45, 0.0  ;;  %v2581_v0 = vsel %vm239_vm7, %v2516_v21, 0.0 }
 0x7a5   :  { %v3332_v36 = vadd.f32 %v3331_v29, %v3330_v22  ;;  %v2582_v51 = vadd.f32 %v2581_v0, %v2580_v13  ;;  %v3250_v24 = vpop.permute.xlu1 %3249  ;;  %v3255_v38 = vpop.permute.xlu0 %3254  ;;  %v2577_v2 = vadd.f32 %v2576_v58, %v2575_v63  ;;  %v3307_v22 = vadd.f32 %v3306_v31, %v3305_v33 }
 0x7a6   :  { %v3279_v53 = vmul.f32 %v6567_v26, %v3250_v24  ;;  %v3280_v28 = vmul.f32 %v6570_v20, %v3255_v38  ;;  %v3316_v58 = vadd.f32 %v3315_v35, %v3314_v7 }
 0x7a7   :  { %v2583_v19 = vrot.slane %v2582_v51, 4  ;;  %v3333_v45 = vrot.slane %v3332_v36, 2  ;;  %v2578_v0 = vrot.slane %v2577_v2, 1  ;;  %v3308_v7 = vrot.slane %v3307_v22, 1 }
 0x7a8   :  { %v3337_v62 = vsel %vm239_vm7, %v3279_v53, 0.0  ;;  %v3338_v39 = vsel %vm239_vm7, %v3280_v28, 0.0  ;;  %v3325_v53 = vadd.f32 %v3324_v11, %v3323_v59  ;;  %v3317_v35 = vrot.slane %v3316_v58, 1 }
 0x7a9   :  { %v2584_v21 = vadd.f32 %v2583_v19, %v2582_v51  ;;  %v3339_v29 = vadd.f32 %v3338_v39, %v3337_v62  ;;  %v3260_v13 = vpop.permute.xlu1 %3259  ;;  %v3265_v63 = vpop.permute.xlu0 %3264  ;;  %v3334_v31 = vadd.f32 %v3333_v45, %v3332_v36  ;;  %v2579_v39 = vadd.f32 %v2578_v0, %v2577_v2 }
 0x7aa   :  { %v3281_v24 = vmul.f32 %v6585_v60, %v3260_v13  ;;  %v3282_v48 = vmul.f32 %v6588_v56, %v3265_v63  ;;  %v3381_v13 = vsel %vm844_vm10, %v2552_v5, %v6579_v50  ;;  %v3300_v59 = vadd.f32 %v3299_v17, %v3298_v41 }
 0x7ab   :  { %v2585_v54 = vrot.slane %v2584_v21, 2  ;;  %v3340_v38 = vrot.slane %v3339_v29, 4  ;;  %v3382_v32 = vsel %vm846_vm11, %v2561_v6, %v3381_v13  ;;  %v3326_v52 = vrot.slane %v3325_v53, 1 }
 0x7ac   :  { %v3346_v28 = vsel %vm239_vm7, %v3281_v24, 0.0  ;;  %v3347_v33 = vsel %vm239_vm7, %v3282_v48, 0.0  ;;  %v3383_v11 = vsel %vm848_vm12, %v2570_v25, %v3382_v32  ;;  %v3335_v24 = vrot.slane %v3334_v31, 1 }
 0x7ad   :  { %v2586_v51 = vadd.f32 %v2585_v54, %v2584_v21  ;;  %v3341_v19 = vadd.f32 %v3340_v38, %v3339_v29  ;;  %v3348_v62 = vadd.f32 %v3347_v33, %v3346_v28  ;;  %v3291_v29 = vadd.f32 %v3290_v14, %v6583_v4 }
 0x7ae   :  { %v3309_v48 = vadd.f32 %v3308_v7, %v3307_v22  ;;  %v3384_v2 = vsel %vm850_vm14, %v2579_v39, %v3383_v11  ;;  %v3318_v0 = vadd.f32 %v3317_v35, %v3316_v58  ;;  %v3327_v38 = vadd.f32 %v3326_v52, %v3325_v53 }
 0x7af   :  { %v2587_v63 = vrot.slane %v2586_v51, 1  ;;  %v3342_v1 = vrot.slane %v3341_v19, 2  ;;  %v3349_v57 = vrot.slane %v3348_v62, 4  ;;  %v3397_v41 = vsel %vm840_vm8, %v3300_v59, %v3291_v29 }
 0x7b0   :  { %v3336_v25 = vadd.f32 %v3335_v24, %v3334_v31  ;;  %v3398_v6 = vsel %vm842_vm9, %v3309_v48, %v3397_v41 }
 0x7b1   :  { %v3343_v36 = vadd.f32 %v3342_v1, %v3341_v19  ;;  %v3350_v45 = vadd.f32 %v3349_v57, %v3348_v62  ;;  %v2588_v21 = vadd.f32 %v2587_v63, %v2586_v51  ;;  %v3399_v4 = vsel %vm844_vm10, %v3318_v0, %v3398_v6 }
 0x7b2   :  { %v3400_v14 = vsel %vm846_vm11, %v3327_v38, %v3399_v4 }
 0x7b3   :  { %v3344_v50 = vrot.slane %v3343_v36, 1  ;;  %v3351_v5 = vrot.slane %v3350_v45, 2  ;;  %v3385_v54 = vsel %vm852_vm13, %v2588_v21, %v3384_v2  ;;  %v3401_v58 = vsel %vm848_vm12, %v3336_v25, %v3400_v14 }
 0x7b4   :  { %3386 = vrot.lane.b32.xlu1 %v3385_v54, %s4822_s3 }
 0x7b5   :  { %v3352_v17 = vadd.f32 %v3351_v5, %v3350_v45  ;;  %v3345_v28 = vadd.f32 %v3344_v50, %v3343_v36 }
 0x7b7   :  { %v3353_v33 = vrot.slane %v3352_v17, 1  ;;  %v3402_v51 = vsel %vm850_vm14, %v3345_v28, %v3401_v58 }
 0x7b9   :  { %v3354_v22 = vadd.f32 %v3353_v33, %v3352_v17 }
 0x7bb   :  { %v3403_v53 = vsel %vm852_vm13, %v3354_v22, %v3402_v51 }
 0x7bc   :  { %3404 = vrot.lane.b32.xlu0 %v3403_v53, %s4821_s2 }
 0x7d6   :  { %v3861_v19 = vpop.xlane.xlu0 %3860 }
 0x7d7   :  { %vm3862_vm5 = vcmp.ge.f32.partialorder %v6459_v34, %v3861_v19 }
 0x7d8   :  { %v3863_v31 = vsel %vm3862_vm5, %v7153_v55, 8.0 }
 0x7d9   :  { %v3864_v62 = vsel %vm3846_vm2, %v3863_v31, inf }
 0x7db   :  { %v3907_v7 = vpop.xlane.xlu1 %3906  ;;  %3865 = vmin.xlane.f32.xlu0 %v3864_v62 }
 0x7dc   :  { %vm3908_vm6 = vcmp.eq.f32.partialorder %v7153_v55, %v3907_v7 }
 0x7dd   :  { %v6623_v35 = vsel %vm3908_vm6, -1e+30, %v7155_v44 }
 0x7de   :  { %v1658_v39 = vpop.permute.xlu0 %1657  ;;  %v3910_v13 = vsel %vm3846_vm2, %v6623_v35, -inf }
 0x7df   :  { %v1663_v63 = vpop.permute.xlu1 %1662  ;;  %3911 = vmax.xlane.f32.xlu1 %v3910_v13  ;;  %v1735_v44 = vmul.f32 %v6498_v23, %v1658_v39 }
 0x7e0   :  { %v1736_v2 = vmul.f32 %v6495_v10, %v1663_v63 }
 0x7e1   :  { %v1751_v25 = vsel %vm239_vm7, %v1735_v44, 0.0 }
 0x7e2   :  { %v1673_v1 = vpop.permute.xlu0 %1672  ;;  %v1752_v17 = vsel %vm239_vm7, %v1736_v2, 0.0 }
 0x7e3   :  { %v1668_v57 = vpop.permute.xlu1 %1667  ;;  %v1738_v0 = vmul.f32 %v6504_v30, %v1673_v1  ;;  %v1753_v19 = vadd.f32 %v1752_v17, %v1751_v25 }
 0x7e4   :  { %v1737_v50 = vmul.f32 %v6501_v46, %v1668_v57 }
 0x7e5   :  { %v1761_v46 = vsel %vm239_vm7, %v1738_v0, 0.0  ;;  %v1754_v57 = vrot.slane %v1753_v19, 4 }
 0x7e6   :  { %v1683_v32 = vpop.permute.xlu0 %1682 }
 0x7e7   :  { %v1678_v59 = vpop.permute.xlu1 %1677  ;;  %v1740_v5 = vmul.f32 %v6512_v27, %v1683_v32  ;;  %v1760_v27 = vsel %vm239_vm7, %v1737_v50, 0.0 }
 0x7e8   :  { %v1739_v54 = vmul.f32 %v6509_v40, %v1678_v59  ;;  %v1762_v58 = vadd.f32 %v1761_v46, %v1760_v27 }
 0x7ea   :  { %v1693_v52 = vpop.permute.xlu0 %1692  ;;  %v1769_v28 = vsel %vm239_vm7, %v1739_v54, 0.0  ;;  %v1763_v39 = vrot.slane %v1762_v58, 4 }
 0x7eb   :  { %v1688_v11 = vpop.permute.xlu1 %1687  ;;  %v1742_v38 = vmul.f32 %v6526_v12, %v1693_v52 }
 0x7ec   :  { %v1741_v41 = vmul.f32 %v6523_v43, %v1688_v11  ;;  %v1770_v43 = vsel %vm239_vm7, %v1740_v5, 0.0  ;;  %v1764_v11 = vadd.f32 %v1763_v39, %v1762_v58 }
 0x7ed   :  { %v1771_v51 = vadd.f32 %v1770_v43, %v1769_v28 }
 0x7ee   :  { %v1703_v24 = vpop.permute.xlu0 %1702  ;;  %v1778_v4 = vsel %vm239_vm7, %v1741_v41, 0.0  ;;  %v1765_v2 = vrot.slane %v1764_v11, 2 }
 0x7ef   :  { %v1698_v36 = vpop.permute.xlu1 %1697  ;;  %v1744_v23 = vmul.f32 %v6536_v16, %v1703_v24  ;;  %v1772_v63 = vrot.slane %v1771_v51, 4 }
 0x7f0   :  { %v1743_v10 = vmul.f32 %v6533_v8, %v1698_v36  ;;  %v1779_v8 = vsel %vm239_vm7, %v1742_v38, 0.0  ;;  %v1766_v17 = vadd.f32 %v1765_v2, %v1764_v11 }
 0x7f1   :  { %v1773_v36 = vadd.f32 %v1772_v63, %v1771_v51 }
 0x7f2   :  { %v1713_v45 = vpop.permute.xlu0 %1712 }
 0x7f3   :  { %v1708_v21 = vpop.permute.xlu1 %1707  ;;  %v1746_v40 = vmul.f32 %v6552_v3, %v1713_v45  ;;  %v1788_v3 = vsel %vm239_vm7, %v1744_v23, 0.0  ;;  %v1774_v50 = vrot.slane %v1773_v36, 2 }
 0x7f4   :  { %v1745_v12 = vmul.f32 %v6549_v61, %v1708_v21  ;;  %v1787_v61 = vsel %vm239_vm7, %v1743_v10, 0.0  ;;  %v1755_v21 = vadd.f32 %v1754_v57, %v1753_v19 }
 0x7f5   :  { %v1797_v53 = vsel %vm239_vm7, %v1746_v40, 0.0  ;;  %v1789_v7 = vadd.f32 %v1788_v3, %v1787_v61  ;;  %v1775_v10 = vadd.f32 %v1774_v50, %v1773_v36 }
 0x7f6   :  { %v1723_v29 = vpop.permute.xlu0 %1722  ;;  %v1756_v54 = vrot.slane %v1755_v21, 2 }
 0x7f7   :  { %v1718_v48 = vpop.permute.xlu1 %1717  ;;  %v1748_v33 = vmul.f32 %v6570_v20, %v1723_v29  ;;  %v1796_v20 = vsel %vm239_vm7, %v1745_v12, 0.0  ;;  %v1790_v52 = vrot.slane %v1789_v7, 4  ;;  %v1767_v12 = vrot.slane %v1766_v17, 1 }
 0x7f8   :  { %v1747_v16 = vmul.f32 %v6567_v26, %v1718_v48  ;;  %v1780_v26 = vadd.f32 %v1779_v8, %v1778_v4  ;;  %v1798_v13 = vadd.f32 %v1797_v53, %v1796_v20  ;;  %v1776_v28 = vrot.slane %v1775_v10, 1 }
 0x7f9   :  { %v1806_v31 = vsel %vm239_vm7, %v1748_v33, 0.0  ;;  %v1791_v44 = vadd.f32 %v1790_v52, %v1789_v7 }
 0x7fa   :  { %v1733_v6 = vpop.permute.xlu0 %1732  ;;  %v1805_v62 = vsel %vm239_vm7, %v1747_v16, 0.0  ;;  %v1781_v32 = vrot.slane %v1780_v26, 4  ;;  %v1799_v24 = vrot.slane %v1798_v13, 4  ;;  %v1777_v3 = vadd.f32 %v1776_v28, %v1775_v10  ;;  %v7174_v10 = vld [vmem:[#allocation49_spill] sm:$0xff] }
 0x7fb   :  { %v1728_v30 = vpop.permute.xlu1 %1727  ;;  %v1750_v14 = vmul.f32 %v6588_v56, %v1733_v6  ;;  %v1807_v1 = vadd.f32 %v1806_v31, %v1805_v62  ;;  %v1792_v25 = vrot.slane %v1791_v44, 2  ;;  %v7178_v28 = vld [vmem:[#allocation53_spill] sm:$0xff] }
 0x7fc   :  { %v1749_v22 = vmul.f32 %v6585_v60, %v1728_v30  ;;  %v1782_v29 = vadd.f32 %v1781_v32, %v1780_v26  ;;  %v1800_v0 = vadd.f32 %v1799_v24, %v1798_v13  ;;  %v1757_v30 = vadd.f32 %v1756_v54, %v1755_v21 }
 0x7fd   :  { %v1815_v56 = vsel %vm239_vm7, %v1750_v14, 0.0  ;;  %v1808_v45 = vrot.slane %v1807_v1, 4  ;;  %v1793_v40 = vadd.f32 %v1792_v25, %v1791_v44 }
 0x7fe   :  { %v1814_v60 = vsel %vm239_vm7, %v1749_v22, 0.0  ;;  %v1783_v38 = vrot.slane %v1782_v29, 2  ;;  %v1801_v23 = vrot.slane %v1800_v0, 2  ;;  %v1758_v16 = vrot.slane %v1757_v30, 1 }
 0x7ff   :  { %v1816_v59 = vadd.f32 %v1815_v56, %v1814_v60  ;;  %v1809_v5 = vadd.f32 %v1808_v45, %v1807_v1  ;;  %v1794_v14 = vrot.slane %v1793_v40, 1  ;;  %v1768_v22 = vadd.f32 %v1767_v12, %v1766_v17  ;;  %v7177_v12 = vld [vmem:[#allocation52_spill] sm:$0xff] }
 0x800   :  { %v1784_v46 = vadd.f32 %v1783_v38, %v1782_v29  ;;  %v1802_v43 = vadd.f32 %v1801_v23, %v1800_v0  ;;  %v1759_v51 = vadd.f32 %v1758_v16, %v1757_v30  ;;  %v7173_v23 = vld [vmem:[#allocation48_spill] sm:$0xff]  ;;  %v7179_v16 = vld [vmem:[#allocation54_spill] sm:$0xff] }
 0x801   :  { %v1817_v48 = vrot.slane %v1816_v59, 4  ;;  %v1810_v6 = vrot.slane %v1809_v5, 2  ;;  %v1795_v19 = vadd.f32 %v1794_v14, %v1793_v40 }
 0x802   :  { %v1785_v8 = vrot.slane %v1784_v46, 1  ;;  %v1803_v58 = vrot.slane %v1802_v43, 1  ;;  %v3363_v26 = vsel %vm840_vm8, %v1768_v22, %v1759_v51  ;;  %v7182_v51 = vld [vmem:[#allocation28_spill] sm:$0xff] }
 0x803   :  { %v1818_v41 = vadd.f32 %v1817_v48, %v1816_v59  ;;  %v1811_v33 = vadd.f32 %v1810_v6, %v1809_v5  ;;  %v3364_v62 = vsel %vm842_vm9, %v1777_v3, %v3363_v26  ;;  %v3445_v6 = vsel %vm840_vm8, %v7174_v10, %v7173_v23  ;;  %v7184_v26 = vld [vmem:[#allocation37_spill] sm:$0xff] }
 0x804   :  { %v1786_v53 = vadd.f32 %v1785_v8, %v1784_v46  ;;  %v1804_v31 = vadd.f32 %v1803_v58, %v1802_v43  ;;  %v7175_v46 = vld [vmem:[#allocation50_spill] sm:$0xff] }
 0x805   :  { %v1819_v27 = vrot.slane %v1818_v41, 2  ;;  %v1812_v61 = vrot.slane %v1811_v33, 1 }
 0x806   :  { %v3365_v60 = vsel %vm844_vm10, %v1786_v53, %v3364_v62  ;;  %v7185_v62 = vld [vmem:[#allocation38_spill] sm:$0xff] }
 0x807   :  { %v1820_v4 = vadd.f32 %v1819_v27, %v1818_v41  ;;  %v1813_v7 = vadd.f32 %v1812_v61, %v1811_v33  ;;  %v3366_v39 = vsel %vm846_vm11, %v1795_v19, %v3365_v60  ;;  %v7172_v41 = vld [vmem:[#allocation56_spill] sm:$0xff]  ;;  %v7176_v27 = vld [vmem:[#allocation51_spill] sm:$0xff] }
 0x808   :  { %v3367_v63 = vsel %vm848_vm12, %v1804_v31, %v3366_v39  ;;  %v7181_v61 = vld [vmem:[#allocation27_spill] sm:$0xff]  ;;  %v7187_v39 = vld [vmem:[#allocation41_spill] sm:$0xff] }
 0x809   :  { %v1821_v20 = vrot.slane %v1820_v4, 1  ;;  %v3368_v1 = vsel %vm850_vm14, %v1813_v7, %v3367_v63  ;;  %v3424_v53 = vsel %vm840_vm8, %v7182_v51, %v7181_v61 }
 0x80b   :  { %v1822_v56 = vadd.f32 %v1821_v20, %v1820_v4  ;;  %v7180_v4 = vld [vmem:[#allocation55_spill] sm:$0xff]  ;;  %v7183_v20 = vld [vmem:[#allocation34_spill] sm:$0xff] }
 0x80c   :  { %v3425_v19 = vsel %vm842_vm9, %v7183_v20, %v3424_v53 }
 0x80d   :  { %v3369_v57 = vsel %vm852_vm13, %v1822_v56, %v3368_v1  ;;  %v3426_v31 = vsel %vm844_vm10, %v7184_v26, %v3425_v19  ;;  %v7186_v56 = vld [vmem:[#allocation39_spill] sm:$0xff] }
 0x80e   :  { %v3427_v7 = vsel %vm846_vm11, %v7185_v62, %v3426_v31 }
 0x80f   :  { %v3428_v60 = vsel %vm848_vm12, %v7186_v56, %v3427_v7 }
 0x826   :  { %v3387_v13 = vpop.permute.xlu1 %3386 }
 0x827   :  { %v3407_v32 = vsel %vm239_vm7, %v3369_v57, %v3387_v13  ;;  %v3429_v13 = vsel %vm850_vm14, %v7187_v39, %v3428_v60  ;;  %v7188_v57 = vld [vmem:[#allocation45_spill] sm:$0xff] }
 0x82e   :  { %v3405_v59 = vpop.permute.xlu0 %3404 }
 0x82f   :  { %v3408_v52 = vsel %vm892_vm0, %v3407_v32, %v3405_v59  ;;  %v3430_v32 = vsel %vm852_vm13, %v7188_v57, %v3429_v13 }
 0x830   :  { %v3409_v11 = vmul.f32 %v3408_v52, %v3408_v52 }
 0x832   :  { %v3410_v24 = vsel %vm895_vm1, %v3409_v11, 0.0 }
 0x833   :  { %3411 = vadd.xlane.f32.xlu0 %v3410_v24 }
 0x864   :  { %v3866_v36 = vpop.xlane.xlu0 %3865 }
 0x865   :  { %vm3867_vm15 = vcmp.eq.f32.partialorder %v7153_v55, %v3866_v36 }
 0x866   :  { %v3868_v45 = vsel %vm3867_vm15, -1e+30, %v6459_v34 }
 0x867   :  { %v3869_v21 = vsel %vm3846_vm2, %v3868_v45, -inf }
 0x868   :  { %v3912_v29 = vpop.xlane.xlu1 %3911  ;;  %3870 = vmax.xlane.f32.xlu0 %v3869_v21 }
 0x869   :  { %vm3913_vm3 = vcmp.ge.f32.partialorder %v6623_v35, %v3912_v29 }
 0x86a   :  { %v3914_v48 = vsel %vm3913_vm3, %v7153_v55, 8.0 }
 0x86b   :  { %v3915_v44 = vsel %vm3846_vm2, %v3914_v48, inf }
 0x86c   :  { %3916 = vmin.xlane.f32.xlu1 %v3915_v44 }
 0x8bc   :  { %v3412_v2 = vpop.xlane.xlu0 %3411 }
 0x8bd   :  { %v3413_v0 = vmax.f32 %v3412_v2, 1e-24 }
 0x8bf   :  { %4621 = vrsqrt.f32 %v3413_v0 }
 0x8cc   :  { %v4622_v50 = vpop.eup %4621 }
 0x8cd   :  { %v3415_v5 = vmul.f32 %v4622_v50, %v3408_v52 }
 0x8cf   :  { %3454 = vrot.lane.b32.xlu0 %v3415_v5, %s4822_s3  ;;  %v7189_v5 = vmov 0.0  }
 0x8f1   :  { %v3871_v25 = vpop.xlane.xlu0 %3870 }
 0x8f2   :  { %vm3872_vm4 = vcmp.ge.f32.partialorder %v3868_v45, %v3871_v25 }
 0x8f3   :  { %v3873_v17 = vsel %vm3872_vm4, %v7153_v55, 8.0 }
 0x8f4   :  { %v3874_v30 = vsel %vm3846_vm2, %v3873_v17, inf }
 0x8f5   :  { %v3917_v54 = vpop.xlane.xlu1 %3916 }
 0x8f6   :  { %vm3918_vm0 = vcmp.eq.f32.partialorder %v7153_v55, %v3917_v54 }
 0x8f7   :  { %v3919_v34 = vsel %vm3918_vm0, -1e+30, %v6623_v35  ;;  %v3446_v35 = vsel %vm842_vm9, %v7175_v46, %v3445_v6  ;;  %v7190_v46 = vld [vmem:[#allocation26_spill] sm:$0xff] }
 0x8f8   :  { %v3920_v38 = vsel %vm3846_vm2, %v3919_v34, -inf  ;;  %v3447_v40 = vsel %vm844_vm10, %v7176_v27, %v3446_v35 }
 0x8f9   :  { %3921 = vmax.xlane.f32.xlu1 %v3920_v38  ;;  %v3448_v43 = vsel %vm846_vm11, %v7177_v12, %v3447_v40 }
 0x8fa   :  { %v3449_v33 = vsel %vm848_vm12, %v7178_v28, %v3448_v43 }
 0x8fb   :  { %v3450_v8 = vsel %vm850_vm14, %v7179_v16, %v3449_v33 }
 0x8fc   :  { %v6698_v14 = vsel %vm852_vm13, %v7180_v4, %v3450_v8 }
 0x90a   :  { %3433 = vrot.lane.b32.xlu1 %v7172_v41, %s4822_s3 }
 0x92e   :  { %3875 = vmin.xlane.f32.xlu1 %v3874_v30 }
 0x941   :  { %v3455_v22 = vpop.permute.xlu0 %3454 }
 0x942   :  { %v3457_v58 = vsel %vm239_vm7, %v6698_v14, %v3455_v22 }
 0x943   :  { %3459 = vst [vmem:[#allocation9] sm:$0xff] %v3457_v58  ;;  %v3466_v3 = vmul.f32 %v3457_v58, %v3457_v58 }
 0x945   :  { %3467 = vadd.xlane.f32.xlu0 %v3466_v3 }
 0x982   :  { %v3922_v63 = vpop.xlane.xlu1 %3921 }
 0x983   :  { %vm3923_vm5 = vcmp.ge.f32.partialorder %v3919_v34, %v3922_v63 }
 0x984   :  { %v3924_v1 = vsel %vm3923_vm5, %v7153_v55, 8.0 }
 0x985   :  { %v3925_v59 = vsel %vm3846_vm2, %v3924_v1, inf }
 0x986   :  { %v3434_v52 = vpop.permute.xlu1 %3433  ;;  %3926 = vmin.xlane.f32.xlu1 %v3925_v59 }
 0x987   :  { %v3436_v11 = vsel %vm239_vm7, %v3430_v32, %v3434_v52 }
 0x988   :  { %3458 = vst [vmem:[#allocation8] sm:$0xff] %v3436_v11  ;;  %v3460_v24 = vmul.f32 %v3436_v11, %v3436_v11 }
 0x98a   :  { %3461 = vadd.xlane.f32.xlu0 %v3460_v24 }
 0x9b7   :  { %v3876_v36 = vpop.xlane.xlu1 %3875 }
 0x9b8   :  { %vm3877_vm6 = vcmp.eq.f32.partialorder %v7153_v55, %v3876_v36 }
 0x9b9   :  { %v3878_v21 = vsel %vm3877_vm6, -1e+30, %v3868_v45 }
 0x9ba   :  { %v3879_v29 = vsel %vm3846_vm2, %v3878_v21, -inf }
 0x9bb   :  { %3880 = vmax.xlane.f32.xlu0 %v3879_v29 }
 0x9ce   :  { %v3468_v48 = vpop.xlane.xlu0 %3467 }
 0x9cf   :  { %v3469_v44 = vmax.f32 %v3468_v48, 1e-16 }
 0x9d1   :  { %4623 = vrsqrt.f32 %v3469_v44 }
 0x9de   :  { %v4624_v2 = vpop.eup %4623 }
 0x9df   :  { %v3471_v0 = vmul.f32 %v4624_v2, %v3457_v58 }
 0x9e1   :  { %4447 = vmatpush3.xpose.msra.mxu1 %v3471_v0 }
 0xa0f   :  { %v3927_v50 = vpop.xlane.xlu1 %3926 }
 0xa10   :  { %vm3928_vm15 = vcmp.eq.f32.partialorder %v7153_v55, %v3927_v50 }
 0xa11   :  { %v4388_v54 = vsel %vm3928_vm15, 1.0, %v7189_v5 }
 0xa12   :  { %v4054_v34 = vrot.slane %v4388_v54, %v4906_v9  ;;  %v4061_v38 = vrot.slane %v4388_v54, %v7067_v49  ;;  %v4068_v17 = vrot.slane %v4388_v54, %v4916_v15  ;;  %v4082_v23 = vrot.slane %v4388_v54, %v7071_v47 }
 0xa13   :  { %v3462_v25 = vpop.xlane.xlu0 %3461  ;;  %v4075_v10 = vrot.slane %v4388_v54, %v7070_v18  ;;  %v4096_v6 = vrot.slane %v4388_v54, %v7076_v42  ;;  %v4089_v30 = vrot.slane %v4388_v54, %v7072_v37  ;;  %v4103_v35 = vrot.slane %v4388_v54, %v7190_v46 }
 0xa14   :  { %v3463_v45 = vmax.f32 %v3462_v25, 1e-16  ;;  %4056 = vbcast.lane.b32.xlu1 %v4054_v34, 256  ;;  %4063 = vbcast.lane.b32.xlu0 %v4061_v38, 256 }
 0xa16   :  { %4625 = vrsqrt.f32 %v3463_v45 }
 0xa18   :  { %4070 = vbcast.lane.b32.xlu1 %v4068_v17, 256  ;;  %4084 = vbcast.lane.b32.xlu0 %v4082_v23, 256 }
 0xa1c   :  { %4077 = vbcast.lane.b32.xlu1 %v4075_v10, 256  ;;  %4098 = vbcast.lane.b32.xlu0 %v4096_v6, 256 }
 0xa20   :  { %4091 = vbcast.lane.b32.xlu1 %v4089_v30, 256 }
 0xa23   :  { %v4626_v27 = vpop.eup %4625 }
 0xa24   :  { %4105 = vbcast.lane.b32.xlu1 %v4103_v35, 256  ;;  %v6732_v40 = vmul.f32 %v4626_v27, %v3436_v11 }
 0xa26   :  { %4449 = vmatmul.mubr.f32.vlgmr.msra.gmra.mxu1 %v6732_v40 }
 0xa44   :  { %v3881_v12 = vpop.xlane.xlu0 %3880 }
 0xa45   :  { %vm3882_vm3 = vcmp.ge.f32.partialorder %v3878_v21, %v3881_v12 }
 0xa46   :  { %v3883_v43 = vsel %vm3882_vm3, %v7153_v55, 8.0 }
 0xa47   :  { %v3884_v28 = vsel %vm3846_vm2, %v3883_v43, inf }
 0xa48   :  { %3885 = vmin.xlane.f32.xlu0 %v3884_v28 }
 0xa86   :  { %v4057_v33 = vpop.permute.xlu1 %4056  ;;  %v4064_v16 = vpop.permute.xlu0 %4063 }
 0xa87   :  { %v4107_v8 = vmul.f32 %v4057_v33, %v7172_v41  ;;  %v4108_v4 = vmul.f32 %v4064_v16, %v7172_v41 }
 0xa89   :  { %v4115_v22 = vsel %vm895_vm1, %v4107_v8, 0.0  ;;  %v4122_v58 = vsel %vm895_vm1, %v4108_v4, 0.0 }
 0xa8a   :  { %v4116_v3 = vrot.slane %v4115_v22, 4  ;;  %v4123_v61 = vrot.slane %v4122_v58, 4  ;;  %v4071_v51 = vpop.permute.xlu1 %4070  ;;  %v4085_v53 = vpop.permute.xlu0 %4084 }
 0xa8b   :  { %v4109_v20 = vmul.f32 %v4071_v51, %v7172_v41  ;;  %v4111_v19 = vmul.f32 %v4085_v53, %v7172_v41 }
 0xa8c   :  { %v4117_v26 = vadd.f32 %v4116_v3, %v4115_v22  ;;  %v4124_v31 = vadd.f32 %v4123_v61, %v4122_v58 }
 0xa8d   :  { %v4129_v62 = vsel %vm895_vm1, %v4109_v20, 0.0  ;;  %v4143_v7 = vsel %vm895_vm1, %v4111_v19, 0.0 }
 0xa8e   :  { %v4118_v56 = vrot.slane %v4117_v26, 2  ;;  %v4125_v60 = vrot.slane %v4124_v31, 2  ;;  %v4130_v39 = vrot.slane %v4129_v62, 4  ;;  %v4144_v13 = vrot.slane %v4143_v7, 4  ;;  %v4078_v63 = vpop.permute.xlu1 %4077  ;;  %v4099_v1 = vpop.permute.xlu0 %4098 }
 0xa8f   :  { %v4110_v57 = vmul.f32 %v4078_v63, %v7172_v41  ;;  %v4113_v32 = vmul.f32 %v4099_v1, %v7172_v41 }
 0xa90   :  { %v4119_v59 = vadd.f32 %v4118_v56, %v4117_v26  ;;  %v4126_v52 = vadd.f32 %v4125_v60, %v4124_v31  ;;  %v4131_v11 = vadd.f32 %v4130_v39, %v4129_v62  ;;  %v4145_v24 = vadd.f32 %v4144_v13, %v4143_v7 }
 0xa91   :  { %v4136_v36 = vsel %vm895_vm1, %v4110_v57, 0.0  ;;  %v4157_v21 = vsel %vm895_vm1, %v4113_v32, 0.0 }
 0xa92   :  { %v4120_v29 = vrot.slane %v4119_v59, 1  ;;  %v4127_v48 = vrot.slane %v4126_v52, 1  ;;  %v4132_v44 = vrot.slane %v4131_v11, 2  ;;  %v4146_v2 = vrot.slane %v4145_v24, 2  ;;  %v4092_v0 = vpop.permute.xlu1 %4091 }
 0xa93   :  { %v4137_v50 = vrot.slane %v4136_v36, 4  ;;  %v4158_v54 = vrot.slane %v4157_v21, 4  ;;  %v4112_v34 = vmul.f32 %v4092_v0, %v7172_v41 }
 0xa94   :  { %v4121_v38 = vadd.f32 %v4120_v29, %v4119_v59  ;;  %v4128_v25 = vadd.f32 %v4127_v48, %v4126_v52  ;;  %v4133_v45 = vadd.f32 %v4132_v44, %v4131_v11  ;;  %v4147_v17 = vadd.f32 %v4146_v2, %v4145_v24 }
 0xa95   :  { %v4138_v23 = vadd.f32 %v4137_v50, %v4136_v36  ;;  %v4159_v10 = vadd.f32 %v4158_v54, %v4157_v21  ;;  %v4150_v6 = vsel %vm895_vm1, %v4112_v34, 0.0 }
 0xa96   :  { %v4198_v30 = vmul.f32 %v4121_v38, %v4121_v38  ;;  %v4199_v35 = vmul.f32 %v4128_v25, %v4128_v25  ;;  %v4134_v27 = vrot.slane %v4133_v45, 1  ;;  %v4106_v12 = vpop.permute.xlu1 %4105  ;;  %v4151_v33 = vrot.slane %v4150_v6, 4 }
 0xa97   :  { %v4139_v43 = vrot.slane %v4138_v23, 2  ;;  %v4160_v28 = vrot.slane %v4159_v10, 2  ;;  %v4148_v4 = vrot.slane %v4147_v17, 1  ;;  %v4114_v22 = vmul.f32 %v4106_v12, %v7172_v41 }
 0xa98   :  { %v4214_v16 = vsel %vm840_vm8, %v4199_v35, %v4198_v30  ;;  %v4135_v8 = vadd.f32 %v4134_v27, %v4133_v45  ;;  %v4152_v61 = vadd.f32 %v4151_v33, %v4150_v6  ;;  %v4256_v39 = vsel %vm840_vm8, %v4128_v25, %v4121_v38 }
 0xa99   :  { %v4140_v58 = vadd.f32 %v4139_v43, %v4138_v23  ;;  %v4161_v3 = vadd.f32 %v4160_v28, %v4159_v10  ;;  %v4164_v53 = vsel %vm895_vm1, %v4114_v22, 0.0  ;;  %v4149_v26 = vadd.f32 %v4148_v4, %v4147_v17 }
 0xa9a   :  { %v4200_v51 = vmul.f32 %v4135_v8, %v4135_v8  ;;  %v4153_v19 = vrot.slane %v4152_v61, 2  ;;  %v4165_v62 = vrot.slane %v4164_v53, 4  ;;  %v4257_v41 = vsel %vm842_vm9, %v4135_v8, %v4256_v39 }
 0xa9b   :  { %v4141_v20 = vrot.slane %v4140_v58, 1  ;;  %v4162_v31 = vrot.slane %v4161_v3, 1  ;;  %v4202_v57 = vmul.f32 %v4149_v26, %v4149_v26 }
 0xa9c   :  { %v4215_v7 = vsel %vm842_vm9, %v4200_v51, %v4214_v16  ;;  %v4154_v60 = vadd.f32 %v4153_v19, %v4152_v61  ;;  %v4166_v13 = vadd.f32 %v4165_v62, %v4164_v53 }
 0xa9d   :  { %v4142_v56 = vadd.f32 %v4141_v20, %v4140_v58  ;;  %v4163_v59 = vadd.f32 %v4162_v31, %v4161_v3 }
 0xa9e   :  { %v4155_v1 = vrot.slane %v4154_v60, 1  ;;  %v4167_v52 = vrot.slane %v4166_v13, 2 }
 0xa9f   :  { %v4201_v63 = vmul.f32 %v4142_v56, %v4142_v56  ;;  %v4258_v32 = vsel %vm844_vm10, %v4142_v56, %v4257_v41  ;;  %v4204_v0 = vmul.f32 %v4163_v59, %v4163_v59 }
 0xaa0   :  { %v4156_v11 = vadd.f32 %v4155_v1, %v4154_v60  ;;  %v4168_v36 = vadd.f32 %v4167_v52, %v4166_v13  ;;  %v4259_v48 = vsel %vm846_vm11, %v4149_v26, %v4258_v32 }
 0xaa1   :  { %v4216_v24 = vsel %vm844_vm10, %v4201_v63, %v4215_v7 }
 0xaa2   :  { %v4217_v21 = vsel %vm846_vm11, %v4202_v57, %v4216_v24  ;;  %v4203_v29 = vmul.f32 %v4156_v11, %v4156_v11  ;;  %v4169_v44 = vrot.slane %v4168_v36, 1  ;;  %v4260_v2 = vsel %vm848_vm12, %v4156_v11, %v4259_v48 }
 0xaa3   :  { %v4261_v38 = vsel %vm850_vm14, %v4163_v59, %v4260_v2 }
 0xaa4   :  { %v4218_v50 = vsel %vm848_vm12, %v4203_v29, %v4217_v21  ;;  %v4170_v54 = vadd.f32 %v4169_v44, %v4168_v36 }
 0xaa5   :  { %v4219_v34 = vsel %vm850_vm14, %v4204_v0, %v4218_v50 }
 0xaa6   :  { %v4262_v25 = vsel %vm852_vm13, %v4170_v54, %v4261_v38  ;;  %v4205_v45 = vmul.f32 %v4170_v54, %v4170_v54 }
 0xaa7   :  { %4263 = vrot.lane.b32.xlu1 %v4262_v25, %s4822_s3 }
 0xaa8   :  { %v4220_v17 = vsel %vm852_vm13, %v4205_v45, %v4219_v34 }
 0xad1   :  { %v3886_v23 = vpop.xlane.xlu0 %3885 }
 0xad2   :  { %vm3887_vm0 = vcmp.eq.f32.partialorder %v7153_v55, %v3886_v23 }
 0xad3   :  { %v4387_v10 = vsel %vm3887_vm0, 1.0, %v7189_v5 }
 0xad4   :  { %v3983_v6 = vrot.slane %v4387_v10, %v7190_v46  ;;  %v3934_v30 = vrot.slane %v4387_v10, %v4906_v9  ;;  %v3941_v35 = vrot.slane %v4387_v10, %v7067_v49  ;;  %v3948_v27 = vrot.slane %v4387_v10, %v4916_v15 }
 0xad5   :  { %v3955_v12 = vrot.slane %v4387_v10, %v7070_v18  ;;  %v3962_v43 = vrot.slane %v4387_v10, %v7071_v47  ;;  %v3969_v46 = vrot.slane %v4387_v10, %v7072_v37  ;;  %v3976_v49 = vrot.slane %v4387_v10, %v7076_v42 }
 0xad6   :  { %3985 = vbcast.lane.b32.xlu0 %v3983_v6, 256  ;;  %3936 = vbcast.lane.b32.xlu1 %v3934_v30, 256  ;;  %v4222_v15 = vsel %vm895_vm1, %v4220_v17, 0.0 }
 0xada   :  { %3943 = vbcast.lane.b32.xlu1 %v3941_v35, 256 }
 0xade   :  { %3950 = vbcast.lane.b32.xlu1 %v3948_v27, 256 }
 0xae2   :  { %3957 = vbcast.lane.b32.xlu1 %v3955_v12, 256 }
 0xae6   :  { %v6776_v55 = vpop.f32.mrf.mxu1  ;;  %3964 = vbcast.lane.b32.xlu1 %v3962_v43, 256 }
 0xae7   :  { %3847 = vst.msk [vmem:[#allocation12] sm:$0xff] %vm3846_vm2, %v6776_v55 }
 0xae8   :  { %v4450_v9 = vpop.f32.mrf.mxu1 }
 0xaea   :  { %3971 = vbcast.lane.b32.xlu1 %v3969_v46, 256 }
 0xaee   :  { %3978 = vbcast.lane.b32.xlu1 %v3976_v49, 256 }
 0xaf5   :  { %4223 = vadd.xlane.f32.xlu0 %v4222_v15 }
 0xb19   :  { %v4264_v18 = vpop.permute.xlu1 %4263 }
 0xb1a   :  { %v4266_v28 = vmul.f32 %v4264_v18, %v6732_v40 }
 0xb1c   :  { %4268 = vrot.lane.b32.xlu1 %v4266_v28, %s4824_s5 }
 0xb48   :  { %v3937_v47 = vpop.permute.xlu1 %3936  ;;  %v3986_v4 = vpop.permute.xlu0 %3985 }
 0xb49   :  { %v3987_v33 = vmul.f32 %v3937_v47, %v6698_v14  ;;  %v3994_v61 = vmul.f32 %v3986_v4, %v6698_v14 }
 0xb4b   :  { %v3995_v42 = vsel %vm239_vm7, %v3987_v33, 0.0  ;;  %v4044_v62 = vsel %vm239_vm7, %v3994_v61, 0.0 }
 0xb4c   :  { %v3944_v16 = vpop.permute.xlu1 %3943  ;;  %v3996_v51 = vrot.slane %v3995_v42, 4  ;;  %v4045_v41 = vrot.slane %v4044_v62, 4 }
 0xb4d   :  { %v3988_v8 = vmul.f32 %v3944_v16, %v6698_v14 }
 0xb4e   :  { %v3997_v56 = vadd.f32 %v3996_v51, %v3995_v42  ;;  %v4046_v36 = vadd.f32 %v4045_v41, %v4044_v62 }
 0xb4f   :  { %v4002_v37 = vsel %vm239_vm7, %v3988_v8, 0.0 }
 0xb50   :  { %v3951_v22 = vpop.permute.xlu1 %3950  ;;  %v4003_v58 = vrot.slane %v4002_v37, 4  ;;  %v3998_v59 = vrot.slane %v3997_v56, 2  ;;  %v4047_v25 = vrot.slane %v4046_v36, 2 }
 0xb51   :  { %v3989_v3 = vmul.f32 %v3951_v22, %v6698_v14 }
 0xb52   :  { %v4004_v26 = vadd.f32 %v4003_v58, %v4002_v37  ;;  %v3999_v2 = vadd.f32 %v3998_v59, %v3997_v56  ;;  %v4048_v46 = vadd.f32 %v4047_v25, %v4046_v36 }
 0xb53   :  { %v4009_v53 = vsel %vm239_vm7, %v3989_v3, 0.0 }
 0xb54   :  { %v4010_v20 = vrot.slane %v4009_v53, 4  ;;  %v3958_v19 = vpop.permute.xlu1 %3957  ;;  %v4005_v63 = vrot.slane %v4004_v26, 2  ;;  %v4000_v30 = vrot.slane %v3999_v2, 1  ;;  %v4049_v37 = vrot.slane %v4048_v46, 1 }
 0xb55   :  { %v3990_v31 = vmul.f32 %v3958_v19, %v6698_v14 }
 0xb56   :  { %v4011_v7 = vadd.f32 %v4010_v20, %v4009_v53  ;;  %v4006_v21 = vadd.f32 %v4005_v63, %v4004_v26  ;;  %v4001_v33 = vadd.f32 %v4000_v30, %v3999_v2  ;;  %v7192_v2 = vld [vmem:[#allocation19_spill] sm:$0xff] }
 0xb57   :  { %v4016_v60 = vsel %vm239_vm7, %v3990_v31, 0.0  ;;  %v4050_v31 = vadd.f32 %v4049_v37, %v4048_v46 }
 0xb58   :  { %v4017_v39 = vrot.slane %v4016_v60, 4  ;;  %v3965_v13 = vpop.permute.xlu1 %3964  ;;  %v4012_v57 = vrot.slane %v4011_v7, 2  ;;  %v4007_v45 = vrot.slane %v4006_v21, 1  ;;  %v4171_v61 = vmul.f32 %v4001_v33, %v4001_v33 }
 0xb59   :  { %v3991_v1 = vmul.f32 %v3965_v13, %v6698_v14  ;;  %v4178_v59 = vmul.f32 %v4050_v31, %v4050_v31 }
 0xb5a   :  { %v4018_v32 = vadd.f32 %v4017_v39, %v4016_v60  ;;  %v4013_v44 = vadd.f32 %v4012_v57, %v4011_v7  ;;  %v4008_v49 = vadd.f32 %v4007_v45, %v4006_v21 }
 0xb5b   :  { %v4023_v52 = vsel %vm239_vm7, %v3991_v1, 0.0 }
 0xb5c   :  { %v4019_v11 = vrot.slane %v4018_v32, 2  ;;  %v3972_v24 = vpop.permute.xlu1 %3971  ;;  %v4024_v29 = vrot.slane %v4023_v52, 4  ;;  %v4014_v10 = vrot.slane %v4013_v44, 1  ;;  %v4172_v42 = vmul.f32 %v4008_v49, %v4008_v49 }
 0xb5d   :  { %v3992_v48 = vmul.f32 %v3972_v24, %v6698_v14  ;;  %v4236_v51 = vsel %vm840_vm8, %v4008_v49, %v4001_v33 }
 0xb5e   :  { %v4020_v0 = vadd.f32 %v4019_v11, %v4018_v32  ;;  %v4025_v50 = vadd.f32 %v4024_v29, %v4023_v52  ;;  %v4015_v18 = vadd.f32 %v4014_v10, %v4013_v44  ;;  %v4187_v62 = vsel %vm840_vm8, %v4172_v42, %v4171_v61  ;;  %v7191_v44 = vld [vmem:[#allocation20_spill] sm:$0xff] }
 0xb5f   :  { %v4030_v54 = vsel %vm239_vm7, %v3992_v48, 0.0  ;;  %vm4280_vm8 = vcmp.eq.s32.totalorder %v7192_v2, %v7191_v44 }
 0xb60   :  { %v4031_v34 = vrot.slane %v4030_v54, 4  ;;  %v3979_v38 = vpop.permute.xlu1 %3978  ;;  %v4026_v17 = vrot.slane %v4025_v50, 2  ;;  %v4021_v35 = vrot.slane %v4020_v0, 1  ;;  %v4173_v22 = vmul.f32 %v4015_v18, %v4015_v18 }
 0xb61   :  { %v3993_v23 = vmul.f32 %v3979_v38, %v6698_v14  ;;  %v4237_v20 = vsel %vm842_vm9, %v4015_v18, %v4236_v51 }
 0xb62   :  { %v4032_v6 = vadd.f32 %v4031_v34, %v4030_v54  ;;  %v4027_v27 = vadd.f32 %v4026_v17, %v4025_v50  ;;  %v4022_v16 = vadd.f32 %v4021_v35, %v4020_v0  ;;  %v4188_v39 = vsel %vm842_vm9, %v4173_v22, %v4187_v62 }
 0xb63   :  { %v4037_v12 = vsel %vm239_vm7, %v3993_v23, 0.0  ;;  %v4389_v54 = vsel %vm4280_vm8, 1.0, %v7189_v5  ;;  %v4287_v34 = vsel %vm3846_vm2, %v6776_v55, -inf }
 0xb64   :  { %v4033_v43 = vrot.slane %v4032_v6, 2  ;;  %v4038_v9 = vrot.slane %v4037_v12, 4  ;;  %v4028_v15 = vrot.slane %v4027_v27, 1  ;;  %v4174_v53 = vmul.f32 %v4022_v16, %v4022_v16 }
 0xb65   :  { %v4238_v7 = vsel %vm844_vm10, %v4022_v16, %v4237_v20  ;;  %v4283_v38 = vmul.f32 %v4389_v54, %v6776_v55 }
 0xb66   :  { %v4034_v28 = vadd.f32 %v4033_v43, %v4032_v6  ;;  %v4039_v47 = vadd.f32 %v4038_v9, %v4037_v12  ;;  %v4029_v8 = vadd.f32 %v4028_v15, %v4027_v27  ;;  %v4189_v41 = vsel %vm844_vm10, %v4174_v53, %v4188_v39 }
 0xb67   :  { %v4292_v43 = vmul.f32 50.0, %v6776_v55 }
 0xb68   :  { %v4035_v4 = vrot.slane %v4034_v28, 1  ;;  %v4040_v14 = vrot.slane %v4039_v47, 2  ;;  %v4175_v19 = vmul.f32 %v4029_v8, %v4029_v8  ;;  %v4239_v13 = vsel %vm846_vm11, %v4029_v8, %v4238_v7 }
 0xb6a   :  { %v4036_v58 = vadd.f32 %v4035_v4, %v4034_v28  ;;  %v4041_v3 = vadd.f32 %v4040_v14, %v4039_v47  ;;  %v4190_v57 = vsel %vm846_vm11, %v4175_v19, %v4189_v41 }
 0xb6c   :  { %v4042_v26 = vrot.slane %v4041_v3, 1  ;;  %v4176_v56 = vmul.f32 %v4036_v58, %v4036_v58  ;;  %v4240_v63 = vsel %vm848_vm12, %v4036_v58, %v4239_v13 }
 0xb6e   :  { %v4043_v60 = vadd.f32 %v4042_v26, %v4041_v3  ;;  %v4191_v52 = vsel %vm848_vm12, %v4176_v56, %v4190_v57 }
 0xb70   :  { %v4177_v1 = vmul.f32 %v4043_v60, %v4043_v60  ;;  %v4241_v32 = vsel %vm850_vm14, %v4043_v60, %v4240_v63 }
 0xb71   :  { %v4242_v11 = vsel %vm852_vm13, %v4050_v31, %v4241_v32 }
 0xb72   :  { %v4192_v24 = vsel %vm850_vm14, %v4177_v1, %v4191_v52  ;;  %v4244_v29 = vmul.f32 %v4242_v11, %v6732_v40  ;;  %v4284_v40 = vsel %vm3846_vm2, %v4283_v38, 0.0 }
 0xb73   :  { %v4193_v36 = vsel %vm852_vm13, %v4178_v59, %v4192_v24 }
 0xb74   :  { %v4195_v21 = vsel %vm239_vm7, %v4193_v36, 0.0  ;;  %v4245_v48 = vsel %vm239_vm7, %v4244_v29, 0.0  ;;  %vm4276_vm7 = vcmask 7168  }
 0xb75   :  { %4196 = vadd.xlane.f32.xlu1 %v4195_v21 }
 0xb79   :  { %4246 = vadd.xlane.f32.xlu1 %v4245_v48 }
 0xb7e   :  { %v4224_v45 = vpop.xlane.xlu0 %4223 }
 0xb8e   :  { %v4269_v0 = vpop.permute.xlu1 %4268 }
 0xb8f   :  { %v4271_v50 = vsel %vm895_vm1, %v4269_v0, 0.0 }
 0xb90   :  { %4272 = vadd.xlane.f32.xlu1 %v4271_v50 }
 0xb94   :  { %4288 = vmax.xlane.f32.xlu1 %v4287_v34 }
 0xb98   :  { %4285 = vadd.xlane.f32.xlu1 %v4284_v40 }
 0xbfe   :  { %v4197_v25 = vpop.xlane.xlu1 %4196 }
 0xbff   :  { %v4225_v17 = vadd.f32 %v4224_v45, %v4197_v25 }
 0xc01   :  { %v4226_v23 = vmax.f32 %v4225_v17, 1e-16 }
 0xc02   :  { %v4247_v10 = vpop.xlane.xlu1 %4246 }
 0xc03   :  { %4627 = vrsqrt.f32 %v4226_v23 }
 0xc10   :  { %v4628_v35 = vpop.eup %4627 }
 0xc19   :  { %v4273_v6 = vpop.xlane.xlu1 %4272 }
 0xc1a   :  { %v4274_v30 = vadd.f32 %v4273_v6, %v4247_v10 }
 0xc1c   :  { %v4275_v5 = vmul.f32 %v4628_v35, %v4274_v30 }
 0xc1d   :  { %v4289_v27 = vpop.xlane.xlu1 %4288 }
 0xc1e   :  { %4277 = vst.msk [vmem:[%s6853_s10] sm:$0xff] %vm4276_vm7, %v4275_v5  ;;  %v4290_v12 = vmax.f32 %v4289_v27, %v4275_v5 }
 0xc20   :  { %v4291_v9 = vmul.f32 50.0, %v4290_v12 }
 0xc22   :  { %v4293_v46 = vsub.f32 %v4292_v43, %v4291_v9 }
 0xc24   :  { %v4294_v49 = vmul.f32 1.442695, %v4293_v46 }
 0xc26   :  { %4629 = vpow2.f32 %v4294_v49 }
 0xc33   :  { %v4630_v15 = vpop.eup %4629 }
 0xc34   :  { %v4296_v18 = vsel %vm3846_vm2, %v4630_v15, 0.0 }
 0xc35   :  { %4297 = vadd.xlane.f32.xlu0 %v4296_v18 }
 0xc36   :  { %4734 = shalt.err (!%p4731_p5)
}
 0xc37   :  { %4337 = dma.vmem_to_hbm [thread:$0]  %s4335_s16, 128, %s6850_s7, [#allocation10]  }
 0xc38   :  { %s4743_s21 = scalar_lea.vmem %s4325_s18, 128  ;;  %p4748_p7 = scmp.lt.s32.totalorder %s4325_s18, %s4325_s18 }
 0xc39   :  { %p4744_p6 = scmp.ne.s32.totalorder %s4325_s18, %s4743_s21  ;;  %p4749_p8 = scmp.lt.s32.totalorder %s4743_s21, %s4743_s21 }
 0xc3b   :  { %p4750_p9 = por %p4749_p8, %p4748_p7 }
 0xc3d   :  { %p4751_p10 = pnand %p4750_p9, %p4744_p6 }
 0xc3f   :  { %4754 = shalt.err (!%p4751_p10)
}
 0xc40   :  { %4327 = dma.vmem_to_hbm [thread:$0]  %s4325_s18, 128, %s6849_s6, [#allocation4]  }
 0xc41   :  { %s4827_s24 = smov [#allocation12]  }
 0xc42   :  { %s4354_s25 = sshll.u32 %s4827_s24, 4  ;;  %s4355_s25 = int_to_ptr.vmem [resolvable:$true] %s4354_s25 }
 0xc43   :  { %s4763_s26 = scalar_lea.vmem %s4355_s25, 128  ;;  %p4768_p12 = scmp.lt.s32.totalorder %s4355_s25, %s4355_s25 }
 0xc44   :  { %p4764_p11 = scmp.ne.s32.totalorder %s4355_s25, %s4763_s26  ;;  %p4769_p13 = scmp.lt.s32.totalorder %s4763_s26, %s4763_s26 }
 0xc46   :  { %p4770_p0 = por %p4769_p13, %p4768_p12 }
 0xc48   :  { %p4771_p1 = pnand %p4770_p0, %p4764_p11 }
 0xc4a   :  { %4774 = shalt.err (!%p4771_p1)
}
 0xc4b   :  { %4357 = dma.vmem_to_hbm [thread:$0]  %s4355_s25, 128, %s6852_s9, [#allocation13]   ;;  %v4299_v55 = vmul.f32 50.0, %v4275_v5  ;;  %v4286_v14 = vpop.xlane.xlu1 %4285  ;;  %vm4316_vm9 = vcmask 0  }
 0xc4c   :  { %v4307_v42 = vmul.f32 50.0, %v4286_v14  ;;  %s4828_s6 = smov [#allocation11]  }
 0xc4d   :  { %v4300_v28 = vsub.f32 %v4299_v55, %v4291_v9  ;;  %s4344_s9 = sshll.u32 %s4828_s6, 4  ;;  %s4345_s9 = int_to_ptr.vmem [resolvable:$true] %s4344_s9 }
 0xc4e   :  { %s4783_s1 = scalar_lea.vmem %s4345_s9, 16  ;;  %s4787_s28 = scalar_lea.vmem %s4345_s9, 32 }
 0xc4f   :  { %v4301_v47 = vmul.f32 1.442695, %v4300_v28  ;;  %p4784_p2 = scmp.ne.s32.totalorder %s4345_s9, %s4783_s1  ;;  %p4788_p3 = scmp.lt.s32.totalorder %s4345_s9, %s4345_s9 }
 0xc50   :  { %p4789_p4 = scmp.lt.s32.totalorder %s4787_s28, %s4783_s1 }
 0xc51   :  { %4631 = vpow2.f32 %v4301_v47 }
 0xc52   :  { %p4790_p5 = por %p4789_p4, %p4788_p3 }
 0xc54   :  { %p4791_p6 = pnand %p4790_p5, %p4784_p2 }
 0xc5e   :  { %v4632_v33 = vpop.eup %4631 }
 0xcbe   :  { %v4298_v16 = vpop.xlane.xlu0 %4297 }
 0xcbf   :  { %v4303_v8 = vadd.f32 %v4632_v33, %v4298_v16 }
 0xcc1   :  { %4633 = vlog2.f32 %v4303_v8 }
 0xcce   :  { %v4634_v4 = vpop.eup %4633 }
 0xccf   :  { %v4305_v37 = vmul.f32 0.6931472, %v4634_v4 }
 0xcd1   :  { %v4306_v22 = vadd.f32 %v4305_v37, %v4291_v9 }
 0xcd3   :  { %v4308_v58 = vsub.f32 %v4306_v22, %v4307_v42 }
 0xcd5   :  { %v4309_v3 = vrot.slane %v4308_v58, 4 }
 0xcd7   :  { %v4310_v61 = vadd.f32 %v4309_v3, %v4308_v58 }
 0xcd9   :  { %v4311_v51 = vrot.slane %v4310_v61, 2 }
 0xcdb   :  { %v4312_v53 = vadd.f32 %v4311_v51, %v4310_v61 }
 0xcdd   :  { %v4313_v20 = vrot.slane %v4312_v53, 1 }
 0xcdf   :  { %v4314_v19 = vadd.f32 %v4313_v20, %v4312_v53 }
 0xce1   :  { %v4315_v26 = vmul.f32 0.125, %v4314_v19 }
 0xce3   :  { %4317 = vst.msk [vmem:[#allocation11] sm:$0x1] %vm4316_vm9, %v4315_v26 }
 0xce4   :  { %4794 = shalt.err (!%p4791_p6)
}
 0xce5   :  { %4347 = dma.vmem_to_hbm [thread:$0]  %s4345_s9, 16, %s6851_s8, [#allocation10]  }
 0xce6   :  { %4807 = dma.done.wait [#allocation4], 128  }
 0xce7   :  { %4808 = vsyncadd [#allocation4], 4294967168 }
 0xce8   :  { %4809 = dma.done.wait [#allocation10], 144  }
 0xce9   :  { %4810 = vsyncadd [#allocation10], 4294967152 }
 0xcea   :  { %4811 = dma.done.wait [#allocation13], 128  }
 0xceb   :  { %4812 = vsyncadd [#allocation13], 4294967168 }
 0xcec   :  { %4374 = vsyncpa [#allocation3], 1 }
 0xced   :  { %4375 = vsyncpa [#allocation6], 1 }
 0xcee   :  { %4376 = vsyncpa [#allocation4], 1 }
 0xcef   :  { %4377 = vsyncpa [#allocation10], 1 }
 0xcf0   :  { %4378 = vsyncpa [#allocation13], 1 }

</bundles_post_ra>
